<compile_context>
chip_gen: v7x
topology: tpu7x:2x2x1
jax: 0.10.0
libtpu: 0.0.40
codegen_flags: <defaults>
</compile_context>

<pallas_src>
import jax
import jax.numpy as jnp
from jax.experimental import pallas as pl
from jax.experimental.pallas import tpu as pltpu


def _round_up(x, m):
    return ((x + m - 1) // m) * m


def _pick_dt(d_out, n, cap=4):
    """Largest depth tile (divisor of d_out, <= cap) keeping >= 4 parallel grid
    steps (or as many as exist) so v7x's two TensorCores stay fed."""
    target = min(4, d_out * n)
    best = 1
    for dt in range(1, min(cap, d_out) + 1):
        if d_out % dt == 0 and (d_out // dt) * n >= target:
            best = dt
    return best


# ----------------------------- Pallas kernel ------------------------------ #
def _make_kernel(dt, kd_taps, tap_bases, hw_pad, slab_src, n_x, has_res, relu):
    """Fused stacked-tap conv kernel.

    Per grid step the kernel emits `dt` output depth slices.  For every distinct
    input depth slab it builds ONE stacked (T*Cin, hw_pad) operand from the T
    shifted spatial windows and contracts it on the MXU with the matching
    (Cout_eff, T*Cin) weight group (one dot per depth tap kd), then applies the
    folded-BN bias, optional residual and optional ReLU, and stores a lane-dense
    bf16 (Cout_eff, hw_pad) block.
    """
    uniq = []
    for j in range(dt):
        for kd in range(kd_taps):
            if slab_src[j][kd] not in uniq:
                uniq.append(slab_src[j][kd])

    def kernel(*refs):
        x_refs = refs[:n_x]
        w_ref = refs[n_x]                       # (G, Cout_eff, T*Cin) bf16
        b_ref = refs[n_x + 1]                   # (Cout_eff, 1)        f32
        res_ref = refs[n_x + 2] if has_res else None
        o_ref = refs[-1]                        # (1, dt, Cout_eff, hw_pad)

        w_all = w_ref[...]
        bias = b_ref[...]

        # One stacked-tap operand per distinct depth slab, reused across the
        # dt output slices / kd taps that read the same slab.
        stacked = {}
        for key in uniq:
            ridx, didx = key
            slab = x_refs[ridx][0, didx]        # (Cin, L) bf16, already in VMEM
            pieces = [slab[:, b0:b0 + hw_pad] for b0 in tap_bases]
            stacked[key] = (jnp.concatenate(pieces, axis=0)
                            if len(pieces) > 1 else pieces[0])

        for j in range(dt):
            acc = None
            for kd in range(kd_taps):
                c = jnp.dot(w_all[kd], stacked[slab_src[j][kd]],
                            preferred_element_type=jnp.float32)
                acc = c if acc is None else acc + c
            y = acc + bias
            if has_res:
                y = y + res_ref[0, j]
            if relu:
                y = jnp.maximum(y, 0.0)
            o_ref[0, j] = y.astype(o_ref.dtype)

    return kernel


def _stacked_conv(x_flat, din_step, kd_taps, tap_bases, w_groups, bias, residual,
                  d_out, hw_pad, relu, dt=None, out_dtype=jnp.bfloat16):
    """Shared pallas_call wrapper for all conv / deconv layers.

    x_flat:   (N, Dx, Cin, L)            bf16, L multiple of 128, zero padded.
    din_step: input-depth stride per output slice (1: s1 conv / deconv, 2: s2).
    kd_taps:  number of depth taps (3 convs, 2 deconv).
    tap_bases: flat within-slab window base offsets (same for every kd).
    w_groups: (G=kd_taps, Cout_eff, T*Cin) bf16 (folded BN scale).
    bias:     (Cout_eff, 1)              f32  (folded BN shift [+ conv bias]).
    residual: (N, d_out, Cout_eff, hw_pad) bf16 or None.
    returns:  (N, d_out, Cout_eff, hw_pad) out_dtype.
    """
    N, Dx, cin, L = x_flat.shape
    G, cout_eff, Kg = w_groups.shape
    assert G == kd_taps and Kg == len(tap_bases) * cin
    assert hw_pad % 128 == 0 and L % 128 == 0

    if dt is None:
        dt = _pick_dt(d_out, N)
    n_tiles = d_out // dt
    main_len = din_step * dt
    n_halos = kd_taps - din_step
    n_x = 1 + n_halos

    # slab_src[j][kd] = (ref index, depth index within that ref's block)
    slab_src = []
    for j in range(dt):
        row = []
        for kd in range(kd_taps):
            o = din_step * j + kd
            row.append((0, o) if o < main_len else (1 + (o - main_len), 0))
        slab_src.append(row)

    kernel = _make_kernel(dt, kd_taps, tap_bases, hw_pad, slab_src, n_x,
                          residual is not None, relu)

    x_specs = [pl.BlockSpec((1, main_len, cin, L), lambda n, d: (n, d, 0, 0))]
    for h in range(n_halos):
        x_specs.append(pl.BlockSpec(
            (1, 1, cin, L),
            lambda n, d, h=h: (n, (d + 1) * main_len + h, 0, 0)))
    w_spec = pl.BlockSpec((G, cout_eff, Kg), lambda n, d: (0, 0, 0))
    b_spec = pl.BlockSpec((cout_eff, 1), lambda n, d: (0, 0))
    io_spec = pl.BlockSpec((1, dt, cout_eff, hw_pad), lambda n, d: (n, d, 0, 0))

    in_specs = x_specs + [w_spec, b_spec]
    args = [x_flat] * n_x + [w_groups, bias]
    if residual is not None:
        in_specs.append(io_spec)
        args.append(residual)

    out_bytes = 2 if out_dtype == jnp.bfloat16 else 4
    flops = 2 * N * d_out * cout_eff * G * Kg * hw_pad
    bytes_accessed = (N * n_tiles * (main_len + n_halos) * cin * L * 2
                      + N * d_out * cout_eff * hw_pad * out_bytes
                      + (N * d_out * cout_eff * hw_pad * 2 if residual is not None else 0)
                      + w_groups.size * 2 + bias.size * 4)

    return pl.pallas_call(
        kernel,
        out_shape=jax.ShapeDtypeStruct((N, d_out, cout_eff, hw_pad), out_dtype),
        grid=(N, n_tiles),
        in_specs=in_specs,
        out_specs=io_spec,
        compiler_params=pltpu.CompilerParams(
            dimension_semantics=("parallel", "parallel")),
        cost_estimate=pl.CostEstimate(flops=int(flops), transcendentals=0,
                                      bytes_accessed=int(bytes_accessed)),
    )(*args)


# ------------------------- layer wrappers (NDCHW) -------------------------- #
# Internal activation layout between layers: (N, D, C, H, W), bfloat16.

def _conv3x3_s1(x, w, scale, shift, residual=None, relu=True):
    """3x3x3 conv, stride 1, pad 1 + folded BN (+residual) (+ReLU)."""
    N, D, Cin, H, W = x.shape
    Cout = w.shape[0]
    Hp, Wp = H + 2, W + 2
    hw_out = H * Wp                              # lane row with 2 garbage cols/row
    hw_pad = _round_up(hw_out, 128)
    max_base = 2 * Wp + 2
    L = _round_up(max(max_base + hw_pad, Hp * Wp), 128)

    xb = x.astype(jnp.bfloat16)
    xb = jnp.pad(xb, ((0, 0), (1, 1), (0, 0), (1, 1), (1, 1)))
    xf = xb.reshape(N, D + 2, Cin, Hp * Wp)
    xf = jnp.pad(xf, ((0, 0), (0, 0), (0, 0), (0, L - Hp * Wp)))

    tap_bases = tuple(kh * Wp + kw for kh in range(3) for kw in range(3))

    ws = w * scale[:, None, None, None, None]
    wg = jnp.transpose(ws, (2, 0, 3, 4, 1)).reshape(3, Cout, 9 * Cin)
    wg = wg.astype(jnp.bfloat16)
    bias = shift.reshape(Cout, 1).astype(jnp.float32)

    res = None
    if residual is not None:                     # NDCHW at output resolution
        r = residual.astype(jnp.bfloat16)
        r = jnp.pad(r, ((0, 0), (0, 0), (0, 0), (0, 0), (0, Wp - W)))
        r = r.reshape(N, D, Cout, H * Wp)
        res = jnp.pad(r, ((0, 0), (0, 0), (0, 0), (0, hw_pad - H * Wp)))

    out = _stacked_conv(xf, 1, 3, tap_bases, wg, bias, res, D, hw_pad, relu)
    return out[..., :hw_out].reshape(N, D, Cout, H, Wp)[..., :W]


def _conv3x3_s2(x, w, scale, shift, relu=True):
    """3x3x3 conv, stride 2, pad 1 + folded BN (+ReLU), via HW-parity split."""
    N, D, Cin, H, W = x.shape
    assert D % 2 == 0 and H % 2 == 0 and W % 2 == 0
    Cout = w.shape[0]
    Do, Ho, Wo = D // 2, H // 2, W // 2
    Hs, Ws = Ho + 1, Wo + 1
    hw_out = Ho * Ws
    hw_pad = _round_up(hw_out, 128)
    max_off = Ws + 1
    Lq = _round_up(max(hw_out + max_off, Hs * Ws), 128)      # per HW-parity quarter
    L = _round_up(3 * Lq + max_off + hw_pad, 128)

    xb = x.astype(jnp.bfloat16)
    xb = jnp.pad(xb, ((0, 0), (1, 1), (0, 0), (1, 1), (1, 1)))   # (N,D+2,C,2Hs,2Ws)
    xr = xb.reshape(N, D + 2, Cin, Hs, 2, Ws, 2)
    xr = jnp.transpose(xr, (0, 1, 2, 4, 6, 3, 5))                # (...,ph,pw,Hs,Ws)
    xr = xr.reshape(N, D + 2, Cin, 4, Hs * Ws)
    xr = jnp.pad(xr, ((0, 0),) * 4 + ((0, Lq - Hs * Ws),))
    xf = xr.reshape(N, D + 2, Cin, 4 * Lq)
    xf = jnp.pad(xf, ((0, 0), (0, 0), (0, 0), (0, L - 4 * Lq)))

    tap_bases = tuple((2 * (kh % 2) + (kw % 2)) * Lq + (kh // 2) * Ws + (kw // 2)
                      for kh in range(3) for kw in range(3))

    ws = w * scale[:, None, None, None, None]
    wg = jnp.transpose(ws, (2, 0, 3, 4, 1)).reshape(3, Cout, 9 * Cin)
    wg = wg.astype(jnp.bfloat16)
    bias = shift.reshape(Cout, 1).astype(jnp.float32)

    out = _stacked_conv(xf, 2, 3, tap_bases, wg, bias, None, Do, hw_pad, relu)
    return out[..., :hw_out].reshape(N, Do, Cout, Ho, Ws)[..., :Wo]


def _deconv3x3_s2(x, wt, scale, shift, residual=None, relu=True):
    """ConvTranspose3d(k=3, s=2, p=1, op=1) + folded BN (+residual) (+ReLU).

    Sub-pixel lowering: the 8 output-parity classes are folded into the output
    channels (weight rows), so one grid step emits all parities of `dt` depth
    slices; parities are interleaved back outside the kernel.
    """
    N, Din, Cin, Hin, Win = x.shape
    Cout = wt.shape[1]
    Wp = Win + 1
    hw_out = Hin * Wp
    hw_pad = _round_up(hw_out, 128)
    max_base = Wp + 1
    L = _round_up(max(max_base + hw_pad, (Hin + 1) * Wp), 128)

    xb = x.astype(jnp.bfloat16)
    xb = jnp.pad(xb, ((0, 0), (0, 1), (0, 0), (0, 1), (0, 1)))   # high pad by 1
    xf = xb.reshape(N, Din + 1, Cin, (Hin + 1) * Wp)
    xf = jnp.pad(xf, ((0, 0), (0, 0), (0, 0), (0, L - (Hin + 1) * Wp)))

    # taps grouped by input depth offset jd; within a group ordered (jh, jw)
    tap_bases = tuple(jh * Wp + jw for jh in range(2) for jw in range(2))

    # (output parity, input offset) -> transposed-kernel index; missing => zero
    kmap = {(0, 0): 1, (1, 0): 2, (1, 1): 0}
    wf = wt * scale[None, :, None, None, None]                   # (Cin,Cout,3,3,3)
    groups = []
    for jd in range(2):
        rows = []
        for pd in range(2):
            kd = kmap.get((pd, jd))
            for ph in range(2):
                for pw in range(2):
                    cols = []
                    for jh in range(2):
                        for jw in range(2):
                            kh = kmap.get((ph, jh))
                            kw = kmap.get((pw, jw))
                            if kd is None or kh is None or kw is None:
                                cols.append(jnp.zeros((Cout, Cin), jnp.float32))
                            else:
                                cols.append(jnp.transpose(wf[:, :, kd, kh, kw], (1, 0)))
                    rows.append(jnp.concatenate(cols, axis=1))   # (Cout, 4*Cin)
        groups.append(jnp.concatenate(rows, axis=0))             # (8*Cout, 4*Cin)
    wg = jnp.stack(groups, 0).astype(jnp.bfloat16)               # (2, 8*Cout, 4*Cin)
    bias = jnp.tile(shift.reshape(1, Cout), (8, 1)).reshape(8 * Cout, 1)
    bias = bias.astype(jnp.float32)

    res = None
    if residual is not None:            # NDCHW at full output resolution
        r = residual.astype(jnp.bfloat16)
        r = r.reshape(N, Din, 2, Cout, Hin, 2, Win, 2)
        r = jnp.transpose(r, (0, 1, 2, 5, 7, 3, 4, 6))  # (N,Din,pd,ph,pw,C,Hin,Win)
        r = jnp.pad(r, ((0, 0),) * 7 + ((0, Wp - Win),))
        r = r.reshape(N, Din, 8 * Cout, Hin * Wp)
        res = jnp.pad(r, ((0, 0),) * 3 + ((0, hw_pad - Hin * Wp),))

    out = _stacked_conv(xf, 1, 2, tap_bases, wg, bias, res, Din, hw_pad, relu)
    # (N, Din, 8*Cout, hw_pad) -> interleave parities -> (N, 2Din, Cout, 2Hin, 2Win)
    out = out[..., :hw_out].reshape(N, Din, 2, 2, 2, Cout, Hin, Wp)[..., :Win]
    out = jnp.transpose(out, (0, 1, 2, 5, 6, 3, 7, 4))
    return out.reshape(N, 2 * Din, Cout, 2 * Hin, 2 * Win)


# --------------------------- parameter setup ------------------------------ #
def _make_layer_params(key, cout, cin, conv_bias, transposed):
    ks = jax.random.split(key, 6)
    if transposed:
        w = 0.05 * jax.random.normal(ks[0], (cin, cout, 3, 3, 3), jnp.float32)
    else:
        w = 0.05 * jax.random.normal(ks[0], (cout, cin, 3, 3, 3), jnp.float32)
    b = 0.05 * jax.random.normal(ks[1], (cout,), jnp.float32) if conv_bias \
        else jnp.zeros((cout,), jnp.float32)
    gamma = 1.0 + 0.1 * jax.random.normal(ks[2], (cout,), jnp.float32)
    beta = 0.1 * jax.random.normal(ks[3], (cout,), jnp.float32)
    mean = 0.1 * jax.random.normal(ks[4], (cout,), jnp.float32)
    var = 1.0 + jnp.abs(jax.random.normal(ks[5], (cout,), jnp.float32))
    scale = gamma / jnp.sqrt(var + 1e-5)
    shift = beta - scale * mean + scale * b
    return w, scale, shift


def make_hourglass_params(key, inplanes):
    c, c2 = inplanes, 2 * inplanes
    k1, k2, k3, k4, k5, k6 = jax.random.split(key, 6)
    return {
        "conv1": _make_layer_params(k1, c2, c,  False, False),  # conv3d_bn (bias=False)+ReLU
        "conv2": _make_layer_params(k2, c2, c2, True,  False),  # Conv3d(bias=True)+BN
        "conv3": _make_layer_params(k3, c2, c2, False, False),
        "conv4": _make_layer_params(k4, c2, c2, False, False),
        "conv5": _make_layer_params(k5, c2, c2, False, True),   # ConvTranspose3d+BN
        "conv6": _make_layer_params(k6, c,  c2, False, True),
    }


# ------------------------------ forward ----------------------------------- #
def hourglass_forward(params, x_ncdhw, presqu_ncdhw=None, postsqu_ncdhw=None):
    flip = lambda a: jnp.transpose(a, (0, 2, 1, 3, 4))   # NCDHW <-> NDCHW

    x = flip(x_ncdhw)
    presqu = flip(presqu_ncdhw) if presqu_ncdhw is not None else None
    postsqu = flip(postsqu_ncdhw) if postsqu_ncdhw is not None else None

    out = _conv3x3_s2(x, *params["conv1"], relu=True)                       # conv1
    pre = _conv3x3_s1(out, *params["conv2"], residual=postsqu, relu=True)   # conv2 (+postsqu)
    out = _conv3x3_s2(pre, *params["conv3"], relu=True)                     # conv3
    out = _conv3x3_s1(out, *params["conv4"], relu=True)                     # conv4
    res5 = presqu if presqu is not None else pre
    post = _deconv3x3_s2(out, *params["conv5"], residual=res5, relu=True)   # conv5 (+presqu/pre)
    out = _deconv3x3_s2(post, *params["conv6"], residual=None, relu=False)  # conv6

    return (flip(out).astype(jnp.float32),
            flip(pre).astype(jnp.float32),
            flip(post).astype(jnp.float32))


# ------------------------ pure-JAX reference (check) ----------------------- #
def _ref_conv3d(x, w, scale, shift, stride, residual=None, relu=True):
    y = jax.lax.conv_general_dilated(
        x, w, window_strides=(stride,) * 3, padding=((1, 1),) * 3,
        dimension_numbers=("NCDHW", "OIDHW", "NCDHW"))
    y = y * scale[None, :, None, None, None] + shift[None, :, None, None, None]
    if residual is not None:
        y = y + residual
    if relu:
        y = jnp.maximum(y, 0.0)
    return y


def _ref_deconv3d(x, wt, scale, shift, residual=None, relu=True):
    w_eq = jnp.transpose(jnp.flip(wt, axis=(2, 3, 4)), (1, 0, 2, 3, 4))
    y = jax.lax.conv_general_dilated(
        x, w_eq, window_strides=(1, 1, 1), padding=((1, 2),) * 3,
        lhs_dilation=(2, 2, 2),
        dimension_numbers=("NCDHW", "OIDHW", "NCDHW"))
    y = y * scale[None, :, None, None, None] + shift[None, :, None, None, None]
    if residual is not None:
        y = y + residual
    if relu:
        y = jnp.maximum(y, 0.0)
    return y


def hourglass_reference(params, x, presqu=None, postsqu=None):
    out = _ref_conv3d(x, *params["conv1"], stride=2, relu=True)
    pre = _ref_conv3d(out, *params["conv2"], stride=1, residual=postsqu, relu=True)
    out = _ref_conv3d(pre, *params["conv3"], stride=2, relu=True)
    out = _ref_conv3d(out, *params["conv4"], stride=1, relu=True)
    res5 = presqu if presqu is not None else pre
    post = _ref_deconv3d(out, *params["conv5"], residual=res5, relu=True)
    out = _ref_deconv3d(post, *params["conv6"], residual=None, relu=False)
    return out, pre, post


# -------------------------------- main ------------------------------------ #
if __name__ == "__main__":
    inplanes = 4
    N, D, H, W = 2, 8, 16, 16

    key = jax.random.PRNGKey(0)
    kx, kp, kq, kparam = jax.random.split(key, 4)

    x = jax.random.normal(kx, (N, inplanes, D, H, W), jnp.float32)
    presqu = jax.random.normal(kp, (N, 2 * inplanes, D // 2, H // 2, W // 2), jnp.float32)
    postsqu = jax.random.normal(kq, (N, 2 * inplanes, D // 2, H // 2, W // 2), jnp.float32)

    params = make_hourglass_params(kparam, inplanes)

    fwd = jax.jit(hourglass_forward)
    out, pre, post = fwd(params, x, presqu, postsqu)
    jax.block_until_ready((out, pre, post))

    assert out.shape == (N, inplanes, D, H, W)
    assert pre.shape == (N, 2 * inplanes, D // 2, H // 2, W // 2)
    assert post.shape == (N, 2 * inplanes, D // 2, H // 2, W // 2)
    assert jnp.all(jnp.isfinite(out)) and jnp.all(jnp.isfinite(pre)) and jnp.all(jnp.isfinite(post))

    # correctness vs. a pure-f32 XLA-conv reference of the same folded module.
    # Tolerance: bf16 matmul operands + bf16 inter-layer activations chained
    # through 6 layers (typical relative L2 error ~1e-2).
    ref_out, ref_pre, ref_post = jax.jit(hourglass_reference)(params, x, presqu, postsqu)
    for got, ref, name in ((out, ref_out, "out"), (pre, ref_pre, "pre"), (post, ref_post, "post")):
        err = jnp.linalg.norm(got - ref) / (jnp.linalg.norm(ref) + 1e-6)
        assert err < 3e-2, f"{name}: relative error {err}"

    print("KERNEL_OK")
</pallas_src>

<mosaic_0001>
module attributes {stable_mosaic.version = 11 : i64} {
  func.func @kernel(%arg0: i32, %arg1: i32, %arg2: memref<1x4x4x640xbf16, #tpu.memory_space<vmem>>, %arg3: memref<1x1x4x640xbf16, #tpu.memory_space<vmem>>, %arg4: memref<3x8x36xbf16, #tpu.memory_space<vmem>>, %arg5: memref<8x1xf32, #tpu.memory_space<vmem>>, %arg6: memref<1x2x8x128xbf16, #tpu.memory_space<vmem>>) attributes {dimension_semantics = [#tpu.dimension_semantics<parallel>, #tpu.dimension_semantics<parallel>], iteration_bounds = array<i64: 2, 2>, scalar_prefetch = 0 : i64, scratch_operands = 0 : i64, tpu.core_type = #tpu.core_type<tc>, window_params = [{transform_indices = @transform_0, window_bounds = array<i64: 1, 4, 4, 640>}, {transform_indices = @transform_1, window_bounds = array<i64: 1, 1, 4, 640>}, {pipeline_mode = #tpu.pipeline_mode<synchronous>, transform_indices = @transform_2, window_bounds = array<i64: 3, 8, 36>}, {pipeline_mode = #tpu.pipeline_mode<synchronous>, transform_indices = @transform_3, window_bounds = array<i64: 8, 1>}, {transform_indices = @transform_4, window_bounds = array<i64: 1, 2, 8, 128>}]} {
    %c0 = arith.constant 0 : index
    %c0_0 = arith.constant 0 : index
    %c0_1 = arith.constant 0 : index
    %0 = vector.load %arg4[%c0, %c0_0, %c0_1] : memref<3x8x36xbf16, #tpu.memory_space<vmem>>, vector<3x8x36xbf16>
    %c0_2 = arith.constant 0 : index
    %c0_3 = arith.constant 0 : index
    %1 = vector.load %arg5[%c0_2, %c0_3] : memref<8x1xf32, #tpu.memory_space<vmem>>, vector<8x1xf32>
    %c0_4 = arith.constant 0 : index
    %c0_5 = arith.constant 0 : index
    %c0_6 = arith.constant 0 : index
    %c0_7 = arith.constant 0 : index
    %2 = vector.load %arg2[%c0_4, %c0_5, %c0_6, %c0_7] : memref<1x4x4x640xbf16, #tpu.memory_space<vmem>>, vector<1x1x4x640xbf16>
    %3 = vector.shape_cast %2 : vector<1x1x4x640xbf16> to vector<4x640xbf16>
    %4 = vector.extract_strided_slice %3 {offsets = [0, 0], sizes = [4, 128], strides = [1, 1]} : vector<4x640xbf16> to vector<4x128xbf16>
    %5 = vector.extract_strided_slice %3 {offsets = [0, 128], sizes = [4, 128], strides = [1, 1]} : vector<4x640xbf16> to vector<4x128xbf16>
    %6 = vector.extract_strided_slice %3 {offsets = [0, 1], sizes = [4, 128], strides = [1, 1]} : vector<4x640xbf16> to vector<4x128xbf16>
    %7 = vector.extract_strided_slice %3 {offsets = [0, 256], sizes = [4, 128], strides = [1, 1]} : vector<4x640xbf16> to vector<4x128xbf16>
    %8 = vector.extract_strided_slice %3 {offsets = [0, 384], sizes = [4, 128], strides = [1, 1]} : vector<4x640xbf16> to vector<4x128xbf16>
    %9 = vector.extract_strided_slice %3 {offsets = [0, 257], sizes = [4, 128], strides = [1, 1]} : vector<4x640xbf16> to vector<4x128xbf16>
    %10 = vector.extract_strided_slice %3 {offsets = [0, 9], sizes = [4, 128], strides = [1, 1]} : vector<4x640xbf16> to vector<4x128xbf16>
    %11 = vector.extract_strided_slice %3 {offsets = [0, 137], sizes = [4, 128], strides = [1, 1]} : vector<4x640xbf16> to vector<4x128xbf16>
    %12 = vector.extract_strided_slice %3 {offsets = [0, 10], sizes = [4, 128], strides = [1, 1]} : vector<4x640xbf16> to vector<4x128xbf16>
    %13 = tpu.concatenate %4, %5, %6, %7, %8, %9, %10, %11, %12 in 0 : vector<4x128xbf16>, vector<4x128xbf16>, vector<4x128xbf16>, vector<4x128xbf16>, vector<4x128xbf16>, vector<4x128xbf16>, vector<4x128xbf16>, vector<4x128xbf16>, vector<4x128xbf16> -> vector<36x128xbf16>
    %c0_8 = arith.constant 0 : index
    %c1 = arith.constant 1 : index
    %c0_9 = arith.constant 0 : index
    %c0_10 = arith.constant 0 : index
    %14 = vector.load %arg2[%c0_8, %c1, %c0_9, %c0_10] : memref<1x4x4x640xbf16, #tpu.memory_space<vmem>>, vector<1x1x4x640xbf16>
    %15 = vector.shape_cast %14 : vector<1x1x4x640xbf16> to vector<4x640xbf16>
    %16 = vector.extract_strided_slice %15 {offsets = [0, 0], sizes = [4, 128], strides = [1, 1]} : vector<4x640xbf16> to vector<4x128xbf16>
    %17 = vector.extract_strided_slice %15 {offsets = [0, 128], sizes = [4, 128], strides = [1, 1]} : vector<4x640xbf16> to vector<4x128xbf16>
    %18 = vector.extract_strided_slice %15 {offsets = [0, 1], sizes = [4, 128], strides = [1, 1]} : vector<4x640xbf16> to vector<4x128xbf16>
    %19 = vector.extract_strided_slice %15 {offsets = [0, 256], sizes = [4, 128], strides = [1, 1]} : vector<4x640xbf16> to vector<4x128xbf16>
    %20 = vector.extract_strided_slice %15 {offsets = [0, 384], sizes = [4, 128], strides = [1, 1]} : vector<4x640xbf16> to vector<4x128xbf16>
    %21 = vector.extract_strided_slice %15 {offsets = [0, 257], sizes = [4, 128], strides = [1, 1]} : vector<4x640xbf16> to vector<4x128xbf16>
    %22 = vector.extract_strided_slice %15 {offsets = [0, 9], sizes = [4, 128], strides = [1, 1]} : vector<4x640xbf16> to vector<4x128xbf16>
    %23 = vector.extract_strided_slice %15 {offsets = [0, 137], sizes = [4, 128], strides = [1, 1]} : vector<4x640xbf16> to vector<4x128xbf16>
    %24 = vector.extract_strided_slice %15 {offsets = [0, 10], sizes = [4, 128], strides = [1, 1]} : vector<4x640xbf16> to vector<4x128xbf16>
    %25 = tpu.concatenate %16, %17, %18, %19, %20, %21, %22, %23, %24 in 0 : vector<4x128xbf16>, vector<4x128xbf16>, vector<4x128xbf16>, vector<4x128xbf16>, vector<4x128xbf16>, vector<4x128xbf16>, vector<4x128xbf16>, vector<4x128xbf16>, vector<4x128xbf16> -> vector<36x128xbf16>
    %c0_11 = arith.constant 0 : index
    %c2 = arith.constant 2 : index
    %c0_12 = arith.constant 0 : index
    %c0_13 = arith.constant 0 : index
    %26 = vector.load %arg2[%c0_11, %c2, %c0_12, %c0_13] : memref<1x4x4x640xbf16, #tpu.memory_space<vmem>>, vector<1x1x4x640xbf16>
    %27 = vector.shape_cast %26 : vector<1x1x4x640xbf16> to vector<4x640xbf16>
    %28 = vector.extract_strided_slice %27 {offsets = [0, 0], sizes = [4, 128], strides = [1, 1]} : vector<4x640xbf16> to vector<4x128xbf16>
    %29 = vector.extract_strided_slice %27 {offsets = [0, 128], sizes = [4, 128], strides = [1, 1]} : vector<4x640xbf16> to vector<4x128xbf16>
    %30 = vector.extract_strided_slice %27 {offsets = [0, 1], sizes = [4, 128], strides = [1, 1]} : vector<4x640xbf16> to vector<4x128xbf16>
    %31 = vector.extract_strided_slice %27 {offsets = [0, 256], sizes = [4, 128], strides = [1, 1]} : vector<4x640xbf16> to vector<4x128xbf16>
    %32 = vector.extract_strided_slice %27 {offsets = [0, 384], sizes = [4, 128], strides = [1, 1]} : vector<4x640xbf16> to vector<4x128xbf16>
    %33 = vector.extract_strided_slice %27 {offsets = [0, 257], sizes = [4, 128], strides = [1, 1]} : vector<4x640xbf16> to vector<4x128xbf16>
    %34 = vector.extract_strided_slice %27 {offsets = [0, 9], sizes = [4, 128], strides = [1, 1]} : vector<4x640xbf16> to vector<4x128xbf16>
    %35 = vector.extract_strided_slice %27 {offsets = [0, 137], sizes = [4, 128], strides = [1, 1]} : vector<4x640xbf16> to vector<4x128xbf16>
    %36 = vector.extract_strided_slice %27 {offsets = [0, 10], sizes = [4, 128], strides = [1, 1]} : vector<4x640xbf16> to vector<4x128xbf16>
    %37 = tpu.concatenate %28, %29, %30, %31, %32, %33, %34, %35, %36 in 0 : vector<4x128xbf16>, vector<4x128xbf16>, vector<4x128xbf16>, vector<4x128xbf16>, vector<4x128xbf16>, vector<4x128xbf16>, vector<4x128xbf16>, vector<4x128xbf16>, vector<4x128xbf16> -> vector<36x128xbf16>
    %c0_14 = arith.constant 0 : index
    %c3 = arith.constant 3 : index
    %c0_15 = arith.constant 0 : index
    %c0_16 = arith.constant 0 : index
    %38 = vector.load %arg2[%c0_14, %c3, %c0_15, %c0_16] : memref<1x4x4x640xbf16, #tpu.memory_space<vmem>>, vector<1x1x4x640xbf16>
    %39 = vector.shape_cast %38 : vector<1x1x4x640xbf16> to vector<4x640xbf16>
    %40 = vector.extract_strided_slice %39 {offsets = [0, 0], sizes = [4, 128], strides = [1, 1]} : vector<4x640xbf16> to vector<4x128xbf16>
    %41 = vector.extract_strided_slice %39 {offsets = [0, 128], sizes = [4, 128], strides = [1, 1]} : vector<4x640xbf16> to vector<4x128xbf16>
    %42 = vector.extract_strided_slice %39 {offsets = [0, 1], sizes = [4, 128], strides = [1, 1]} : vector<4x640xbf16> to vector<4x128xbf16>
    %43 = vector.extract_strided_slice %39 {offsets = [0, 256], sizes = [4, 128], strides = [1, 1]} : vector<4x640xbf16> to vector<4x128xbf16>
    %44 = vector.extract_strided_slice %39 {offsets = [0, 384], sizes = [4, 128], strides = [1, 1]} : vector<4x640xbf16> to vector<4x128xbf16>
    %45 = vector.extract_strided_slice %39 {offsets = [0, 257], sizes = [4, 128], strides = [1, 1]} : vector<4x640xbf16> to vector<4x128xbf16>
    %46 = vector.extract_strided_slice %39 {offsets = [0, 9], sizes = [4, 128], strides = [1, 1]} : vector<4x640xbf16> to vector<4x128xbf16>
    %47 = vector.extract_strided_slice %39 {offsets = [0, 137], sizes = [4, 128], strides = [1, 1]} : vector<4x640xbf16> to vector<4x128xbf16>
    %48 = vector.extract_strided_slice %39 {offsets = [0, 10], sizes = [4, 128], strides = [1, 1]} : vector<4x640xbf16> to vector<4x128xbf16>
    %49 = tpu.concatenate %40, %41, %42, %43, %44, %45, %46, %47, %48 in 0 : vector<4x128xbf16>, vector<4x128xbf16>, vector<4x128xbf16>, vector<4x128xbf16>, vector<4x128xbf16>, vector<4x128xbf16>, vector<4x128xbf16>, vector<4x128xbf16>, vector<4x128xbf16> -> vector<36x128xbf16>
    %c0_17 = arith.constant 0 : index
    %c0_18 = arith.constant 0 : index
    %c0_19 = arith.constant 0 : index
    %c0_20 = arith.constant 0 : index
    %50 = vector.load %arg3[%c0_17, %c0_18, %c0_19, %c0_20] : memref<1x1x4x640xbf16, #tpu.memory_space<vmem>>, vector<1x1x4x640xbf16>
    %51 = vector.shape_cast %50 : vector<1x1x4x640xbf16> to vector<4x640xbf16>
    %52 = vector.extract_strided_slice %51 {offsets = [0, 0], sizes = [4, 128], strides = [1, 1]} : vector<4x640xbf16> to vector<4x128xbf16>
    %53 = vector.extract_strided_slice %51 {offsets = [0, 128], sizes = [4, 128], strides = [1, 1]} : vector<4x640xbf16> to vector<4x128xbf16>
    %54 = vector.extract_strided_slice %51 {offsets = [0, 1], sizes = [4, 128], strides = [1, 1]} : vector<4x640xbf16> to vector<4x128xbf16>
    %55 = vector.extract_strided_slice %51 {offsets = [0, 256], sizes = [4, 128], strides = [1, 1]} : vector<4x640xbf16> to vector<4x128xbf16>
    %56 = vector.extract_strided_slice %51 {offsets = [0, 384], sizes = [4, 128], strides = [1, 1]} : vector<4x640xbf16> to vector<4x128xbf16>
    %57 = vector.extract_strided_slice %51 {offsets = [0, 257], sizes = [4, 128], strides = [1, 1]} : vector<4x640xbf16> to vector<4x128xbf16>
    %58 = vector.extract_strided_slice %51 {offsets = [0, 9], sizes = [4, 128], strides = [1, 1]} : vector<4x640xbf16> to vector<4x128xbf16>
    %59 = vector.extract_strided_slice %51 {offsets = [0, 137], sizes = [4, 128], strides = [1, 1]} : vector<4x640xbf16> to vector<4x128xbf16>
    %60 = vector.extract_strided_slice %51 {offsets = [0, 10], sizes = [4, 128], strides = [1, 1]} : vector<4x640xbf16> to vector<4x128xbf16>
    %61 = tpu.concatenate %52, %53, %54, %55, %56, %57, %58, %59, %60 in 0 : vector<4x128xbf16>, vector<4x128xbf16>, vector<4x128xbf16>, vector<4x128xbf16>, vector<4x128xbf16>, vector<4x128xbf16>, vector<4x128xbf16>, vector<4x128xbf16>, vector<4x128xbf16> -> vector<36x128xbf16>
    %62 = vector.extract_strided_slice %0 {offsets = [0, 0, 0], sizes = [1, 8, 36], strides = [1, 1, 1]} : vector<3x8x36xbf16> to vector<1x8x36xbf16>
    %63 = vector.shape_cast %62 : vector<1x8x36xbf16> to vector<8x36xbf16>
    %cst = arith.constant dense<0.000000e+00> : vector<8x128xf32>
    %64 = tpu.matmul %63, %13, %cst {dimension_numbers = #tpu.dot_dimension_numbers<[1], [0], [0], [1], [0, 0, 1, 1], [], []>} : vector<8x36xbf16>, vector<36x128xbf16>, vector<8x128xf32> -> vector<8x128xf32>
    %65 = vector.extract_strided_slice %0 {offsets = [1, 0, 0], sizes = [1, 8, 36], strides = [1, 1, 1]} : vector<3x8x36xbf16> to vector<1x8x36xbf16>
    %66 = vector.shape_cast %65 : vector<1x8x36xbf16> to vector<8x36xbf16>
    %cst_21 = arith.constant dense<0.000000e+00> : vector<8x128xf32>
    %67 = tpu.matmul %66, %25, %cst_21 {dimension_numbers = #tpu.dot_dimension_numbers<[1], [0], [0], [1], [0, 0, 1, 1], [], []>} : vector<8x36xbf16>, vector<36x128xbf16>, vector<8x128xf32> -> vector<8x128xf32>
    %68 = arith.addf %64, %67 : vector<8x128xf32>
    %69 = vector.extract_strided_slice %0 {offsets = [2, 0, 0], sizes = [1, 8, 36], strides = [1, 1, 1]} : vector<3x8x36xbf16> to vector<1x8x36xbf16>
    %70 = vector.shape_cast %69 : vector<1x8x36xbf16> to vector<8x36xbf16>
    %cst_22 = arith.constant dense<0.000000e+00> : vector<8x128xf32>
    %71 = tpu.matmul %70, %37, %cst_22 {dimension_numbers = #tpu.dot_dimension_numbers<[1], [0], [0], [1], [0, 0, 1, 1], [], []>} : vector<8x36xbf16>, vector<36x128xbf16>, vector<8x128xf32> -> vector<8x128xf32>
    %72 = arith.addf %68, %71 : vector<8x128xf32>
    %73 = vector.broadcast %1 : vector<8x1xf32> to vector<8x128xf32>
    %74 = arith.addf %72, %73 : vector<8x128xf32>
    %cst_23 = arith.constant 0.000000e+00 : f32
    %75 = vector.broadcast %cst_23 : f32 to vector<8x128xf32>
    %76 = arith.maximumf %74, %75 : vector<8x128xf32>
    %77 = arith.truncf %76 : vector<8x128xf32> to vector<8x128xbf16>
    %c0_24 = arith.constant 0 : index
    %c0_25 = arith.constant 0 : index
    %c0_26 = arith.constant 0 : index
    %c0_27 = arith.constant 0 : index
    %78 = vector.load %arg6[%c0_24, %c0_25, %c0_26, %c0_27] : memref<1x2x8x128xbf16, #tpu.memory_space<vmem>>, vector<1x1x8x128xbf16>
    %79 = vector.shape_cast %78 : vector<1x1x8x128xbf16> to vector<8x128xbf16>
    %80 = vector.shape_cast %77 : vector<8x128xbf16> to vector<1x1x8x128xbf16>
    tpu.vector_store %arg6[%c0_24, %c0_25, %c0_26, %c0_27], %80 {strides = array<i32>} : memref<1x2x8x128xbf16, #tpu.memory_space<vmem>>, vector<1x1x8x128xbf16>,
    %81 = vector.extract_strided_slice %0 {offsets = [0, 0, 0], sizes = [1, 8, 36], strides = [1, 1, 1]} : vector<3x8x36xbf16> to vector<1x8x36xbf16>
    %82 = vector.shape_cast %81 : vector<1x8x36xbf16> to vector<8x36xbf16>
    %cst_28 = arith.constant dense<0.000000e+00> : vector<8x128xf32>
    %83 = tpu.matmul %82, %37, %cst_28 {dimension_numbers = #tpu.dot_dimension_numbers<[1], [0], [0], [1], [0, 0, 1, 1], [], []>} : vector<8x36xbf16>, vector<36x128xbf16>, vector<8x128xf32> -> vector<8x128xf32>
    %84 = vector.extract_strided_slice %0 {offsets = [1, 0, 0], sizes = [1, 8, 36], strides = [1, 1, 1]} : vector<3x8x36xbf16> to vector<1x8x36xbf16>
    %85 = vector.shape_cast %84 : vector<1x8x36xbf16> to vector<8x36xbf16>
    %cst_29 = arith.constant dense<0.000000e+00> : vector<8x128xf32>
    %86 = tpu.matmul %85, %49, %cst_29 {dimension_numbers = #tpu.dot_dimension_numbers<[1], [0], [0], [1], [0, 0, 1, 1], [], []>} : vector<8x36xbf16>, vector<36x128xbf16>, vector<8x128xf32> -> vector<8x128xf32>
    %87 = arith.addf %83, %86 : vector<8x128xf32>
    %88 = vector.extract_strided_slice %0 {offsets = [2, 0, 0], sizes = [1, 8, 36], strides = [1, 1, 1]} : vector<3x8x36xbf16> to vector<1x8x36xbf16>
    %89 = vector.shape_cast %88 : vector<1x8x36xbf16> to vector<8x36xbf16>
    %cst_30 = arith.constant dense<0.000000e+00> : vector<8x128xf32>
    %90 = tpu.matmul %89, %61, %cst_30 {dimension_numbers = #tpu.dot_dimension_numbers<[1], [0], [0], [1], [0, 0, 1, 1], [], []>} : vector<8x36xbf16>, vector<36x128xbf16>, vector<8x128xf32> -> vector<8x128xf32>
    %91 = arith.addf %87, %90 : vector<8x128xf32>
    %92 = vector.broadcast %1 : vector<8x1xf32> to vector<8x128xf32>
    %93 = arith.addf %91, %92 : vector<8x128xf32>
    %cst_31 = arith.constant 0.000000e+00 : f32
    %94 = vector.broadcast %cst_31 : f32 to vector<8x128xf32>
    %95 = arith.maximumf %93, %94 : vector<8x128xf32>
    %96 = arith.truncf %95 : vector<8x128xf32> to vector<8x128xbf16>
    %c0_32 = arith.constant 0 : index
    %c1_33 = arith.constant 1 : index
    %c0_34 = arith.constant 0 : index
    %c0_35 = arith.constant 0 : index
    %97 = vector.load %arg6[%c0_32, %c1_33, %c0_34, %c0_35] : memref<1x2x8x128xbf16, #tpu.memory_space<vmem>>, vector<1x1x8x128xbf16>
    %98 = vector.shape_cast %97 : vector<1x1x8x128xbf16> to vector<8x128xbf16>
    %99 = vector.shape_cast %96 : vector<8x128xbf16> to vector<1x1x8x128xbf16>
    tpu.vector_store %arg6[%c0_32, %c1_33, %c0_34, %c0_35], %99 {strides = array<i32>} : memref<1x2x8x128xbf16, #tpu.memory_space<vmem>>, vector<1x1x8x128xbf16>,
    return
  }
  func.func @transform_0(%arg0: i32, %arg1: i32) -> (i32, i32, i32, i32) {
    %c0_i32 = arith.constant 0 : i32
    %c0_i32_0 = arith.constant 0 : i32
    %c0_i32_1 = arith.constant 0 : i32
    return %arg0, %arg1, %c0_i32, %c0_i32_0 : i32, i32, i32, i32
  }
  func.func @transform_1(%arg0: i32, %arg1: i32) -> (i32, i32, i32, i32) {
    %c1_i32 = arith.constant 1 : i32
    %0 = arith.addi %arg1, %c1_i32 : i32
    %c4_i32 = arith.constant 4 : i32
    %1 = arith.muli %0, %c4_i32 : i32
    %c0_i32 = arith.constant 0 : i32
    %2 = arith.addi %1, %c0_i32 : i32
    %c0_i32_0 = arith.constant 0 : i32
    %c0_i32_1 = arith.constant 0 : i32
    %c0_i32_2 = arith.constant 0 : i32
    return %arg0, %2, %c0_i32_0, %c0_i32_1 : i32, i32, i32, i32
  }
  func.func @transform_2(%arg0: i32, %arg1: i32) -> (i32, i32, i32) {
    %c0_i32 = arith.constant 0 : i32
    %c0_i32_0 = arith.constant 0 : i32
    %c0_i32_1 = arith.constant 0 : i32
    %c0_i32_2 = arith.constant 0 : i32
    return %c0_i32, %c0_i32_0, %c0_i32_1 : i32, i32, i32
  }
  func.func @transform_3(%arg0: i32, %arg1: i32) -> (i32, i32) {
    %c0_i32 = arith.constant 0 : i32
    %c0_i32_0 = arith.constant 0 : i32
    %c0_i32_1 = arith.constant 0 : i32
    return %c0_i32, %c0_i32_0 : i32, i32
  }
  func.func @transform_4(%arg0: i32, %arg1: i32) -> (i32, i32, i32, i32) {
    %c0_i32 = arith.constant 0 : i32
    %c0_i32_0 = arith.constant 0 : i32
    %c0_i32_1 = arith.constant 0 : i32
    return %arg0, %arg1, %c0_i32, %c0_i32_0 : i32, i32, i32, i32
  }
}

module attributes {stable_mosaic.version = 11 : i64} {
  func.func @kernel(%arg0: i32, %arg1: i32, %arg2: memref<1x2x8x256xbf16, #tpu.memory_space<vmem>>, %arg3: memref<1x1x8x256xbf16, #tpu.memory_space<vmem>>, %arg4: memref<1x1x8x256xbf16, #tpu.memory_space<vmem>>, %arg5: memref<3x8x72xbf16, #tpu.memory_space<vmem>>, %arg6: memref<8x1xf32, #tpu.memory_space<vmem>>, %arg7: memref<1x2x8x128xbf16, #tpu.memory_space<vmem>>, %arg8: memref<1x2x8x128xbf16, #tpu.memory_space<vmem>>) attributes {dimension_semantics = [#tpu.dimension_semantics<parallel>, #tpu.dimension_semantics<parallel>], iteration_bounds = array<i64: 2, 2>, scalar_prefetch = 0 : i64, scratch_operands = 0 : i64, tpu.core_type = #tpu.core_type<tc>, window_params = [{transform_indices = @transform_0, window_bounds = array<i64: 1, 2, 8, 256>}, {transform_indices = @transform_1, window_bounds = array<i64: 1, 1, 8, 256>}, {transform_indices = @transform_2, window_bounds = array<i64: 1, 1, 8, 256>}, {pipeline_mode = #tpu.pipeline_mode<synchronous>, transform_indices = @transform_3, window_bounds = array<i64: 3, 8, 72>}, {pipeline_mode = #tpu.pipeline_mode<synchronous>, transform_indices = @transform_4, window_bounds = array<i64: 8, 1>}, {transform_indices = @transform_5, window_bounds = array<i64: 1, 2, 8, 128>}, {transform_indices = @transform_6, window_bounds = array<i64: 1, 2, 8, 128>}]} {
    %c0 = arith.constant 0 : index
    %c0_0 = arith.constant 0 : index
    %c0_1 = arith.constant 0 : index
    %0 = vector.load %arg5[%c0, %c0_0, %c0_1] : memref<3x8x72xbf16, #tpu.memory_space<vmem>>, vector<3x8x72xbf16>
    %c0_2 = arith.constant 0 : index
    %c0_3 = arith.constant 0 : index
    %1 = vector.load %arg6[%c0_2, %c0_3] : memref<8x1xf32, #tpu.memory_space<vmem>>, vector<8x1xf32>
    %c0_4 = arith.constant 0 : index
    %c0_5 = arith.constant 0 : index
    %c0_6 = arith.constant 0 : index
    %c0_7 = arith.constant 0 : index
    %2 = vector.load %arg2[%c0_4, %c0_5, %c0_6, %c0_7] : memref<1x2x8x256xbf16, #tpu.memory_space<vmem>>, vector<1x1x8x256xbf16>
    %3 = vector.shape_cast %2 : vector<1x1x8x256xbf16> to vector<8x256xbf16>
    %4 = vector.extract_strided_slice %3 {offsets = [0, 0], sizes = [8, 128], strides = [1, 1]} : vector<8x256xbf16> to vector<8x128xbf16>
    %5 = vector.extract_strided_slice %3 {offsets = [0, 1], sizes = [8, 128], strides = [1, 1]} : vector<8x256xbf16> to vector<8x128xbf16>
    %6 = vector.extract_strided_slice %3 {offsets = [0, 2], sizes = [8, 128], strides = [1, 1]} : vector<8x256xbf16> to vector<8x128xbf16>
    %7 = vector.extract_strided_slice %3 {offsets = [0, 10], sizes = [8, 128], strides = [1, 1]} : vector<8x256xbf16> to vector<8x128xbf16>
    %8 = vector.extract_strided_slice %3 {offsets = [0, 11], sizes = [8, 128], strides = [1, 1]} : vector<8x256xbf16> to vector<8x128xbf16>
    %9 = vector.extract_strided_slice %3 {offsets = [0, 12], sizes = [8, 128], strides = [1, 1]} : vector<8x256xbf16> to vector<8x128xbf16>
    %10 = vector.extract_strided_slice %3 {offsets = [0, 20], sizes = [8, 128], strides = [1, 1]} : vector<8x256xbf16> to vector<8x128xbf16>
    %11 = vector.extract_strided_slice %3 {offsets = [0, 21], sizes = [8, 128], strides = [1, 1]} : vector<8x256xbf16> to vector<8x128xbf16>
    %12 = vector.extract_strided_slice %3 {offsets = [0, 22], sizes = [8, 128], strides = [1, 1]} : vector<8x256xbf16> to vector<8x128xbf16>
    %13 = tpu.concatenate %4, %5, %6, %7, %8, %9, %10, %11, %12 in 0 : vector<8x128xbf16>, vector<8x128xbf16>, vector<8x128xbf16>, vector<8x128xbf16>, vector<8x128xbf16>, vector<8x128xbf16>, vector<8x128xbf16>, vector<8x128xbf16>, vector<8x128xbf16> -> vector<72x128xbf16>
    %c0_8 = arith.constant 0 : index
    %c1 = arith.constant 1 : index
    %c0_9 = arith.constant 0 : index
    %c0_10 = arith.constant 0 : index
    %14 = vector.load %arg2[%c0_8, %c1, %c0_9, %c0_10] : memref<1x2x8x256xbf16, #tpu.memory_space<vmem>>, vector<1x1x8x256xbf16>
    %15 = vector.shape_cast %14 : vector<1x1x8x256xbf16> to vector<8x256xbf16>
    %16 = vector.extract_strided_slice %15 {offsets = [0, 0], sizes = [8, 128], strides = [1, 1]} : vector<8x256xbf16> to vector<8x128xbf16>
    %17 = vector.extract_strided_slice %15 {offsets = [0, 1], sizes = [8, 128], strides = [1, 1]} : vector<8x256xbf16> to vector<8x128xbf16>
    %18 = vector.extract_strided_slice %15 {offsets = [0, 2], sizes = [8, 128], strides = [1, 1]} : vector<8x256xbf16> to vector<8x128xbf16>
    %19 = vector.extract_strided_slice %15 {offsets = [0, 10], sizes = [8, 128], strides = [1, 1]} : vector<8x256xbf16> to vector<8x128xbf16>
    %20 = vector.extract_strided_slice %15 {offsets = [0, 11], sizes = [8, 128], strides = [1, 1]} : vector<8x256xbf16> to vector<8x128xbf16>
    %21 = vector.extract_strided_slice %15 {offsets = [0, 12], sizes = [8, 128], strides = [1, 1]} : vector<8x256xbf16> to vector<8x128xbf16>
    %22 = vector.extract_strided_slice %15 {offsets = [0, 20], sizes = [8, 128], strides = [1, 1]} : vector<8x256xbf16> to vector<8x128xbf16>
    %23 = vector.extract_strided_slice %15 {offsets = [0, 21], sizes = [8, 128], strides = [1, 1]} : vector<8x256xbf16> to vector<8x128xbf16>
    %24 = vector.extract_strided_slice %15 {offsets = [0, 22], sizes = [8, 128], strides = [1, 1]} : vector<8x256xbf16> to vector<8x128xbf16>
    %25 = tpu.concatenate %16, %17, %18, %19, %20, %21, %22, %23, %24 in 0 : vector<8x128xbf16>, vector<8x128xbf16>, vector<8x128xbf16>, vector<8x128xbf16>, vector<8x128xbf16>, vector<8x128xbf16>, vector<8x128xbf16>, vector<8x128xbf16>, vector<8x128xbf16> -> vector<72x128xbf16>
    %c0_11 = arith.constant 0 : index
    %c0_12 = arith.constant 0 : index
    %c0_13 = arith.constant 0 : index
    %c0_14 = arith.constant 0 : index
    %26 = vector.load %arg3[%c0_11, %c0_12, %c0_13, %c0_14] : memref<1x1x8x256xbf16, #tpu.memory_space<vmem>>, vector<1x1x8x256xbf16>
    %27 = vector.shape_cast %26 : vector<1x1x8x256xbf16> to vector<8x256xbf16>
    %28 = vector.extract_strided_slice %27 {offsets = [0, 0], sizes = [8, 128], strides = [1, 1]} : vector<8x256xbf16> to vector<8x128xbf16>
    %29 = vector.extract_strided_slice %27 {offsets = [0, 1], sizes = [8, 128], strides = [1, 1]} : vector<8x256xbf16> to vector<8x128xbf16>
    %30 = vector.extract_strided_slice %27 {offsets = [0, 2], sizes = [8, 128], strides = [1, 1]} : vector<8x256xbf16> to vector<8x128xbf16>
    %31 = vector.extract_strided_slice %27 {offsets = [0, 10], sizes = [8, 128], strides = [1, 1]} : vector<8x256xbf16> to vector<8x128xbf16>
    %32 = vector.extract_strided_slice %27 {offsets = [0, 11], sizes = [8, 128], strides = [1, 1]} : vector<8x256xbf16> to vector<8x128xbf16>
    %33 = vector.extract_strided_slice %27 {offsets = [0, 12], sizes = [8, 128], strides = [1, 1]} : vector<8x256xbf16> to vector<8x128xbf16>
    %34 = vector.extract_strided_slice %27 {offsets = [0, 20], sizes = [8, 128], strides = [1, 1]} : vector<8x256xbf16> to vector<8x128xbf16>
    %35 = vector.extract_strided_slice %27 {offsets = [0, 21], sizes = [8, 128], strides = [1, 1]} : vector<8x256xbf16> to vector<8x128xbf16>
    %36 = vector.extract_strided_slice %27 {offsets = [0, 22], sizes = [8, 128], strides = [1, 1]} : vector<8x256xbf16> to vector<8x128xbf16>
    %37 = tpu.concatenate %28, %29, %30, %31, %32, %33, %34, %35, %36 in 0 : vector<8x128xbf16>, vector<8x128xbf16>, vector<8x128xbf16>, vector<8x128xbf16>, vector<8x128xbf16>, vector<8x128xbf16>, vector<8x128xbf16>, vector<8x128xbf16>, vector<8x128xbf16> -> vector<72x128xbf16>
    %c0_15 = arith.constant 0 : index
    %c0_16 = arith.constant 0 : index
    %c0_17 = arith.constant 0 : index
    %c0_18 = arith.constant 0 : index
    %38 = vector.load %arg4[%c0_15, %c0_16, %c0_17, %c0_18] : memref<1x1x8x256xbf16, #tpu.memory_space<vmem>>, vector<1x1x8x256xbf16>
    %39 = vector.shape_cast %38 : vector<1x1x8x256xbf16> to vector<8x256xbf16>
    %40 = vector.extract_strided_slice %39 {offsets = [0, 0], sizes = [8, 128], strides = [1, 1]} : vector<8x256xbf16> to vector<8x128xbf16>
    %41 = vector.extract_strided_slice %39 {offsets = [0, 1], sizes = [8, 128], strides = [1, 1]} : vector<8x256xbf16> to vector<8x128xbf16>
    %42 = vector.extract_strided_slice %39 {offsets = [0, 2], sizes = [8, 128], strides = [1, 1]} : vector<8x256xbf16> to vector<8x128xbf16>
    %43 = vector.extract_strided_slice %39 {offsets = [0, 10], sizes = [8, 128], strides = [1, 1]} : vector<8x256xbf16> to vector<8x128xbf16>
    %44 = vector.extract_strided_slice %39 {offsets = [0, 11], sizes = [8, 128], strides = [1, 1]} : vector<8x256xbf16> to vector<8x128xbf16>
    %45 = vector.extract_strided_slice %39 {offsets = [0, 12], sizes = [8, 128], strides = [1, 1]} : vector<8x256xbf16> to vector<8x128xbf16>
    %46 = vector.extract_strided_slice %39 {offsets = [0, 20], sizes = [8, 128], strides = [1, 1]} : vector<8x256xbf16> to vector<8x128xbf16>
    %47 = vector.extract_strided_slice %39 {offsets = [0, 21], sizes = [8, 128], strides = [1, 1]} : vector<8x256xbf16> to vector<8x128xbf16>
    %48 = vector.extract_strided_slice %39 {offsets = [0, 22], sizes = [8, 128], strides = [1, 1]} : vector<8x256xbf16> to vector<8x128xbf16>
    %49 = tpu.concatenate %40, %41, %42, %43, %44, %45, %46, %47, %48 in 0 : vector<8x128xbf16>, vector<8x128xbf16>, vector<8x128xbf16>, vector<8x128xbf16>, vector<8x128xbf16>, vector<8x128xbf16>, vector<8x128xbf16>, vector<8x128xbf16>, vector<8x128xbf16> -> vector<72x128xbf16>
    %50 = vector.extract_strided_slice %0 {offsets = [0, 0, 0], sizes = [1, 8, 72], strides = [1, 1, 1]} : vector<3x8x72xbf16> to vector<1x8x72xbf16>
    %51 = vector.shape_cast %50 : vector<1x8x72xbf16> to vector<8x72xbf16>
    %cst = arith.constant dense<0.000000e+00> : vector<8x128xf32>
    %52 = tpu.matmul %51, %13, %cst {dimension_numbers = #tpu.dot_dimension_numbers<[1], [0], [0], [1], [0, 0, 1, 1], [], []>} : vector<8x72xbf16>, vector<72x128xbf16>, vector<8x128xf32> -> vector<8x128xf32>
    %53 = vector.extract_strided_slice %0 {offsets = [1, 0, 0], sizes = [1, 8, 72], strides = [1, 1, 1]} : vector<3x8x72xbf16> to vector<1x8x72xbf16>
    %54 = vector.shape_cast %53 : vector<1x8x72xbf16> to vector<8x72xbf16>
    %cst_19 = arith.constant dense<0.000000e+00> : vector<8x128xf32>
    %55 = tpu.matmul %54, %25, %cst_19 {dimension_numbers = #tpu.dot_dimension_numbers<[1], [0], [0], [1], [0, 0, 1, 1], [], []>} : vector<8x72xbf16>, vector<72x128xbf16>, vector<8x128xf32> -> vector<8x128xf32>
    %56 = arith.addf %52, %55 : vector<8x128xf32>
    %57 = vector.extract_strided_slice %0 {offsets = [2, 0, 0], sizes = [1, 8, 72], strides = [1, 1, 1]} : vector<3x8x72xbf16> to vector<1x8x72xbf16>
    %58 = vector.shape_cast %57 : vector<1x8x72xbf16> to vector<8x72xbf16>
    %cst_20 = arith.constant dense<0.000000e+00> : vector<8x128xf32>
    %59 = tpu.matmul %58, %37, %cst_20 {dimension_numbers = #tpu.dot_dimension_numbers<[1], [0], [0], [1], [0, 0, 1, 1], [], []>} : vector<8x72xbf16>, vector<72x128xbf16>, vector<8x128xf32> -> vector<8x128xf32>
    %60 = arith.addf %56, %59 : vector<8x128xf32>
    %61 = vector.broadcast %1 : vector<8x1xf32> to vector<8x128xf32>
    %62 = arith.addf %60, %61 : vector<8x128xf32>
    %c0_21 = arith.constant 0 : index
    %c0_22 = arith.constant 0 : index
    %c0_23 = arith.constant 0 : index
    %c0_24 = arith.constant 0 : index
    %63 = vector.load %arg7[%c0_21, %c0_22, %c0_23, %c0_24] : memref<1x2x8x128xbf16, #tpu.memory_space<vmem>>, vector<1x1x8x128xbf16>
    %64 = vector.shape_cast %63 : vector<1x1x8x128xbf16> to vector<8x128xbf16>
    %65 = arith.extf %64 : vector<8x128xbf16> to vector<8x128xf32>
    %66 = arith.addf %62, %65 : vector<8x128xf32>
    %cst_25 = arith.constant 0.000000e+00 : f32
    %67 = vector.broadcast %cst_25 : f32 to vector<8x128xf32>
    %68 = arith.maximumf %66, %67 : vector<8x128xf32>
    %69 = arith.truncf %68 : vector<8x128xf32> to vector<8x128xbf16>
    %c0_26 = arith.constant 0 : index
    %c0_27 = arith.constant 0 : index
    %c0_28 = arith.constant 0 : index
    %c0_29 = arith.constant 0 : index
    %70 = vector.load %arg8[%c0_26, %c0_27, %c0_28, %c0_29] : memref<1x2x8x128xbf16, #tpu.memory_space<vmem>>, vector<1x1x8x128xbf16>
    %71 = vector.shape_cast %70 : vector<1x1x8x128xbf16> to vector<8x128xbf16>
    %72 = vector.shape_cast %69 : vector<8x128xbf16> to vector<1x1x8x128xbf16>
    tpu.vector_store %arg8[%c0_26, %c0_27, %c0_28, %c0_29], %72 {strides = array<i32>} : memref<1x2x8x128xbf16, #tpu.memory_space<vmem>>, vector<1x1x8x128xbf16>,
    %73 = vector.extract_strided_slice %0 {offsets = [0, 0, 0], sizes = [1, 8, 72], strides = [1, 1, 1]} : vector<3x8x72xbf16> to vector<1x8x72xbf16>
    %74 = vector.shape_cast %73 : vector<1x8x72xbf16> to vector<8x72xbf16>
    %cst_30 = arith.constant dense<0.000000e+00> : vector<8x128xf32>
    %75 = tpu.matmul %74, %25, %cst_30 {dimension_numbers = #tpu.dot_dimension_numbers<[1], [0], [0], [1], [0, 0, 1, 1], [], []>} : vector<8x72xbf16>, vector<72x128xbf16>, vector<8x128xf32> -> vector<8x128xf32>
    %76 = vector.extract_strided_slice %0 {offsets = [1, 0, 0], sizes = [1, 8, 72], strides = [1, 1, 1]} : vector<3x8x72xbf16> to vector<1x8x72xbf16>
    %77 = vector.shape_cast %76 : vector<1x8x72xbf16> to vector<8x72xbf16>
    %cst_31 = arith.constant dense<0.000000e+00> : vector<8x128xf32>
    %78 = tpu.matmul %77, %37, %cst_31 {dimension_numbers = #tpu.dot_dimension_numbers<[1], [0], [0], [1], [0, 0, 1, 1], [], []>} : vector<8x72xbf16>, vector<72x128xbf16>, vector<8x128xf32> -> vector<8x128xf32>
    %79 = arith.addf %75, %78 : vector<8x128xf32>
    %80 = vector.extract_strided_slice %0 {offsets = [2, 0, 0], sizes = [1, 8, 72], strides = [1, 1, 1]} : vector<3x8x72xbf16> to vector<1x8x72xbf16>
    %81 = vector.shape_cast %80 : vector<1x8x72xbf16> to vector<8x72xbf16>
    %cst_32 = arith.constant dense<0.000000e+00> : vector<8x128xf32>
    %82 = tpu.matmul %81, %49, %cst_32 {dimension_numbers = #tpu.dot_dimension_numbers<[1], [0], [0], [1], [0, 0, 1, 1], [], []>} : vector<8x72xbf16>, vector<72x128xbf16>, vector<8x128xf32> -> vector<8x128xf32>
    %83 = arith.addf %79, %82 : vector<8x128xf32>
    %84 = vector.broadcast %1 : vector<8x1xf32> to vector<8x128xf32>
    %85 = arith.addf %83, %84 : vector<8x128xf32>
    %c0_33 = arith.constant 0 : index
    %c1_34 = arith.constant 1 : index
    %c0_35 = arith.constant 0 : index
    %c0_36 = arith.constant 0 : index
    %86 = vector.load %arg7[%c0_33, %c1_34, %c0_35, %c0_36] : memref<1x2x8x128xbf16, #tpu.memory_space<vmem>>, vector<1x1x8x128xbf16>
    %87 = vector.shape_cast %86 : vector<1x1x8x128xbf16> to vector<8x128xbf16>
    %88 = arith.extf %87 : vector<8x128xbf16> to vector<8x128xf32>
    %89 = arith.addf %85, %88 : vector<8x128xf32>
    %cst_37 = arith.constant 0.000000e+00 : f32
    %90 = vector.broadcast %cst_37 : f32 to vector<8x128xf32>
    %91 = arith.maximumf %89, %90 : vector<8x128xf32>
    %92 = arith.truncf %91 : vector<8x128xf32> to vector<8x128xbf16>
    %c0_38 = arith.constant 0 : index
    %c1_39 = arith.constant 1 : index
    %c0_40 = arith.constant 0 : index
    %c0_41 = arith.constant 0 : index
    %93 = vector.load %arg8[%c0_38, %c1_39, %c0_40, %c0_41] : memref<1x2x8x128xbf16, #tpu.memory_space<vmem>>, vector<1x1x8x128xbf16>
    %94 = vector.shape_cast %93 : vector<1x1x8x128xbf16> to vector<8x128xbf16>
    %95 = vector.shape_cast %92 : vector<8x128xbf16> to vector<1x1x8x128xbf16>
    tpu.vector_store %arg8[%c0_38, %c1_39, %c0_40, %c0_41], %95 {strides = array<i32>} : memref<1x2x8x128xbf16, #tpu.memory_space<vmem>>, vector<1x1x8x128xbf16>,
    return
  }
  func.func @transform_0(%arg0: i32, %arg1: i32) -> (i32, i32, i32, i32) {
    %c0_i32 = arith.constant 0 : i32
    %c0_i32_0 = arith.constant 0 : i32
    %c0_i32_1 = arith.constant 0 : i32
    return %arg0, %arg1, %c0_i32, %c0_i32_0 : i32, i32, i32, i32
  }
  func.func @transform_1(%arg0: i32, %arg1: i32) -> (i32, i32, i32, i32) {
    %c1_i32 = arith.constant 1 : i32
    %0 = arith.addi %arg1, %c1_i32 : i32
    %c2_i32 = arith.constant 2 : i32
    %1 = arith.muli %0, %c2_i32 : i32
    %c0_i32 = arith.constant 0 : i32
    %2 = arith.addi %1, %c0_i32 : i32
    %c0_i32_0 = arith.constant 0 : i32
    %c0_i32_1 = arith.constant 0 : i32
    %c0_i32_2 = arith.constant 0 : i32
    return %arg0, %2, %c0_i32_0, %c0_i32_1 : i32, i32, i32, i32
  }
  func.func @transform_2(%arg0: i32, %arg1: i32) -> (i32, i32, i32, i32) {
    %c1_i32 = arith.constant 1 : i32
    %0 = arith.addi %arg1, %c1_i32 : i32
    %c2_i32 = arith.constant 2 : i32
    %1 = arith.muli %0, %c2_i32 : i32
    %c1_i32_0 = arith.constant 1 : i32
    %2 = arith.addi %1, %c1_i32_0 : i32
    %c0_i32 = arith.constant 0 : i32
    %c0_i32_1 = arith.constant 0 : i32
    %c0_i32_2 = arith.constant 0 : i32
    return %arg0, %2, %c0_i32, %c0_i32_1 : i32, i32, i32, i32
  }
  func.func @transform_3(%arg0: i32, %arg1: i32) -> (i32, i32, i32) {
    %c0_i32 = arith.constant 0 : i32
    %c0_i32_0 = arith.constant 0 : i32
    %c0_i32_1 = arith.constant 0 : i32
    %c0_i32_2 = arith.constant 0 : i32
    return %c0_i32, %c0_i32_0, %c0_i32_1 : i32, i32, i32
  }
  func.func @transform_4(%arg0: i32, %arg1: i32) -> (i32, i32) {
    %c0_i32 = arith.constant 0 : i32
    %c0_i32_0 = arith.constant 0 : i32
    %c0_i32_1 = arith.constant 0 : i32
    return %c0_i32, %c0_i32_0 : i32, i32
  }
  func.func @transform_5(%arg0: i32, %arg1: i32) -> (i32, i32, i32, i32) {
    %c0_i32 = arith.constant 0 : i32
    %c0_i32_0 = arith.constant 0 : i32
    %c0_i32_1 = arith.constant 0 : i32
    return %arg0, %arg1, %c0_i32, %c0_i32_0 : i32, i32, i32, i32
  }
  func.func @transform_6(%arg0: i32, %arg1: i32) -> (i32, i32, i32, i32) {
    %c0_i32 = arith.constant 0 : i32
    %c0_i32_0 = arith.constant 0 : i32
    %c0_i32_1 = arith.constant 0 : i32
    return %arg0, %arg1, %c0_i32, %c0_i32_0 : i32, i32, i32, i32
  }
}

module attributes {stable_mosaic.version = 11 : i64} {
  func.func @kernel(%arg0: i32, %arg1: i32, %arg2: memref<1x2x8x640xbf16, #tpu.memory_space<vmem>>, %arg3: memref<1x1x8x640xbf16, #tpu.memory_space<vmem>>, %arg4: memref<3x8x72xbf16, #tpu.memory_space<vmem>>, %arg5: memref<8x1xf32, #tpu.memory_space<vmem>>, %arg6: memref<1x1x8x128xbf16, #tpu.memory_space<vmem>>) attributes {dimension_semantics = [#tpu.dimension_semantics<parallel>, #tpu.dimension_semantics<parallel>], iteration_bounds = array<i64: 2, 2>, scalar_prefetch = 0 : i64, scratch_operands = 0 : i64, tpu.core_type = #tpu.core_type<tc>, window_params = [{transform_indices = @transform_0, window_bounds = array<i64: 1, 2, 8, 640>}, {transform_indices = @transform_1, window_bounds = array<i64: 1, 1, 8, 640>}, {pipeline_mode = #tpu.pipeline_mode<synchronous>, transform_indices = @transform_2, window_bounds = array<i64: 3, 8, 72>}, {pipeline_mode = #tpu.pipeline_mode<synchronous>, transform_indices = @transform_3, window_bounds = array<i64: 8, 1>}, {transform_indices = @transform_4, window_bounds = array<i64: 1, 1, 8, 128>}]} {
    %c0 = arith.constant 0 : index
    %c0_0 = arith.constant 0 : index
    %c0_1 = arith.constant 0 : index
    %0 = vector.load %arg4[%c0, %c0_0, %c0_1] : memref<3x8x72xbf16, #tpu.memory_space<vmem>>, vector<3x8x72xbf16>
    %c0_2 = arith.constant 0 : index
    %c0_3 = arith.constant 0 : index
    %1 = vector.load %arg5[%c0_2, %c0_3] : memref<8x1xf32, #tpu.memory_space<vmem>>, vector<8x1xf32>
    %c0_4 = arith.constant 0 : index
    %c0_5 = arith.constant 0 : index
    %c0_6 = arith.constant 0 : index
    %c0_7 = arith.constant 0 : index
    %2 = vector.load %arg2[%c0_4, %c0_5, %c0_6, %c0_7] : memref<1x2x8x640xbf16, #tpu.memory_space<vmem>>, vector<1x1x8x640xbf16>
    %3 = vector.shape_cast %2 : vector<1x1x8x640xbf16> to vector<8x640xbf16>
    %4 = vector.extract_strided_slice %3 {offsets = [0, 0], sizes = [8, 128], strides = [1, 1]} : vector<8x640xbf16> to vector<8x128xbf16>
    %5 = vector.extract_strided_slice %3 {offsets = [0, 128], sizes = [8, 128], strides = [1, 1]} : vector<8x640xbf16> to vector<8x128xbf16>
    %6 = vector.extract_strided_slice %3 {offsets = [0, 1], sizes = [8, 128], strides = [1, 1]} : vector<8x640xbf16> to vector<8x128xbf16>
    %7 = vector.extract_strided_slice %3 {offsets = [0, 256], sizes = [8, 128], strides = [1, 1]} : vector<8x640xbf16> to vector<8x128xbf16>
    %8 = vector.extract_strided_slice %3 {offsets = [0, 384], sizes = [8, 128], strides = [1, 1]} : vector<8x640xbf16> to vector<8x128xbf16>
    %9 = vector.extract_strided_slice %3 {offsets = [0, 257], sizes = [8, 128], strides = [1, 1]} : vector<8x640xbf16> to vector<8x128xbf16>
    %10 = vector.extract_strided_slice %3 {offsets = [0, 5], sizes = [8, 128], strides = [1, 1]} : vector<8x640xbf16> to vector<8x128xbf16>
    %11 = vector.extract_strided_slice %3 {offsets = [0, 133], sizes = [8, 128], strides = [1, 1]} : vector<8x640xbf16> to vector<8x128xbf16>
    %12 = vector.extract_strided_slice %3 {offsets = [0, 6], sizes = [8, 128], strides = [1, 1]} : vector<8x640xbf16> to vector<8x128xbf16>
    %13 = tpu.concatenate %4, %5, %6, %7, %8, %9, %10, %11, %12 in 0 : vector<8x128xbf16>, vector<8x128xbf16>, vector<8x128xbf16>, vector<8x128xbf16>, vector<8x128xbf16>, vector<8x128xbf16>, vector<8x128xbf16>, vector<8x128xbf16>, vector<8x128xbf16> -> vector<72x128xbf16>
    %c0_8 = arith.constant 0 : index
    %c1 = arith.constant 1 : index
    %c0_9 = arith.constant 0 : index
    %c0_10 = arith.constant 0 : index
    %14 = vector.load %arg2[%c0_8, %c1, %c0_9, %c0_10] : memref<1x2x8x640xbf16, #tpu.memory_space<vmem>>, vector<1x1x8x640xbf16>
    %15 = vector.shape_cast %14 : vector<1x1x8x640xbf16> to vector<8x640xbf16>
    %16 = vector.extract_strided_slice %15 {offsets = [0, 0], sizes = [8, 128], strides = [1, 1]} : vector<8x640xbf16> to vector<8x128xbf16>
    %17 = vector.extract_strided_slice %15 {offsets = [0, 128], sizes = [8, 128], strides = [1, 1]} : vector<8x640xbf16> to vector<8x128xbf16>
    %18 = vector.extract_strided_slice %15 {offsets = [0, 1], sizes = [8, 128], strides = [1, 1]} : vector<8x640xbf16> to vector<8x128xbf16>
    %19 = vector.extract_strided_slice %15 {offsets = [0, 256], sizes = [8, 128], strides = [1, 1]} : vector<8x640xbf16> to vector<8x128xbf16>
    %20 = vector.extract_strided_slice %15 {offsets = [0, 384], sizes = [8, 128], strides = [1, 1]} : vector<8x640xbf16> to vector<8x128xbf16>
    %21 = vector.extract_strided_slice %15 {offsets = [0, 257], sizes = [8, 128], strides = [1, 1]} : vector<8x640xbf16> to vector<8x128xbf16>
    %22 = vector.extract_strided_slice %15 {offsets = [0, 5], sizes = [8, 128], strides = [1, 1]} : vector<8x640xbf16> to vector<8x128xbf16>
    %23 = vector.extract_strided_slice %15 {offsets = [0, 133], sizes = [8, 128], strides = [1, 1]} : vector<8x640xbf16> to vector<8x128xbf16>
    %24 = vector.extract_strided_slice %15 {offsets = [0, 6], sizes = [8, 128], strides = [1, 1]} : vector<8x640xbf16> to vector<8x128xbf16>
    %25 = tpu.concatenate %16, %17, %18, %19, %20, %21, %22, %23, %24 in 0 : vector<8x128xbf16>, vector<8x128xbf16>, vector<8x128xbf16>, vector<8x128xbf16>, vector<8x128xbf16>, vector<8x128xbf16>, vector<8x128xbf16>, vector<8x128xbf16>, vector<8x128xbf16> -> vector<72x128xbf16>
    %c0_11 = arith.constant 0 : index
    %c0_12 = arith.constant 0 : index
    %c0_13 = arith.constant 0 : index
    %c0_14 = arith.constant 0 : index
    %26 = vector.load %arg3[%c0_11, %c0_12, %c0_13, %c0_14] : memref<1x1x8x640xbf16, #tpu.memory_space<vmem>>, vector<1x1x8x640xbf16>
    %27 = vector.shape_cast %26 : vector<1x1x8x640xbf16> to vector<8x640xbf16>
    %28 = vector.extract_strided_slice %27 {offsets = [0, 0], sizes = [8, 128], strides = [1, 1]} : vector<8x640xbf16> to vector<8x128xbf16>
    %29 = vector.extract_strided_slice %27 {offsets = [0, 128], sizes = [8, 128], strides = [1, 1]} : vector<8x640xbf16> to vector<8x128xbf16>
    %30 = vector.extract_strided_slice %27 {offsets = [0, 1], sizes = [8, 128], strides = [1, 1]} : vector<8x640xbf16> to vector<8x128xbf16>
    %31 = vector.extract_strided_slice %27 {offsets = [0, 256], sizes = [8, 128], strides = [1, 1]} : vector<8x640xbf16> to vector<8x128xbf16>
    %32 = vector.extract_strided_slice %27 {offsets = [0, 384], sizes = [8, 128], strides = [1, 1]} : vector<8x640xbf16> to vector<8x128xbf16>
    %33 = vector.extract_strided_slice %27 {offsets = [0, 257], sizes = [8, 128], strides = [1, 1]} : vector<8x640xbf16> to vector<8x128xbf16>
    %34 = vector.extract_strided_slice %27 {offsets = [0, 5], sizes = [8, 128], strides = [1, 1]} : vector<8x640xbf16> to vector<8x128xbf16>
    %35 = vector.extract_strided_slice %27 {offsets = [0, 133], sizes = [8, 128], strides = [1, 1]} : vector<8x640xbf16> to vector<8x128xbf16>
    %36 = vector.extract_strided_slice %27 {offsets = [0, 6], sizes = [8, 128], strides = [1, 1]} : vector<8x640xbf16> to vector<8x128xbf16>
    %37 = tpu.concatenate %28, %29, %30, %31, %32, %33, %34, %35, %36 in 0 : vector<8x128xbf16>, vector<8x128xbf16>, vector<8x128xbf16>, vector<8x128xbf16>, vector<8x128xbf16>, vector<8x128xbf16>, vector<8x128xbf16>, vector<8x128xbf16>, vector<8x128xbf16> -> vector<72x128xbf16>
    %38 = vector.extract_strided_slice %0 {offsets = [0, 0, 0], sizes = [1, 8, 72], strides = [1, 1, 1]} : vector<3x8x72xbf16> to vector<1x8x72xbf16>
    %39 = vector.shape_cast %38 : vector<1x8x72xbf16> to vector<8x72xbf16>
    %cst = arith.constant dense<0.000000e+00> : vector<8x128xf32>
    %40 = tpu.matmul %39, %13, %cst {dimension_numbers = #tpu.dot_dimension_numbers<[1], [0], [0], [1], [0, 0, 1, 1], [], []>} : vector<8x72xbf16>, vector<72x128xbf16>, vector<8x128xf32> -> vector<8x128xf32>
    %41 = vector.extract_strided_slice %0 {offsets = [1, 0, 0], sizes = [1, 8, 72], strides = [1, 1, 1]} : vector<3x8x72xbf16> to vector<1x8x72xbf16>
    %42 = vector.shape_cast %41 : vector<1x8x72xbf16> to vector<8x72xbf16>
    %cst_15 = arith.constant dense<0.000000e+00> : vector<8x128xf32>
    %43 = tpu.matmul %42, %25, %cst_15 {dimension_numbers = #tpu.dot_dimension_numbers<[1], [0], [0], [1], [0, 0, 1, 1], [], []>} : vector<8x72xbf16>, vector<72x128xbf16>, vector<8x128xf32> -> vector<8x128xf32>
    %44 = arith.addf %40, %43 : vector<8x128xf32>
    %45 = vector.extract_strided_slice %0 {offsets = [2, 0, 0], sizes = [1, 8, 72], strides = [1, 1, 1]} : vector<3x8x72xbf16> to vector<1x8x72xbf16>
    %46 = vector.shape_cast %45 : vector<1x8x72xbf16> to vector<8x72xbf16>
    %cst_16 = arith.constant dense<0.000000e+00> : vector<8x128xf32>
    %47 = tpu.matmul %46, %37, %cst_16 {dimension_numbers = #tpu.dot_dimension_numbers<[1], [0], [0], [1], [0, 0, 1, 1], [], []>} : vector<8x72xbf16>, vector<72x128xbf16>, vector<8x128xf32> -> vector<8x128xf32>
    %48 = arith.addf %44, %47 : vector<8x128xf32>
    %49 = vector.broadcast %1 : vector<8x1xf32> to vector<8x128xf32>
    %50 = arith.addf %48, %49 : vector<8x128xf32>
    %cst_17 = arith.constant 0.000000e+00 : f32
    %51 = vector.broadcast %cst_17 : f32 to vector<8x128xf32>
    %52 = arith.maximumf %50, %51 : vector<8x128xf32>
    %53 = arith.truncf %52 : vector<8x128xf32> to vector<8x128xbf16>
    %c0_18 = arith.constant 0 : index
    %c0_19 = arith.constant 0 : index
    %c0_20 = arith.constant 0 : index
    %c0_21 = arith.constant 0 : index
    %54 = vector.load %arg6[%c0_18, %c0_19, %c0_20, %c0_21] : memref<1x1x8x128xbf16, #tpu.memory_space<vmem>>, vector<1x1x8x128xbf16>
    %55 = vector.shape_cast %54 : vector<1x1x8x128xbf16> to vector<8x128xbf16>
    %56 = vector.shape_cast %53 : vector<8x128xbf16> to vector<1x1x8x128xbf16>
    tpu.vector_store %arg6[%c0_18, %c0_19, %c0_20, %c0_21], %56 {strides = array<i32>} : memref<1x1x8x128xbf16, #tpu.memory_space<vmem>>, vector<1x1x8x128xbf16>,
    return
  }
  func.func @transform_0(%arg0: i32, %arg1: i32) -> (i32, i32, i32, i32) {
    %c0_i32 = arith.constant 0 : i32
    %c0_i32_0 = arith.constant 0 : i32
    %c0_i32_1 = arith.constant 0 : i32
    return %arg0, %arg1, %c0_i32, %c0_i32_0 : i32, i32, i32, i32
  }
  func.func @transform_1(%arg0: i32, %arg1: i32) -> (i32, i32, i32, i32) {
    %c1_i32 = arith.constant 1 : i32
    %0 = arith.addi %arg1, %c1_i32 : i32
    %c2_i32 = arith.constant 2 : i32
    %1 = arith.muli %0, %c2_i32 : i32
    %c0_i32 = arith.constant 0 : i32
    %2 = arith.addi %1, %c0_i32 : i32
    %c0_i32_0 = arith.constant 0 : i32
    %c0_i32_1 = arith.constant 0 : i32
    %c0_i32_2 = arith.constant 0 : i32
    return %arg0, %2, %c0_i32_0, %c0_i32_1 : i32, i32, i32, i32
  }
  func.func @transform_2(%arg0: i32, %arg1: i32) -> (i32, i32, i32) {
    %c0_i32 = arith.constant 0 : i32
    %c0_i32_0 = arith.constant 0 : i32
    %c0_i32_1 = arith.constant 0 : i32
    %c0_i32_2 = arith.constant 0 : i32
    return %c0_i32, %c0_i32_0, %c0_i32_1 : i32, i32, i32
  }
  func.func @transform_3(%arg0: i32, %arg1: i32) -> (i32, i32) {
    %c0_i32 = arith.constant 0 : i32
    %c0_i32_0 = arith.constant 0 : i32
    %c0_i32_1 = arith.constant 0 : i32
    return %c0_i32, %c0_i32_0 : i32, i32
  }
  func.func @transform_4(%arg0: i32, %arg1: i32) -> (i32, i32, i32, i32) {
    %c0_i32 = arith.constant 0 : i32
    %c0_i32_0 = arith.constant 0 : i32
    %c0_i32_1 = arith.constant 0 : i32
    return %arg0, %arg1, %c0_i32, %c0_i32_0 : i32, i32, i32, i32
  }
}

module attributes {stable_mosaic.version = 11 : i64} {
  func.func @kernel(%arg0: i32, %arg1: i32, %arg2: memref<1x1x8x256xbf16, #tpu.memory_space<vmem>>, %arg3: memref<1x1x8x256xbf16, #tpu.memory_space<vmem>>, %arg4: memref<1x1x8x256xbf16, #tpu.memory_space<vmem>>, %arg5: memref<3x8x72xbf16, #tpu.memory_space<vmem>>, %arg6: memref<8x1xf32, #tpu.memory_space<vmem>>, %arg7: memref<1x1x8x128xbf16, #tpu.memory_space<vmem>>) attributes {dimension_semantics = [#tpu.dimension_semantics<parallel>, #tpu.dimension_semantics<parallel>], iteration_bounds = array<i64: 2, 2>, scalar_prefetch = 0 : i64, scratch_operands = 0 : i64, tpu.core_type = #tpu.core_type<tc>, window_params = [{transform_indices = @transform_0, window_bounds = array<i64: 1, 1, 8, 256>}, {transform_indices = @transform_1, window_bounds = array<i64: 1, 1, 8, 256>}, {transform_indices = @transform_2, window_bounds = array<i64: 1, 1, 8, 256>}, {pipeline_mode = #tpu.pipeline_mode<synchronous>, transform_indices = @transform_3, window_bounds = array<i64: 3, 8, 72>}, {pipeline_mode = #tpu.pipeline_mode<synchronous>, transform_indices = @transform_4, window_bounds = array<i64: 8, 1>}, {transform_indices = @transform_5, window_bounds = array<i64: 1, 1, 8, 128>}]} {
    %c0 = arith.constant 0 : index
    %c0_0 = arith.constant 0 : index
    %c0_1 = arith.constant 0 : index
    %0 = vector.load %arg5[%c0, %c0_0, %c0_1] : memref<3x8x72xbf16, #tpu.memory_space<vmem>>, vector<3x8x72xbf16>
    %c0_2 = arith.constant 0 : index
    %c0_3 = arith.constant 0 : index
    %1 = vector.load %arg6[%c0_2, %c0_3] : memref<8x1xf32, #tpu.memory_space<vmem>>, vector<8x1xf32>
    %c0_4 = arith.constant 0 : index
    %c0_5 = arith.constant 0 : index
    %c0_6 = arith.constant 0 : index
    %c0_7 = arith.constant 0 : index
    %2 = vector.load %arg2[%c0_4, %c0_5, %c0_6, %c0_7] : memref<1x1x8x256xbf16, #tpu.memory_space<vmem>>, vector<1x1x8x256xbf16>
    %3 = vector.shape_cast %2 : vector<1x1x8x256xbf16> to vector<8x256xbf16>
    %4 = vector.extract_strided_slice %3 {offsets = [0, 0], sizes = [8, 128], strides = [1, 1]} : vector<8x256xbf16> to vector<8x128xbf16>
    %5 = vector.extract_strided_slice %3 {offsets = [0, 1], sizes = [8, 128], strides = [1, 1]} : vector<8x256xbf16> to vector<8x128xbf16>
    %6 = vector.extract_strided_slice %3 {offsets = [0, 2], sizes = [8, 128], strides = [1, 1]} : vector<8x256xbf16> to vector<8x128xbf16>
    %7 = vector.extract_strided_slice %3 {offsets = [0, 6], sizes = [8, 128], strides = [1, 1]} : vector<8x256xbf16> to vector<8x128xbf16>
    %8 = vector.extract_strided_slice %3 {offsets = [0, 7], sizes = [8, 128], strides = [1, 1]} : vector<8x256xbf16> to vector<8x128xbf16>
    %9 = vector.extract_strided_slice %3 {offsets = [0, 8], sizes = [8, 128], strides = [1, 1]} : vector<8x256xbf16> to vector<8x128xbf16>
    %10 = vector.extract_strided_slice %3 {offsets = [0, 12], sizes = [8, 128], strides = [1, 1]} : vector<8x256xbf16> to vector<8x128xbf16>
    %11 = vector.extract_strided_slice %3 {offsets = [0, 13], sizes = [8, 128], strides = [1, 1]} : vector<8x256xbf16> to vector<8x128xbf16>
    %12 = vector.extract_strided_slice %3 {offsets = [0, 14], sizes = [8, 128], strides = [1, 1]} : vector<8x256xbf16> to vector<8x128xbf16>
    %13 = tpu.concatenate %4, %5, %6, %7, %8, %9, %10, %11, %12 in 0 : vector<8x128xbf16>, vector<8x128xbf16>, vector<8x128xbf16>, vector<8x128xbf16>, vector<8x128xbf16>, vector<8x128xbf16>, vector<8x128xbf16>, vector<8x128xbf16>, vector<8x128xbf16> -> vector<72x128xbf16>
    %c0_8 = arith.constant 0 : index
    %c0_9 = arith.constant 0 : index
    %c0_10 = arith.constant 0 : index
    %c0_11 = arith.constant 0 : index
    %14 = vector.load %arg3[%c0_8, %c0_9, %c0_10, %c0_11] : memref<1x1x8x256xbf16, #tpu.memory_space<vmem>>, vector<1x1x8x256xbf16>
    %15 = vector.shape_cast %14 : vector<1x1x8x256xbf16> to vector<8x256xbf16>
    %16 = vector.extract_strided_slice %15 {offsets = [0, 0], sizes = [8, 128], strides = [1, 1]} : vector<8x256xbf16> to vector<8x128xbf16>
    %17 = vector.extract_strided_slice %15 {offsets = [0, 1], sizes = [8, 128], strides = [1, 1]} : vector<8x256xbf16> to vector<8x128xbf16>
    %18 = vector.extract_strided_slice %15 {offsets = [0, 2], sizes = [8, 128], strides = [1, 1]} : vector<8x256xbf16> to vector<8x128xbf16>
    %19 = vector.extract_strided_slice %15 {offsets = [0, 6], sizes = [8, 128], strides = [1, 1]} : vector<8x256xbf16> to vector<8x128xbf16>
    %20 = vector.extract_strided_slice %15 {offsets = [0, 7], sizes = [8, 128], strides = [1, 1]} : vector<8x256xbf16> to vector<8x128xbf16>
    %21 = vector.extract_strided_slice %15 {offsets = [0, 8], sizes = [8, 128], strides = [1, 1]} : vector<8x256xbf16> to vector<8x128xbf16>
    %22 = vector.extract_strided_slice %15 {offsets = [0, 12], sizes = [8, 128], strides = [1, 1]} : vector<8x256xbf16> to vector<8x128xbf16>
    %23 = vector.extract_strided_slice %15 {offsets = [0, 13], sizes = [8, 128], strides = [1, 1]} : vector<8x256xbf16> to vector<8x128xbf16>
    %24 = vector.extract_strided_slice %15 {offsets = [0, 14], sizes = [8, 128], strides = [1, 1]} : vector<8x256xbf16> to vector<8x128xbf16>
    %25 = tpu.concatenate %16, %17, %18, %19, %20, %21, %22, %23, %24 in 0 : vector<8x128xbf16>, vector<8x128xbf16>, vector<8x128xbf16>, vector<8x128xbf16>, vector<8x128xbf16>, vector<8x128xbf16>, vector<8x128xbf16>, vector<8x128xbf16>, vector<8x128xbf16> -> vector<72x128xbf16>
    %c0_12 = arith.constant 0 : index
    %c0_13 = arith.constant 0 : index
    %c0_14 = arith.constant 0 : index
    %c0_15 = arith.constant 0 : index
    %26 = vector.load %arg4[%c0_12, %c0_13, %c0_14, %c0_15] : memref<1x1x8x256xbf16, #tpu.memory_space<vmem>>, vector<1x1x8x256xbf16>
    %27 = vector.shape_cast %26 : vector<1x1x8x256xbf16> to vector<8x256xbf16>
    %28 = vector.extract_strided_slice %27 {offsets = [0, 0], sizes = [8, 128], strides = [1, 1]} : vector<8x256xbf16> to vector<8x128xbf16>
    %29 = vector.extract_strided_slice %27 {offsets = [0, 1], sizes = [8, 128], strides = [1, 1]} : vector<8x256xbf16> to vector<8x128xbf16>
    %30 = vector.extract_strided_slice %27 {offsets = [0, 2], sizes = [8, 128], strides = [1, 1]} : vector<8x256xbf16> to vector<8x128xbf16>
    %31 = vector.extract_strided_slice %27 {offsets = [0, 6], sizes = [8, 128], strides = [1, 1]} : vector<8x256xbf16> to vector<8x128xbf16>
    %32 = vector.extract_strided_slice %27 {offsets = [0, 7], sizes = [8, 128], strides = [1, 1]} : vector<8x256xbf16> to vector<8x128xbf16>
    %33 = vector.extract_strided_slice %27 {offsets = [0, 8], sizes = [8, 128], strides = [1, 1]} : vector<8x256xbf16> to vector<8x128xbf16>
    %34 = vector.extract_strided_slice %27 {offsets = [0, 12], sizes = [8, 128], strides = [1, 1]} : vector<8x256xbf16> to vector<8x128xbf16>
    %35 = vector.extract_strided_slice %27 {offsets = [0, 13], sizes = [8, 128], strides = [1, 1]} : vector<8x256xbf16> to vector<8x128xbf16>
    %36 = vector.extract_strided_slice %27 {offsets = [0, 14], sizes = [8, 128], strides = [1, 1]} : vector<8x256xbf16> to vector<8x128xbf16>
    %37 = tpu.concatenate %28, %29, %30, %31, %32, %33, %34, %35, %36 in 0 : vector<8x128xbf16>, vector<8x128xbf16>, vector<8x128xbf16>, vector<8x128xbf16>, vector<8x128xbf16>, vector<8x128xbf16>, vector<8x128xbf16>, vector<8x128xbf16>, vector<8x128xbf16> -> vector<72x128xbf16>
    %38 = vector.extract_strided_slice %0 {offsets = [0, 0, 0], sizes = [1, 8, 72], strides = [1, 1, 1]} : vector<3x8x72xbf16> to vector<1x8x72xbf16>
    %39 = vector.shape_cast %38 : vector<1x8x72xbf16> to vector<8x72xbf16>
    %cst = arith.constant dense<0.000000e+00> : vector<8x128xf32>
    %40 = tpu.matmul %39, %13, %cst {dimension_numbers = #tpu.dot_dimension_numbers<[1], [0], [0], [1], [0, 0, 1, 1], [], []>} : vector<8x72xbf16>, vector<72x128xbf16>, vector<8x128xf32> -> vector<8x128xf32>
    %41 = vector.extract_strided_slice %0 {offsets = [1, 0, 0], sizes = [1, 8, 72], strides = [1, 1, 1]} : vector<3x8x72xbf16> to vector<1x8x72xbf16>
    %42 = vector.shape_cast %41 : vector<1x8x72xbf16> to vector<8x72xbf16>
    %cst_16 = arith.constant dense<0.000000e+00> : vector<8x128xf32>
    %43 = tpu.matmul %42, %25, %cst_16 {dimension_numbers = #tpu.dot_dimension_numbers<[1], [0], [0], [1], [0, 0, 1, 1], [], []>} : vector<8x72xbf16>, vector<72x128xbf16>, vector<8x128xf32> -> vector<8x128xf32>
    %44 = arith.addf %40, %43 : vector<8x128xf32>
    %45 = vector.extract_strided_slice %0 {offsets = [2, 0, 0], sizes = [1, 8, 72], strides = [1, 1, 1]} : vector<3x8x72xbf16> to vector<1x8x72xbf16>
    %46 = vector.shape_cast %45 : vector<1x8x72xbf16> to vector<8x72xbf16>
    %cst_17 = arith.constant dense<0.000000e+00> : vector<8x128xf32>
    %47 = tpu.matmul %46, %37, %cst_17 {dimension_numbers = #tpu.dot_dimension_numbers<[1], [0], [0], [1], [0, 0, 1, 1], [], []>} : vector<8x72xbf16>, vector<72x128xbf16>, vector<8x128xf32> -> vector<8x128xf32>
    %48 = arith.addf %44, %47 : vector<8x128xf32>
    %49 = vector.broadcast %1 : vector<8x1xf32> to vector<8x128xf32>
    %50 = arith.addf %48, %49 : vector<8x128xf32>
    %cst_18 = arith.constant 0.000000e+00 : f32
    %51 = vector.broadcast %cst_18 : f32 to vector<8x128xf32>
    %52 = arith.maximumf %50, %51 : vector<8x128xf32>
    %53 = arith.truncf %52 : vector<8x128xf32> to vector<8x128xbf16>
    %c0_19 = arith.constant 0 : index
    %c0_20 = arith.constant 0 : index
    %c0_21 = arith.constant 0 : index
    %c0_22 = arith.constant 0 : index
    %54 = vector.load %arg7[%c0_19, %c0_20, %c0_21, %c0_22] : memref<1x1x8x128xbf16, #tpu.memory_space<vmem>>, vector<1x1x8x128xbf16>
    %55 = vector.shape_cast %54 : vector<1x1x8x128xbf16> to vector<8x128xbf16>
    %56 = vector.shape_cast %53 : vector<8x128xbf16> to vector<1x1x8x128xbf16>
    tpu.vector_store %arg7[%c0_19, %c0_20, %c0_21, %c0_22], %56 {strides = array<i32>} : memref<1x1x8x128xbf16, #tpu.memory_space<vmem>>, vector<1x1x8x128xbf16>,
    return
  }
  func.func @transform_0(%arg0: i32, %arg1: i32) -> (i32, i32, i32, i32) {
    %c0_i32 = arith.constant 0 : i32
    %c0_i32_0 = arith.constant 0 : i32
    %c0_i32_1 = arith.constant 0 : i32
    return %arg0, %arg1, %c0_i32, %c0_i32_0 : i32, i32, i32, i32
  }
  func.func @transform_1(%arg0: i32, %arg1: i32) -> (i32, i32, i32, i32) {
    %c1_i32 = arith.constant 1 : i32
    %0 = arith.addi %arg1, %c1_i32 : i32
    %c1_i32_0 = arith.constant 1 : i32
    %1 = arith.muli %0, %c1_i32_0 : i32
    %c0_i32 = arith.constant 0 : i32
    %2 = arith.addi %1, %c0_i32 : i32
    %c0_i32_1 = arith.constant 0 : i32
    %c0_i32_2 = arith.constant 0 : i32
    %c0_i32_3 = arith.constant 0 : i32
    return %arg0, %2, %c0_i32_1, %c0_i32_2 : i32, i32, i32, i32
  }
  func.func @transform_2(%arg0: i32, %arg1: i32) -> (i32, i32, i32, i32) {
    %c1_i32 = arith.constant 1 : i32
    %0 = arith.addi %arg1, %c1_i32 : i32
    %c1_i32_0 = arith.constant 1 : i32
    %1 = arith.muli %0, %c1_i32_0 : i32
    %c1_i32_1 = arith.constant 1 : i32
    %2 = arith.addi %1, %c1_i32_1 : i32
    %c0_i32 = arith.constant 0 : i32
    %c0_i32_2 = arith.constant 0 : i32
    %c0_i32_3 = arith.constant 0 : i32
    return %arg0, %2, %c0_i32, %c0_i32_2 : i32, i32, i32, i32
  }
  func.func @transform_3(%arg0: i32, %arg1: i32) -> (i32, i32, i32) {
    %c0_i32 = arith.constant 0 : i32
    %c0_i32_0 = arith.constant 0 : i32
    %c0_i32_1 = arith.constant 0 : i32
    %c0_i32_2 = arith.constant 0 : i32
    return %c0_i32, %c0_i32_0, %c0_i32_1 : i32, i32, i32
  }
  func.func @transform_4(%arg0: i32, %arg1: i32) -> (i32, i32) {
    %c0_i32 = arith.constant 0 : i32
    %c0_i32_0 = arith.constant 0 : i32
    %c0_i32_1 = arith.constant 0 : i32
    return %c0_i32, %c0_i32_0 : i32, i32
  }
  func.func @transform_5(%arg0: i32, %arg1: i32) -> (i32, i32, i32, i32) {
    %c0_i32 = arith.constant 0 : i32
    %c0_i32_0 = arith.constant 0 : i32
    %c0_i32_1 = arith.constant 0 : i32
    return %arg0, %arg1, %c0_i32, %c0_i32_0 : i32, i32, i32, i32
  }
}

module attributes {stable_mosaic.version = 11 : i64} {
  func.func @kernel(%arg0: i32, %arg1: i32, %arg2: memref<1x1x8x256xbf16, #tpu.memory_space<vmem>>, %arg3: memref<1x1x8x256xbf16, #tpu.memory_space<vmem>>, %arg4: memref<2x64x32xbf16, #tpu.memory_space<vmem>>, %arg5: memref<64x1xf32, #tpu.memory_space<vmem>>, %arg6: memref<1x1x64x128xbf16, #tpu.memory_space<vmem>>, %arg7: memref<1x1x64x128xbf16, #tpu.memory_space<vmem>>) attributes {dimension_semantics = [#tpu.dimension_semantics<parallel>, #tpu.dimension_semantics<parallel>], iteration_bounds = array<i64: 2, 2>, scalar_prefetch = 0 : i64, scratch_operands = 0 : i64, tpu.core_type = #tpu.core_type<tc>, window_params = [{transform_indices = @transform_0, window_bounds = array<i64: 1, 1, 8, 256>}, {transform_indices = @transform_1, window_bounds = array<i64: 1, 1, 8, 256>}, {pipeline_mode = #tpu.pipeline_mode<synchronous>, transform_indices = @transform_2, window_bounds = array<i64: 2, 64, 32>}, {pipeline_mode = #tpu.pipeline_mode<synchronous>, transform_indices = @transform_3, window_bounds = array<i64: 64, 1>}, {transform_indices = @transform_4, window_bounds = array<i64: 1, 1, 64, 128>}, {transform_indices = @transform_5, window_bounds = array<i64: 1, 1, 64, 128>}]} {
    %c0 = arith.constant 0 : index
    %c0_0 = arith.constant 0 : index
    %c0_1 = arith.constant 0 : index
    %0 = vector.load %arg4[%c0, %c0_0, %c0_1] : memref<2x64x32xbf16, #tpu.memory_space<vmem>>, vector<2x64x32xbf16>
    %c0_2 = arith.constant 0 : index
    %c0_3 = arith.constant 0 : index
    %1 = vector.load %arg5[%c0_2, %c0_3] : memref<64x1xf32, #tpu.memory_space<vmem>>, vector<64x1xf32>
    %c0_4 = arith.constant 0 : index
    %c0_5 = arith.constant 0 : index
    %c0_6 = arith.constant 0 : index
    %c0_7 = arith.constant 0 : index
    %2 = vector.load %arg2[%c0_4, %c0_5, %c0_6, %c0_7] : memref<1x1x8x256xbf16, #tpu.memory_space<vmem>>, vector<1x1x8x256xbf16>
    %3 = vector.shape_cast %2 : vector<1x1x8x256xbf16> to vector<8x256xbf16>
    %4 = vector.extract_strided_slice %3 {offsets = [0, 0], sizes = [8, 128], strides = [1, 1]} : vector<8x256xbf16> to vector<8x128xbf16>
    %5 = vector.extract_strided_slice %3 {offsets = [0, 1], sizes = [8, 128], strides = [1, 1]} : vector<8x256xbf16> to vector<8x128xbf16>
    %6 = vector.extract_strided_slice %3 {offsets = [0, 5], sizes = [8, 128], strides = [1, 1]} : vector<8x256xbf16> to vector<8x128xbf16>
    %7 = vector.extract_strided_slice %3 {offsets = [0, 6], sizes = [8, 128], strides = [1, 1]} : vector<8x256xbf16> to vector<8x128xbf16>
    %8 = tpu.concatenate %4, %5, %6, %7 in 0 : vector<8x128xbf16>, vector<8x128xbf16>, vector<8x128xbf16>, vector<8x128xbf16> -> vector<32x128xbf16>
    %c0_8 = arith.constant 0 : index
    %c0_9 = arith.constant 0 : index
    %c0_10 = arith.constant 0 : index
    %c0_11 = arith.constant 0 : index
    %9 = vector.load %arg3[%c0_8, %c0_9, %c0_10, %c0_11] : memref<1x1x8x256xbf16, #tpu.memory_space<vmem>>, vector<1x1x8x256xbf16>
    %10 = vector.shape_cast %9 : vector<1x1x8x256xbf16> to vector<8x256xbf16>
    %11 = vector.extract_strided_slice %10 {offsets = [0, 0], sizes = [8, 128], strides = [1, 1]} : vector<8x256xbf16> to vector<8x128xbf16>
    %12 = vector.extract_strided_slice %10 {offsets = [0, 1], sizes = [8, 128], strides = [1, 1]} : vector<8x256xbf16> to vector<8x128xbf16>
    %13 = vector.extract_strided_slice %10 {offsets = [0, 5], sizes = [8, 128], strides = [1, 1]} : vector<8x256xbf16> to vector<8x128xbf16>
    %14 = vector.extract_strided_slice %10 {offsets = [0, 6], sizes = [8, 128], strides = [1, 1]} : vector<8x256xbf16> to vector<8x128xbf16>
    %15 = tpu.concatenate %11, %12, %13, %14 in 0 : vector<8x128xbf16>, vector<8x128xbf16>, vector<8x128xbf16>, vector<8x128xbf16> -> vector<32x128xbf16>
    %16 = vector.extract_strided_slice %0 {offsets = [0, 0, 0], sizes = [1, 64, 32], strides = [1, 1, 1]} : vector<2x64x32xbf16> to vector<1x64x32xbf16>
    %17 = vector.shape_cast %16 : vector<1x64x32xbf16> to vector<64x32xbf16>
    %cst = arith.constant dense<0.000000e+00> : vector<64x128xf32>
    %18 = tpu.matmul %17, %8, %cst {dimension_numbers = #tpu.dot_dimension_numbers<[1], [0], [0], [1], [0, 0, 1, 1], [], []>} : vector<64x32xbf16>, vector<32x128xbf16>, vector<64x128xf32> -> vector<64x128xf32>
    %19 = vector.extract_strided_slice %0 {offsets = [1, 0, 0], sizes = [1, 64, 32], strides = [1, 1, 1]} : vector<2x64x32xbf16> to vector<1x64x32xbf16>
    %20 = vector.shape_cast %19 : vector<1x64x32xbf16> to vector<64x32xbf16>
    %cst_12 = arith.constant dense<0.000000e+00> : vector<64x128xf32>
    %21 = tpu.matmul %20, %15, %cst_12 {dimension_numbers = #tpu.dot_dimension_numbers<[1], [0], [0], [1], [0, 0, 1, 1], [], []>} : vector<64x32xbf16>, vector<32x128xbf16>, vector<64x128xf32> -> vector<64x128xf32>
    %22 = arith.addf %18, %21 : vector<64x128xf32>
    %23 = vector.broadcast %1 : vector<64x1xf32> to vector<64x128xf32>
    %24 = arith.addf %22, %23 : vector<64x128xf32>
    %c0_13 = arith.constant 0 : index
    %c0_14 = arith.constant 0 : index
    %c0_15 = arith.constant 0 : index
    %c0_16 = arith.constant 0 : index
    %25 = vector.load %arg6[%c0_13, %c0_14, %c0_15, %c0_16] : memref<1x1x64x128xbf16, #tpu.memory_space<vmem>>, vector<1x1x64x128xbf16>
    %26 = vector.shape_cast %25 : vector<1x1x64x128xbf16> to vector<64x128xbf16>
    %27 = arith.extf %26 : vector<64x128xbf16> to vector<64x128xf32>
    %28 = arith.addf %24, %27 : vector<64x128xf32>
    %cst_17 = arith.constant 0.000000e+00 : f32
    %29 = vector.broadcast %cst_17 : f32 to vector<64x128xf32>
    %30 = arith.maximumf %28, %29 : vector<64x128xf32>
    %31 = arith.truncf %30 : vector<64x128xf32> to vector<64x128xbf16>
    %c0_18 = arith.constant 0 : index
    %c0_19 = arith.constant 0 : index
    %c0_20 = arith.constant 0 : index
    %c0_21 = arith.constant 0 : index
    %32 = vector.load %arg7[%c0_18, %c0_19, %c0_20, %c0_21] : memref<1x1x64x128xbf16, #tpu.memory_space<vmem>>, vector<1x1x64x128xbf16>
    %33 = vector.shape_cast %32 : vector<1x1x64x128xbf16> to vector<64x128xbf16>
    %34 = vector.shape_cast %31 : vector<64x128xbf16> to vector<1x1x64x128xbf16>
    tpu.vector_store %arg7[%c0_18, %c0_19, %c0_20, %c0_21], %34 {strides = array<i32>} : memref<1x1x64x128xbf16, #tpu.memory_space<vmem>>, vector<1x1x64x128xbf16>,
    return
  }
  func.func @transform_0(%arg0: i32, %arg1: i32) -> (i32, i32, i32, i32) {
    %c0_i32 = arith.constant 0 : i32
    %c0_i32_0 = arith.constant 0 : i32
    %c0_i32_1 = arith.constant 0 : i32
    return %arg0, %arg1, %c0_i32, %c0_i32_0 : i32, i32, i32, i32
  }
  func.func @transform_1(%arg0: i32, %arg1: i32) -> (i32, i32, i32, i32) {
    %c1_i32 = arith.constant 1 : i32
    %0 = arith.addi %arg1, %c1_i32 : i32
    %c1_i32_0 = arith.constant 1 : i32
    %1 = arith.muli %0, %c1_i32_0 : i32
    %c0_i32 = arith.constant 0 : i32
    %2 = arith.addi %1, %c0_i32 : i32
    %c0_i32_1 = arith.constant 0 : i32
    %c0_i32_2 = arith.constant 0 : i32
    %c0_i32_3 = arith.constant 0 : i32
    return %arg0, %2, %c0_i32_1, %c0_i32_2 : i32, i32, i32, i32
  }
  func.func @transform_2(%arg0: i32, %arg1: i32) -> (i32, i32, i32) {
    %c0_i32 = arith.constant 0 : i32
    %c0_i32_0 = arith.constant 0 : i32
    %c0_i32_1 = arith.constant 0 : i32
    %c0_i32_2 = arith.constant 0 : i32
    return %c0_i32, %c0_i32_0, %c0_i32_1 : i32, i32, i32
  }
  func.func @transform_3(%arg0: i32, %arg1: i32) -> (i32, i32) {
    %c0_i32 = arith.constant 0 : i32
    %c0_i32_0 = arith.constant 0 : i32
    %c0_i32_1 = arith.constant 0 : i32
    return %c0_i32, %c0_i32_0 : i32, i32
  }
  func.func @transform_4(%arg0: i32, %arg1: i32) -> (i32, i32, i32, i32) {
    %c0_i32 = arith.constant 0 : i32
    %c0_i32_0 = arith.constant 0 : i32
    %c0_i32_1 = arith.constant 0 : i32
    return %arg0, %arg1, %c0_i32, %c0_i32_0 : i32, i32, i32, i32
  }
  func.func @transform_5(%arg0: i32, %arg1: i32) -> (i32, i32, i32, i32) {
    %c0_i32 = arith.constant 0 : i32
    %c0_i32_0 = arith.constant 0 : i32
    %c0_i32_1 = arith.constant 0 : i32
    return %arg0, %arg1, %c0_i32, %c0_i32_0 : i32, i32, i32, i32
  }
}

module attributes {stable_mosaic.version = 11 : i64} {
  func.func @kernel(%arg0: i32, %arg1: i32, %arg2: memref<1x2x8x256xbf16, #tpu.memory_space<vmem>>, %arg3: memref<1x1x8x256xbf16, #tpu.memory_space<vmem>>, %arg4: memref<2x32x32xbf16, #tpu.memory_space<vmem>>, %arg5: memref<32x1xf32, #tpu.memory_space<vmem>>, %arg6: memref<1x2x32x128xbf16, #tpu.memory_space<vmem>>) attributes {dimension_semantics = [#tpu.dimension_semantics<parallel>, #tpu.dimension_semantics<parallel>], iteration_bounds = array<i64: 2, 2>, scalar_prefetch = 0 : i64, scratch_operands = 0 : i64, tpu.core_type = #tpu.core_type<tc>, window_params = [{transform_indices = @transform_0, window_bounds = array<i64: 1, 2, 8, 256>}, {transform_indices = @transform_1, window_bounds = array<i64: 1, 1, 8, 256>}, {pipeline_mode = #tpu.pipeline_mode<synchronous>, transform_indices = @transform_2, window_bounds = array<i64: 2, 32, 32>}, {pipeline_mode = #tpu.pipeline_mode<synchronous>, transform_indices = @transform_3, window_bounds = array<i64: 32, 1>}, {transform_indices = @transform_4, window_bounds = array<i64: 1, 2, 32, 128>}]} {
    %c0 = arith.constant 0 : index
    %c0_0 = arith.constant 0 : index
    %c0_1 = arith.constant 0 : index
    %0 = vector.load %arg4[%c0, %c0_0, %c0_1] : memref<2x32x32xbf16, #tpu.memory_space<vmem>>, vector<2x32x32xbf16>
    %c0_2 = arith.constant 0 : index
    %c0_3 = arith.constant 0 : index
    %1 = vector.load %arg5[%c0_2, %c0_3] : memref<32x1xf32, #tpu.memory_space<vmem>>, vector<32x1xf32>
    %c0_4 = arith.constant 0 : index
    %c0_5 = arith.constant 0 : index
    %c0_6 = arith.constant 0 : index
    %c0_7 = arith.constant 0 : index
    %2 = vector.load %arg2[%c0_4, %c0_5, %c0_6, %c0_7] : memref<1x2x8x256xbf16, #tpu.memory_space<vmem>>, vector<1x1x8x256xbf16>
    %3 = vector.shape_cast %2 : vector<1x1x8x256xbf16> to vector<8x256xbf16>
    %4 = vector.extract_strided_slice %3 {offsets = [0, 0], sizes = [8, 128], strides = [1, 1]} : vector<8x256xbf16> to vector<8x128xbf16>
    %5 = vector.extract_strided_slice %3 {offsets = [0, 1], sizes = [8, 128], strides = [1, 1]} : vector<8x256xbf16> to vector<8x128xbf16>
    %6 = vector.extract_strided_slice %3 {offsets = [0, 9], sizes = [8, 128], strides = [1, 1]} : vector<8x256xbf16> to vector<8x128xbf16>
    %7 = vector.extract_strided_slice %3 {offsets = [0, 10], sizes = [8, 128], strides = [1, 1]} : vector<8x256xbf16> to vector<8x128xbf16>
    %8 = tpu.concatenate %4, %5, %6, %7 in 0 : vector<8x128xbf16>, vector<8x128xbf16>, vector<8x128xbf16>, vector<8x128xbf16> -> vector<32x128xbf16>
    %c0_8 = arith.constant 0 : index
    %c1 = arith.constant 1 : index
    %c0_9 = arith.constant 0 : index
    %c0_10 = arith.constant 0 : index
    %9 = vector.load %arg2[%c0_8, %c1, %c0_9, %c0_10] : memref<1x2x8x256xbf16, #tpu.memory_space<vmem>>, vector<1x1x8x256xbf16>
    %10 = vector.shape_cast %9 : vector<1x1x8x256xbf16> to vector<8x256xbf16>
    %11 = vector.extract_strided_slice %10 {offsets = [0, 0], sizes = [8, 128], strides = [1, 1]} : vector<8x256xbf16> to vector<8x128xbf16>
    %12 = vector.extract_strided_slice %10 {offsets = [0, 1], sizes = [8, 128], strides = [1, 1]} : vector<8x256xbf16> to vector<8x128xbf16>
    %13 = vector.extract_strided_slice %10 {offsets = [0, 9], sizes = [8, 128], strides = [1, 1]} : vector<8x256xbf16> to vector<8x128xbf16>
    %14 = vector.extract_strided_slice %10 {offsets = [0, 10], sizes = [8, 128], strides = [1, 1]} : vector<8x256xbf16> to vector<8x128xbf16>
    %15 = tpu.concatenate %11, %12, %13, %14 in 0 : vector<8x128xbf16>, vector<8x128xbf16>, vector<8x128xbf16>, vector<8x128xbf16> -> vector<32x128xbf16>
    %c0_11 = arith.constant 0 : index
    %c0_12 = arith.constant 0 : index
    %c0_13 = arith.constant 0 : index
    %c0_14 = arith.constant 0 : index
    %16 = vector.load %arg3[%c0_11, %c0_12, %c0_13, %c0_14] : memref<1x1x8x256xbf16, #tpu.memory_space<vmem>>, vector<1x1x8x256xbf16>
    %17 = vector.shape_cast %16 : vector<1x1x8x256xbf16> to vector<8x256xbf16>
    %18 = vector.extract_strided_slice %17 {offsets = [0, 0], sizes = [8, 128], strides = [1, 1]} : vector<8x256xbf16> to vector<8x128xbf16>
    %19 = vector.extract_strided_slice %17 {offsets = [0, 1], sizes = [8, 128], strides = [1, 1]} : vector<8x256xbf16> to vector<8x128xbf16>
    %20 = vector.extract_strided_slice %17 {offsets = [0, 9], sizes = [8, 128], strides = [1, 1]} : vector<8x256xbf16> to vector<8x128xbf16>
    %21 = vector.extract_strided_slice %17 {offsets = [0, 10], sizes = [8, 128], strides = [1, 1]} : vector<8x256xbf16> to vector<8x128xbf16>
    %22 = tpu.concatenate %18, %19, %20, %21 in 0 : vector<8x128xbf16>, vector<8x128xbf16>, vector<8x128xbf16>, vector<8x128xbf16> -> vector<32x128xbf16>
    %23 = vector.extract_strided_slice %0 {offsets = [0, 0, 0], sizes = [1, 32, 32], strides = [1, 1, 1]} : vector<2x32x32xbf16> to vector<1x32x32xbf16>
    %24 = vector.shape_cast %23 : vector<1x32x32xbf16> to vector<32x32xbf16>
    %cst = arith.constant dense<0.000000e+00> : vector<32x128xf32>
    %25 = tpu.matmul %24, %8, %cst {dimension_numbers = #tpu.dot_dimension_numbers<[1], [0], [0], [1], [0, 0, 1, 1], [], []>} : vector<32x32xbf16>, vector<32x128xbf16>, vector<32x128xf32> -> vector<32x128xf32>
    %26 = vector.extract_strided_slice %0 {offsets = [1, 0, 0], sizes = [1, 32, 32], strides = [1, 1, 1]} : vector<2x32x32xbf16> to vector<1x32x32xbf16>
    %27 = vector.shape_cast %26 : vector<1x32x32xbf16> to vector<32x32xbf16>
    %cst_15 = arith.constant dense<0.000000e+00> : vector<32x128xf32>
    %28 = tpu.matmul %27, %15, %cst_15 {dimension_numbers = #tpu.dot_dimension_numbers<[1], [0], [0], [1], [0, 0, 1, 1], [], []>} : vector<32x32xbf16>, vector<32x128xbf16>, vector<32x128xf32> -> vector<32x128xf32>
    %29 = arith.addf %25, %28 : vector<32x128xf32>
    %30 = vector.broadcast %1 : vector<32x1xf32> to vector<32x128xf32>
    %31 = arith.addf %29, %30 : vector<32x128xf32>
    %32 = arith.truncf %31 : vector<32x128xf32> to vector<32x128xbf16>
    %c0_16 = arith.constant 0 : index
    %c0_17 = arith.constant 0 : index
    %c0_18 = arith.constant 0 : index
    %c0_19 = arith.constant 0 : index
    %33 = vector.load %arg6[%c0_16, %c0_17, %c0_18, %c0_19] : memref<1x2x32x128xbf16, #tpu.memory_space<vmem>>, vector<1x1x32x128xbf16>
    %34 = vector.shape_cast %33 : vector<1x1x32x128xbf16> to vector<32x128xbf16>
    %35 = vector.shape_cast %32 : vector<32x128xbf16> to vector<1x1x32x128xbf16>
    tpu.vector_store %arg6[%c0_16, %c0_17, %c0_18, %c0_19], %35 {strides = array<i32>} : memref<1x2x32x128xbf16, #tpu.memory_space<vmem>>, vector<1x1x32x128xbf16>,
    %36 = vector.extract_strided_slice %0 {offsets = [0, 0, 0], sizes = [1, 32, 32], strides = [1, 1, 1]} : vector<2x32x32xbf16> to vector<1x32x32xbf16>
    %37 = vector.shape_cast %36 : vector<1x32x32xbf16> to vector<32x32xbf16>
    %cst_20 = arith.constant dense<0.000000e+00> : vector<32x128xf32>
    %38 = tpu.matmul %37, %15, %cst_20 {dimension_numbers = #tpu.dot_dimension_numbers<[1], [0], [0], [1], [0, 0, 1, 1], [], []>} : vector<32x32xbf16>, vector<32x128xbf16>, vector<32x128xf32> -> vector<32x128xf32>
    %39 = vector.extract_strided_slice %0 {offsets = [1, 0, 0], sizes = [1, 32, 32], strides = [1, 1, 1]} : vector<2x32x32xbf16> to vector<1x32x32xbf16>
    %40 = vector.shape_cast %39 : vector<1x32x32xbf16> to vector<32x32xbf16>
    %cst_21 = arith.constant dense<0.000000e+00> : vector<32x128xf32>
    %41 = tpu.matmul %40, %22, %cst_21 {dimension_numbers = #tpu.dot_dimension_numbers<[1], [0], [0], [1], [0, 0, 1, 1], [], []>} : vector<32x32xbf16>, vector<32x128xbf16>, vector<32x128xf32> -> vector<32x128xf32>
    %42 = arith.addf %38, %41 : vector<32x128xf32>
    %43 = vector.broadcast %1 : vector<32x1xf32> to vector<32x128xf32>
    %44 = arith.addf %42, %43 : vector<32x128xf32>
    %45 = arith.truncf %44 : vector<32x128xf32> to vector<32x128xbf16>
    %c0_22 = arith.constant 0 : index
    %c1_23 = arith.constant 1 : index
    %c0_24 = arith.constant 0 : index
    %c0_25 = arith.constant 0 : index
    %46 = vector.load %arg6[%c0_22, %c1_23, %c0_24, %c0_25] : memref<1x2x32x128xbf16, #tpu.memory_space<vmem>>, vector<1x1x32x128xbf16>
    %47 = vector.shape_cast %46 : vector<1x1x32x128xbf16> to vector<32x128xbf16>
    %48 = vector.shape_cast %45 : vector<32x128xbf16> to vector<1x1x32x128xbf16>
    tpu.vector_store %arg6[%c0_22, %c1_23, %c0_24, %c0_25], %48 {strides = array<i32>} : memref<1x2x32x128xbf16, #tpu.memory_space<vmem>>, vector<1x1x32x128xbf16>,
    return
  }
  func.func @transform_0(%arg0: i32, %arg1: i32) -> (i32, i32, i32, i32) {
    %c0_i32 = arith.constant 0 : i32
    %c0_i32_0 = arith.constant 0 : i32
    %c0_i32_1 = arith.constant 0 : i32
    return %arg0, %arg1, %c0_i32, %c0_i32_0 : i32, i32, i32, i32
  }
  func.func @transform_1(%arg0: i32, %arg1: i32) -> (i32, i32, i32, i32) {
    %c1_i32 = arith.constant 1 : i32
    %0 = arith.addi %arg1, %c1_i32 : i32
    %c2_i32 = arith.constant 2 : i32
    %1 = arith.muli %0, %c2_i32 : i32
    %c0_i32 = arith.constant 0 : i32
    %2 = arith.addi %1, %c0_i32 : i32
    %c0_i32_0 = arith.constant 0 : i32
    %c0_i32_1 = arith.constant 0 : i32
    %c0_i32_2 = arith.constant 0 : i32
    return %arg0, %2, %c0_i32_0, %c0_i32_1 : i32, i32, i32, i32
  }
  func.func @transform_2(%arg0: i32, %arg1: i32) -> (i32, i32, i32) {
    %c0_i32 = arith.constant 0 : i32
    %c0_i32_0 = arith.constant 0 : i32
    %c0_i32_1 = arith.constant 0 : i32
    %c0_i32_2 = arith.constant 0 : i32
    return %c0_i32, %c0_i32_0, %c0_i32_1 : i32, i32, i32
  }
  func.func @transform_3(%arg0: i32, %arg1: i32) -> (i32, i32) {
    %c0_i32 = arith.constant 0 : i32
    %c0_i32_0 = arith.constant 0 : i32
    %c0_i32_1 = arith.constant 0 : i32
    return %c0_i32, %c0_i32_0 : i32, i32
  }
  func.func @transform_4(%arg0: i32, %arg1: i32) -> (i32, i32, i32, i32) {
    %c0_i32 = arith.constant 0 : i32
    %c0_i32_0 = arith.constant 0 : i32
    %c0_i32_1 = arith.constant 0 : i32
    return %arg0, %arg1, %c0_i32, %c0_i32_0 : i32, i32, i32, i32
  }
}

</mosaic_0001>

<bundles_post_ra>
// kernel: hourglass_forward.6
= control target key start
LH: loop header
LB: loop body
LE: loop exit
PB: predicated region body
PF: predicated region fallthrough
CT: control target
= control target key end

     0   :  { %s1301_s15 = smov 0   ;;  %s1303_s16 = smov 0   ;;  %s1611_s0 = inlined_call_operand.vmem [shape: bf16[2,10,4,640], index: 0, kind: input, shape index: {}, may-alias: {0,1}]   ;;  %s1612_s1 = inlined_call_operand.vmem [shape: bf16[2,10,4,640], index: 1, kind: input, shape index: {}, may-alias: {0,1}]   ;;  %s1613_s2 = inlined_call_operand.vmem [shape: bf16[3,8,36], index: 2, kind: input, shape index: {}]   ;;  %s1614_s3 = inlined_call_operand.vmem [shape: f32[8,1], index: 3, kind: input, shape index: {}]   ;;  %s1615_s4 = inlined_call_operand.vmem [shape: bf16[2,4,8,128], index: 4, kind: output, shape index: {}]  }
   0x1   :  { %s1305_s17 = smov 0   ;;  %s1307_s18 = smov 0  }
   0x2   :  { %s1309_s19 = smov 0  }
   0x3 LB: > { %s23_s20 = sadd.s32 1, %s1259_s17  ;;  %s26_s21 = sadd.s32 1, %s1263_s18  ;;  %s1267_s19 = sphi %s1309_s19, %s14_s19   ;;  %s1263_s18 = sphi %s1307_s18, %s1619_s18   ;;  %s1259_s17 = sphi %s1305_s17, %s1618_s17   ;;  %s1255_s16 = sphi %s1303_s16, %s1617_s16   ;;  %s1251_s15 = sphi %s1301_s15, %s1616_s15  }
   0x4   : > { %p24_p0 = scmp.ge.s32.totalorder %s23_s20, 2  ;;  %p1058_p1 = scmp.ge.s32.totalorder %s1267_s19, 1 }
   0x5   : > { %p218_p2 = scmp.lt.s32.totalorder %s1267_s19, 5 }
   0x6   : > { %s1621_s20 = smov (%p24_p0, %s23_s20), 0  ;;  %s1623_s21 = smov (!%p24_p0, %s26_s21), %s1263_s18 }
   0x7   : > { %p219_p3 = pnand %p1058_p1, %p218_p2  ;;  %p28_p4 = scmp.ge.s32.totalorder %s1623_s21, 2 }
   0x8   : > { %s1334_s22 = sshll.u32 (!%p219_p3), %s1251_s15, 2  ;;  %p275_p5 = scmp.lt.s32.totalorder (!%p219_p3), %s1255_s16, 1  ;;  %v324_v0 = vlaneseq (!%p219_p3)  ;;  %v1269_v1 = vmov (!%p219_p3), 1983009808   ;;  %v1270_v5 = vmov (!%p219_p3), 0.0   ;;  %vm371_vm0 = vcmask (!%p219_p3), 1041408  }
   0x9   : > { %s1625_s21 = smov (%p28_p4, %s1623_s21), 0  ;;  %222 = sbr.rel (%p219_p3) target bundleno = 445 (0x1bd), region = 36 }
   0xa   : > { %p277_p6 = scmp.lt.s32.totalorder (!%p219_p3), %s1334_s22, 9  ;;  %v322_v2 = vunpack.c.l.s4 (!%p219_p3), %v1269_v1  ;;  %v325_v4 = vshrl.u32 (!%p219_p3), %v324_v0, 7  ;;  %1118 = vmatprep.subr.bf16.mxu1 (!%p219_p3), %v1270_v5  ;;  %1108 = vmatprep.subr.bf16.mxu0 (!%p219_p3), %v1270_v5  ;;  %s1271_s5 = smov (!%p219_p3), 127   ;;  %vm1273_vm1 = vmmov (!%p219_p3), 0   ;;  %v1275_v57 = vmov (!%p219_p3), 0   ;;  %v317_v58 = vld [vmem:[%s1614_s3] sm:$0xff] (!%p219_p3) }
   0xb   : > { %s1272_s6 = smov (!%p219_p3), 119   ;;  %s1083_s7 = sadd.s32 (!%p219_p3), 4, %s1334_s22  ;;  %1114 = vmatprep.mubr.msk.bf16.mxu0 (!%p219_p3), %vm1273_vm1, %v1270_v5  ;;  %1124 = vmatprep.mubr.msk.bf16.mxu1 (!%p219_p3), %vm1273_vm1, %v1270_v5  ;;  %vm341_vm2 = vcmask (!%p219_p3), 1039360   ;;  %vm375_vm3 = vcmask (!%p219_p3), 1043456   ;;  %vm378_vm4 = vcmask (!%p219_p3), 1045504   ;;  %vm360_vm5 = vcmask (!%p219_p3), 973824  }
   0xc   : > { %v323_v3 = vunpack.c.0.s8 (!%p219_p3), %v322_v2  ;;  %p294_p7 = scmp.lt.s32.totalorder (!%p219_p3), %s1083_s7, 9  ;;  %s1274_s8 = smov (!%p219_p3), 118   ;;  %1218 = vset.pattern.permute.xlu0 (!%p219_p3), %v1275_v57  ;;  %vm369_vm6 = vcmask (!%p219_p3), 965632   ;;  %vm657_vm7 = vcmask (!%p219_p3), 293888  }
   0xe   : > { %v1345_v6 = vsub.s32 (!%p219_p3), %v323_v3, %v325_v4 }
  0x10   : > { %s1627_s16 = smov (!%p275_p5, %s1255_s16), 1  ;;  %s1629_s7 = smov (!%p294_p7, %s1083_s7), 9 }
  0x11   : > { %s278_s23 = scalar_select %p277_p6, %s1334_s22, 9 }
  0x12   : > { %s1169_s24 = smul.u32 50, %s1627_s16 }
  0x13   : > { %s1168_s25 = smul.u32 5, %s278_s23 }
  0x14   : > { %s1170_s9 = smul.u32 5, %s1629_s7 }
  0x15   : > { %s281_s26 = sadd.s32 %s1169_s24, %s1168_s25 }
  0x16   : > { %s1060_s27 = sshll.u32 %s281_s26, 1  ;;  %s298_s10 = sadd.s32 %s1170_s9, %s1169_s24 }
  0x17   : > { %s1350_s30 = scalar_lea.vmem %s1611_s0, %s1060_s27  ;;  %s1062_s11 = sshll.u32 %s298_s10, 1 }
  0x18   : > { %v1066_v7 = vld [vmem:[%s1350_s30 + $0xa] sm:$0xff]  ;;  %v318_v8 = vld [vmem:[%s1350_s30] sm:$0xff]  ;;  %v1067_v25 = vld [vmem:[%s1350_s30 + $0x14] sm:$0xff]  ;;  %s300_s14 = scalar_lea.vmem %s1612_s1, %s1062_s11 }
  0x19   : > { %v407_v9 = vrot.slane %v1066_v7, %v1345_v6  ;;  %v334_v10 = vrot.slane %v318_v8, %v1345_v6  ;;  %v393_v11 = vcombine.low %v1066_v7, %v1066_v7  ;;  %v320_v12 = vcombine.low %v318_v8, %v318_v8  ;;  %v1068_v29 = vld [vmem:[%s1350_s30 + $0x1e] sm:$0xff]  ;;  %s1063_s30 = sshll.u32 %s1251_s15, 1 }
  0x1a   : > { %v415_v18 = vcombine.high %v1066_v7, %v1066_v7  ;;  %v343_v20 = vcombine.high %v318_v8, %v318_v8  ;;  %v460_v28 = vcombine.low %v1067_v25, %v1067_v25  ;;  %v527_v31 = vcombine.low %v1068_v29, %v1068_v29  ;;  %v591_v46 = vld [vmem:[%s300_s14] sm:$0xff]  ;;  %p306_p8 = scmp.lt.s32.totalorder %s1063_s30, 3 }
  0x1b   : > { %412 = vrot.lane.b32.xlu0 %v407_v9, %s1271_s5  ;;  %339 = vrot.lane.b32.xlu1 %v334_v10, %s1271_s5  ;;  %v1358_v13 = vcombine.low %v334_v10, %v334_v10  ;;  %v400_v14 = vrot.slane %v393_v11, %v1345_v6  ;;  %v327_v15 = vrot.slane %v320_v12, %v1345_v6 }
  0x1c   : > { %v1365_v19 = vcombine.low %v407_v9, %v407_v9  ;;  %v1371_v22 = vrot.slane %v415_v18, %v1345_v6  ;;  %v1377_v24 = vrot.slane %v343_v20, %v1345_v6  ;;  %v424_v26 = vcombine.high %v407_v9, %v407_v9  ;;  %s1631_s30 = smov (!%p306_p8, %s1063_s30), 3 }
  0x1d   : > { %v408_v16 = vcombine.high %v400_v14, %v400_v14  ;;  %v335_v17 = vcombine.high %v327_v15, %v327_v15  ;;  %v352_v27 = vcombine.high %v334_v10, %v334_v10  ;;  %v467_v30 = vrot.slane %v460_v28, %v1345_v6 }
  0x1e   : > { %v534_v33 = vrot.slane %v527_v31, %v1345_v6  ;;  %v482_v37 = vcombine.high %v1067_v25, %v1067_v25  ;;  %v474_v38 = vrot.slane %v1067_v25, %v1345_v6  ;;  %v541_v41 = vrot.slane %v1068_v29, %v1345_v6 }
  0x1f   : > { %430 = vrot.lane.b32.xlu0 %v407_v9, %s1272_s6  ;;  %337 = vrot.lane.b32.xlu1 %v1358_v13, %s1271_s5  ;;  %v1368_v21 = vsel %vm371_vm0, %v318_v8, %v335_v17  ;;  %v1374_v23 = vsel %vm371_vm0, %v1066_v7, %v408_v16  ;;  %v475_v32 = vcombine.high %v467_v30, %v467_v30 }
  0x20   : > { %v542_v34 = vcombine.high %v534_v33, %v534_v33  ;;  %v1409_v39 = vrot.slane %v482_v37, %v1345_v6  ;;  %v1413_v40 = vcombine.low %v474_v38, %v474_v38  ;;  %v549_v42 = vcombine.high %v1068_v29, %v1068_v29 }
  0x21   : > { %v1394_v35 = vsel %vm371_vm0, %v1067_v25, %v475_v32  ;;  %v1421_v43 = vcombine.low %v541_v41, %v541_v41  ;;  %v491_v45 = vcombine.high %v474_v38, %v474_v38  ;;  %v593_v47 = vcombine.low %v591_v46, %v591_v46  ;;  %v1504_v32 = vld [vmem:[%s1613_s2 + $0x4] sm:$0xf] }
  0x22   : > { %v1403_v36 = vsel %vm371_vm0, %v1068_v29, %v542_v34  ;;  %v1424_v44 = vrot.slane %v549_v42, %v1345_v6  ;;  %v558_v48 = vcombine.high %v541_v41, %v541_v41  ;;  %v615_v52 = vcombine.high %v591_v46, %v591_v46 }
  0x23   : > { %410 = vrot.lane.b32.xlu0 %v1365_v19, %s1271_s5  ;;  %428 = vrot.lane.b32.xlu1 %v1365_v19, %s1272_s6  ;;  %v600_v49 = vrot.slane %v593_v47, %v1345_v6  ;;  %v607_v54 = vrot.slane %v591_v46, %v1345_v6  ;;  %v351_v16 = vcombine.high %v1377_v24, %v1377_v24 }
  0x24   : > { %v1447_v53 = vrot.slane %v615_v52, %v1345_v6  ;;  %v423_v6 = vcombine.high %v1371_v22, %v1371_v22 }
  0x25   : > { %v608_v50 = vcombine.high %v600_v49, %v600_v49  ;;  %v1454_v55 = vcombine.low %v607_v54, %v607_v54  ;;  %v624_v56 = vcombine.high %v607_v54, %v607_v54 }
  0x27   : > { %425 = vrot.lane.b32.xlu0 %v424_v26, %s1271_s5  ;;  %353 = vrot.lane.b32.xlu1 %v352_v27, %s1271_s5  ;;  %v1442_v51 = vsel %vm371_vm0, %v591_v46, %v608_v50 }
  0x2b   : > { %433 = vrot.lane.b32.xlu0 %v400_v14, %s1272_s6  ;;  %356 = vrot.lane.b32.xlu1 %v1358_v13, %s1272_s6 }
  0x2f   : > { %358 = vrot.lane.b32.xlu0 %v334_v10, %s1272_s6  ;;  %362 = vrot.lane.b32.xlu1 %v327_v15, %s1272_s6 }
  0x33   : > { %436 = vrot.lane.b32.xlu0 %v407_v9, %s1274_s8  ;;  %438 = vrot.lane.b32.xlu1 %v424_v26, %s1274_s8 }
  0x37   : > { %365 = vrot.lane.b32.xlu0 %v334_v10, %s1274_s8  ;;  %367 = vrot.lane.b32.xlu1 %v352_v27, %s1274_s8 }
  0x3b   : > { %477 = vrot.lane.b32.xlu0 %v1413_v40, %s1271_s5  ;;  %479 = vrot.lane.b32.xlu1 %v474_v38, %s1271_s5 }
  0x3f   : > { %544 = vrot.lane.b32.xlu0 %v1421_v43, %s1271_s5  ;;  %546 = vrot.lane.b32.xlu1 %v541_v41, %s1271_s5 }
  0x43   : > { %492 = vrot.lane.b32.xlu0 %v491_v45, %s1271_s5  ;;  %495 = vrot.lane.b32.xlu1 %v1413_v40, %s1272_s6 }
  0x47   : > { %497 = vrot.lane.b32.xlu0 %v474_v38, %s1272_s6  ;;  %500 = vrot.lane.b32.xlu1 %v467_v30, %s1272_s6 }
  0x4b   : > { %559 = vrot.lane.b32.xlu0 %v558_v48, %s1271_s5  ;;  %562 = vrot.lane.b32.xlu1 %v1421_v43, %s1272_s6 }
  0x4f   : > { %564 = vrot.lane.b32.xlu0 %v541_v41, %s1272_s6  ;;  %567 = vrot.lane.b32.xlu1 %v534_v33, %s1272_s6 }
  0x53   : > { %503 = vrot.lane.b32.xlu0 %v474_v38, %s1274_s8  ;;  %505 = vrot.lane.b32.xlu1 %v491_v45, %s1274_s8 }
  0x57   : > { %570 = vrot.lane.b32.xlu0 %v541_v41, %s1274_s8  ;;  %572 = vrot.lane.b32.xlu1 %v558_v48, %s1274_s8  ;;  %v1514_v41 = vld [vmem:[%s1613_s2] sm:$0xf] }
  0x5b   : > { %610 = vrot.lane.b32.xlu0 %v1454_v55, %s1271_s5  ;;  %612 = vrot.lane.b32.xlu1 %v607_v54, %s1271_s5 }
  0x5f   : > { %625 = vrot.lane.b32.xlu0 %v624_v56, %s1271_s5  ;;  %628 = vrot.lane.b32.xlu1 %v1454_v55, %s1272_s6  ;;  %s1064_s5 = sshll.u32 %s1627_s16, 2 }
  0x63   : > { %630 = vrot.lane.b32.xlu0 %v607_v54, %s1272_s6  ;;  %633 = vrot.lane.b32.xlu1 %v600_v49, %s1272_s6  ;;  %s309_s6 = sadd.s32 %s1064_s5, %s1631_s30 }
  0x64   : > { %s1065_s7 = sshll.u32 %s309_s6, 2 }
  0x65   : > { %s311_s10 = scalar_lea.vmem %s1615_s4, %s1065_s7 }
  0x67   : > { %636 = vrot.lane.b32.xlu0 %v607_v54, %s1274_s8  ;;  %638 = vrot.lane.b32.xlu1 %v624_v56, %s1274_s8 }
  0x6b   : > { %799 = vperm.xlu0 %1218, %v317_v58  }
  0x8d   : > { %v413_v59 = vpop.permute.xlu0 %412  ;;  %v340_v60 = vpop.permute.xlu1 %339 }
  0x91   : > { %v431_v61 = vpop.permute.xlu0 %430  ;;  %v338_v62 = vpop.permute.xlu1 %337 }
  0x92   : > { %v342_v63 = vsel %vm341_vm2, %v338_v62, %v340_v60 }
  0x93   : > { %v377_v0 = vsel %vm375_vm3, %v1368_v21, %v342_v63 }
  0x94   : > { %v380_v1 = vsel %vm378_vm4, %v377_v0, %v1358_v13 }
  0x95   : > { %v411_v2 = vpop.permute.xlu0 %410  ;;  %v429_v3 = vpop.permute.xlu1 %428  ;;  %1119 = vmatpush3.bf16.msra.mxu1 %v380_v1 }
  0x96   : > { %v414_v4 = vsel %vm341_vm2, %v411_v2, %v413_v59  ;;  %1120 = vmatprep.subr.bf16.mxu1 %v1270_v5  ;;  %v432_v13 = vsel %vm360_vm5, %v429_v3, %v431_v61 }
  0x97   : > { %v445_v7 = vsel %vm375_vm3, %v1374_v23, %v414_v4 }
  0x98   : > { %v447_v8 = vsel %vm378_vm4, %v445_v7, %v1365_v19 }
  0x99   : > { %v426_v9 = vpop.permute.xlu0 %425  ;;  %1109 = vmatpush3.bf16.msra.mxu0 %v447_v8  ;;  %v354_v10 = vpop.permute.xlu1 %353 }
  0x9a   : > { %v427_v11 = vsel %vm341_vm2, %v413_v59, %v426_v9  ;;  %1110 = vmatprep.subr.bf16.mxu0 %v1270_v5  ;;  %v355_v19 = vsel %vm341_vm2, %v340_v60, %v354_v10 }
  0x9b   : > { %v451_v12 = vsel %vm371_vm0, %v423_v6, %v427_v11  ;;  %v384_v23 = vsel %vm371_vm0, %v351_v16, %v355_v19 }
  0x9c   : > { %v453_v18 = vsel %vm375_vm3, %v451_v12, %v432_v13 }
  0x9d   : > { %v434_v14 = vpop.permute.xlu0 %433  ;;  %v357_v15 = vpop.permute.xlu1 %356 }
  0x9e   : > { %v435_v17 = vsel %vm360_vm5, %v434_v14, %v429_v3  ;;  %v316_v14 = vld [vmem:[%s1613_s2 + $0x8] sm:$0xf] }
  0x9f   : > { %v455_v20 = vsel %vm378_vm4, %v453_v18, %v435_v17 }
  0xa0   : > { %1111 = vmatpush3.bf16.msra.mxu0 %v455_v20 }
  0xa1   : > { %v359_v21 = vpop.permute.xlu0 %358  ;;  %v363_v22 = vpop.permute.xlu1 %362  ;;  %1112 = vmatprep.subr.bf16.mxu0 %v1270_v5 }
  0xa2   : > { %v361_v25 = vsel %vm360_vm5, %v357_v15, %v359_v21  ;;  %v364_v26 = vsel %vm360_vm5, %v363_v22, %v357_v15 }
  0xa3   : > { %v386_v24 = vsel %vm375_vm3, %v384_v23, %v361_v25  ;;  %v623_v23 = vcombine.high %v1447_v53, %v1447_v53 }
  0xa4   : > { %v388_v27 = vsel %vm378_vm4, %v386_v24, %v364_v26 }
  0xa5   : > { %v437_v28 = vpop.permute.xlu0 %436  ;;  %v439_v29 = vpop.permute.xlu1 %438  ;;  %1121 = vmatpush3.bf16.msra.mxu1 %v388_v27 }
  0xa6   : > { %v440_v30 = vsel %vm369_vm6, %v437_v28, %v439_v29  ;;  %1122 = vmatprep.subr.bf16.mxu1 %v1270_v5 }
  0xa7   : > { %v662_v31 = vsel %vm371_vm0, %v440_v30, 0 }
  0xa8   : > { %1113 = vmatpush3.bf16.msra.mxu0 %v662_v31 }
  0xa9   : > { %v366_v33 = vpop.permute.xlu0 %365  ;;  %v368_v34 = vpop.permute.xlu1 %367  ;;  %1128 = vmatprep.subr.bf16.mxu0 %v1270_v5 }
  0xaa   : > { %v370_v37 = vsel %vm369_vm6, %v366_v33, %v368_v34 }
  0xab   : > { %v708_v38 = vsel %vm371_vm0, %v370_v37, 0  ;;  %1115 = vmatmul.mubr.msk.bf16.vlgmr.msra.gmra.mrb[0].mxu0 %vm657_vm7, %v1504_v32 }
  0xac   : > { %1123 = vmatpush3.bf16.msra.mxu1 %v708_v38  ;;  %1134 = vmatprep.mubr.msk.bf16.mxu0 %vm1273_vm1, %v1270_v5 }
  0xad   : > { %v478_v42 = vpop.permute.xlu0 %477  ;;  %v480_v45 = vpop.permute.xlu1 %479  ;;  %1138 = vmatprep.subr.bf16.mxu1 %v1270_v5 }
  0xae   : > { %v481_v46 = vsel %vm341_vm2, %v478_v42, %v480_v45 }
  0xaf   : > { %v512_v47 = vsel %vm375_vm3, %v1394_v35, %v481_v46  ;;  %1125 = vmatmul.mubr.msk.bf16.vlgmr.msra.gmra.mrb[0].mxu1 %vm657_vm7, %v1514_v41 }
  0xb0   : > { %v514_v48 = vsel %vm378_vm4, %v512_v47, %v1413_v40  ;;  %1144 = vmatprep.mubr.msk.bf16.mxu1 %vm1273_vm1, %v1270_v5  ;;  %v490_v40 = vcombine.high %v1409_v39, %v1409_v39  ;;  %v557_v39 = vcombine.high %v1424_v44, %v1424_v44 }
  0xb1   : > { %v545_v49 = vpop.permute.xlu0 %544  ;;  %1129 = vmatpush3.bf16.msra.mxu0 %v514_v48  ;;  %v547_v50 = vpop.permute.xlu1 %546 }
  0xb2   : > { %v548_v52 = vsel %vm341_vm2, %v545_v49, %v547_v50  ;;  %1130 = vmatprep.subr.bf16.mxu0 %v1270_v5 }
  0xb3   : > { %v579_v54 = vsel %vm375_vm3, %v1403_v36, %v548_v52 }
  0xb4   : > { %v581_v35 = vsel %vm378_vm4, %v579_v54, %v1421_v43 }
  0xb5   : > { %v493_v56 = vpop.permute.xlu0 %492  ;;  %v496_v57 = vpop.permute.xlu1 %495  ;;  %1139 = vmatpush3.bf16.msra.mxu1 %v581_v35 }
  0xb6   : > { %1140 = vmatprep.subr.bf16.mxu1 %v1270_v5  ;;  %v494_v58 = vsel %vm341_vm2, %v480_v45, %v493_v56 }
  0xb7   : > { %v518_v61 = vsel %vm371_vm0, %v490_v40, %v494_v58 }
  0xb9   : > { %v498_v59 = vpop.permute.xlu0 %497  ;;  %v501_v60 = vpop.permute.xlu1 %500 }
  0xba   : > { %v499_v62 = vsel %vm360_vm5, %v496_v57, %v498_v59  ;;  %v502_v36 = vsel %vm360_vm5, %v501_v60, %v496_v57 }
  0xbb   : > { %v520_v43 = vsel %vm375_vm3, %v518_v61, %v499_v62 }
  0xbc   : > { %v522_v63 = vsel %vm378_vm4, %v520_v43, %v502_v36 }
  0xbd   : > { %v560_v0 = vpop.permute.xlu0 %559  ;;  %1131 = vmatpush3.bf16.msra.mxu0 %v522_v63  ;;  %v563_v1 = vpop.permute.xlu1 %562 }
  0xbe   : > { %1132 = vmatprep.subr.bf16.mxu0 %v1270_v5  ;;  %v561_v2 = vsel %vm341_vm2, %v547_v50, %v560_v0 }
  0xbf   : > { %v585_v6 = vsel %vm371_vm0, %v557_v39, %v561_v2 }
  0xc1   : > { %v565_v3 = vpop.permute.xlu0 %564  ;;  %v568_v4 = vpop.permute.xlu1 %567 }
  0xc2   : > { %v566_v7 = vsel %vm360_vm5, %v563_v1, %v565_v3  ;;  %v569_v8 = vsel %vm360_vm5, %v568_v4, %v563_v1 }
  0xc3   : > { %v587_v9 = vsel %vm375_vm3, %v585_v6, %v566_v7 }
  0xc4   : > { %v589_v10 = vsel %vm378_vm4, %v587_v9, %v569_v8 }
  0xc5   : > { %v504_v11 = vpop.permute.xlu0 %503  ;;  %v506_v12 = vpop.permute.xlu1 %505  ;;  %1141 = vmatpush3.bf16.msra.mxu1 %v589_v10 }
  0xc6   : > { %v507_v44 = vsel %vm369_vm6, %v504_v11, %v506_v12  ;;  %1142 = vmatprep.subr.bf16.mxu1 %v1270_v5 }
  0xc7   : > { %v754_v13 = vsel %vm371_vm0, %v507_v44, 0 }
  0xc8   : > { %1133 = vmatpush3.bf16.msra.mxu0 %v754_v13 }
  0xc9   : > { %v571_v15 = vpop.permute.xlu0 %570  ;;  %v573_v16 = vpop.permute.xlu1 %572  ;;  %1148 = vmatprep.subr.bf16.mxu0 %v1270_v5 }
  0xca   : > { %v574_v17 = vsel %vm369_vm6, %v571_v15, %v573_v16 }
  0xcb   : > { %v807_v18 = vsel %vm371_vm0, %v574_v17, 0  ;;  %1135 = vmatmul.mubr.msk.bf16.vlgmr.msra.gmra.mrb[4].mxu0 %vm657_vm7, %v316_v14 }
  0xcc   : > { %1143 = vmatpush3.bf16.msra.mxu1 %v807_v18  ;;  %1149 = vmatpush3.bf16.msra.mxu0 %v514_v48 }
  0xcd   : > { %v611_v19 = vpop.permute.xlu0 %610  ;;  %v613_v20 = vpop.permute.xlu1 %612  ;;  %1150 = vmatprep.subr.bf16.mxu0 %v1270_v5  ;;  %1158 = vmatprep.subr.bf16.mxu1 %v1270_v5 }
  0xce   : > { %v614_v21 = vsel %vm341_vm2, %v611_v19, %v613_v20  ;;  %1154 = vmatprep.mubr.msk.bf16.mxu0 %vm1273_vm1, %v1270_v5 }
  0xcf   : > { %v645_v22 = vsel %vm375_vm3, %v1442_v51, %v614_v21  ;;  %1145 = vmatmul.mubr.msk.bf16.vlgmr.msra.gmra.mrb[4].mxu1 %vm657_vm7, %v1504_v32 }
  0xd0   : > { %1151 = vmatpush3.bf16.msra.mxu0 %v522_v63  ;;  %v647_v25 = vsel %vm378_vm4, %v645_v22, %v1454_v55  ;;  %1164 = vmatprep.mubr.msk.bf16.mxu1 %vm1273_vm1, %v1270_v5 }
  0xd1   : > { %v626_v26 = vpop.permute.xlu0 %625  ;;  %v629_v24 = vpop.permute.xlu1 %628  ;;  %1159 = vmatpush3.bf16.msra.mxu1 %v647_v25  ;;  %1152 = vmatprep.subr.bf16.mxu0 %v1270_v5 }
  0xd2   : > { %v627_v51 = vsel %vm341_vm2, %v613_v20, %v626_v26  ;;  %1160 = vmatprep.subr.bf16.mxu1 %v1270_v5 }
  0xd3   : > { %v651_v53 = vsel %vm371_vm0, %v623_v23, %v627_v51 }
  0xd4   : > { %1153 = vmatpush3.bf16.msra.mxu0 %v754_v13 }
  0xd5   : > { %v631_v27 = vpop.permute.xlu0 %630  ;;  %v634_v28 = vpop.permute.xlu1 %633 }
  0xd6   : > { %v632_v29 = vsel %vm360_vm5, %v629_v24, %v631_v27  ;;  %v635_v55 = vsel %vm360_vm5, %v634_v28, %v629_v24 }
  0xd7   : > { %v653_v30 = vsel %vm375_vm3, %v651_v53, %v632_v29  ;;  %1155 = vmatmul.mubr.msk.bf16.vlgmr.msra.gmra.mrb[8].mxu0 %vm657_vm7, %v1514_v41 }
  0xd8   : > { %v655_v31 = vsel %vm378_vm4, %v653_v30, %v635_v55 }
  0xd9   : > { %1161 = vmatpush3.bf16.msra.mxu1 %v655_v31  ;;  %v637_v32 = vpop.permute.xlu0 %636  ;;  %v639_v33 = vpop.permute.xlu1 %638 }
  0xda   : > { %v640_v34 = vsel %vm369_vm6, %v637_v32, %v639_v33  ;;  %1162 = vmatprep.subr.bf16.mxu1 %v1270_v5 }
  0xdb   : > { %v890_v37 = vsel %vm371_vm0, %v640_v34, 0 }
  0xdd   : > { %1163 = vmatpush3.bf16.msra.mxu1 %v890_v37 }
  0xe0   : > { %1165 = vmatmul.mubr.msk.bf16.vlgmr.msra.gmra.mrb[8].mxu1 %vm657_vm7, %v316_v14 }
  0xea   : > { %v800_v52 = vpop.permute.xlu0 %799 }
 0x17e   : > { %v698_v38 = vpop.f32.mrb[0].mxu0 }
 0x17f   : > { %v1116_v42 = vpop.f32.mrb[1].mxu0 }
 0x180   : > { %v701_v45 = vpop.f32.mrb[2].mxu0 }
 0x181   : > { %v1117_v41 = vpop.f32.mrb[3].mxu0 }
 0x182   : > { %v744_v46 = vpop.f32.mrb[0].mxu1 }
 0x183   : > { %v745_v47 = vadd.f32 %v744_v46, %v698_v38  ;;  %v1126_v48 = vpop.f32.mrb[1].mxu1 }
 0x184   : > { %v747_v49 = vpop.f32.mrb[2].mxu1 }
 0x185   : > { %v1127_v50 = vpop.f32.mrb[3].mxu1 }
 0x19e   : > { %v790_v5 = vpop.f32.mrb[4].mxu0 }
 0x19f   : > { %v796_v54 = vadd.f32 %v790_v5, %v745_v47  ;;  %v1136_v35 = vpop.f32.mrb[5].mxu0 }
 0x1a0   : > { %v793_v56 = vpop.f32.mrb[6].mxu0 }
 0x1a1   : > { %v802_v57 = vadd.f32 %v800_v52, %v796_v54  ;;  %v1137_v40 = vpop.f32.mrb[7].mxu0 }
 0x1a2   : > { %v843_v58 = vpop.f32.mrb[4].mxu1 }
 0x1a3   : > { %v803_v59 = vmax.f32 %v802_v57, 0.0  ;;  %v1146_v60 = vpop.f32.mrb[5].mxu1 }
 0x1a4   : > { %v846_v61 = vpop.f32.mrb[6].mxu1 }
 0x1a5   : > { %v804_v62 = vpack.c.bf16 %v803_v59, %v803_v59  ;;  %v1147_v36 = vpop.f32.mrb[7].mxu1 }
 0x1a7   : > { %805 = vst [vmem:[%s311_s10] sm:$0xf] %v804_v62 }
 0x1aa   : > { %v883_v43 = vpop.f32.mrb[8].mxu0 }
 0x1ab   : > { %v884_v63 = vadd.f32 %v883_v43, %v843_v58  ;;  %v1156_v0 = vpop.f32.mrb[9].mxu0 }
 0x1ac   : > { %v886_v1 = vpop.f32.mrb[10].mxu0 }
 0x1ad   : > { %v1157_v39 = vpop.f32.mrb[11].mxu0 }
 0x1b3   : > { %v926_v2 = vpop.f32.mrb[8].mxu1 }
 0x1b4   : > { %v932_v3 = vadd.f32 %v926_v2, %v884_v63  ;;  %v1166_v4 = vpop.f32.mrb[9].mxu1 }
 0x1b5   : > { %v929_v6 = vpop.f32.mrb[10].mxu1 }
 0x1b6   : > { %v933_v7 = vadd.f32 %v932_v3, %v800_v52  ;;  %v1167_v8 = vpop.f32.mrb[11].mxu1 }
 0x1b8   : > { %v934_v9 = vmax.f32 %v933_v7, 0.0 }
 0x1ba   : > { %v935_v10 = vpack.c.bf16 %v934_v9, %v934_v9 }
 0x1bc   : > { %1075 = vst [vmem:[%s311_s10 + $0x4] sm:$0xf] %v935_v10 }
 0x1bd PF: > { %s14_s19 = sadd.s32 1, %s1267_s19   ;;  %s1616_s15 = smov %s1259_s17 }
 0x1be   : > { %p11_p9 = scmp.ge.s32.totalorder %s14_s19, 6   ;;  %s1617_s16 = smov %s1263_s18 }
 0x1bf   : > { %s1618_s17 = smov %s1621_s20  ;;  %s1619_s18 = smov %s1625_s21 }
 0x1c0   :  { %13 = sbr.rel (!%p11_p9) target bundleno = 3 (0x3), region = 73 }

// kernel: hourglass_forward.7
= control target key start
LH: loop header
LB: loop body
LE: loop exit
PB: predicated region body
PF: predicated region fallthrough
CT: control target
= control target key end

     0   :  { %s1456_s21 = smov 0   ;;  %s1458_s22 = smov 0   ;;  %s1769_s0 = inlined_call_operand.vmem [shape: bf16[2,6,8,256], index: 0, kind: input, shape index: {}, may-alias: {0,1,2}]   ;;  %s1770_s1 = inlined_call_operand.vmem [shape: bf16[2,6,8,256], index: 1, kind: input, shape index: {}, may-alias: {0,1,2}]   ;;  %s1771_s2 = inlined_call_operand.vmem [shape: bf16[2,6,8,256], index: 2, kind: input, shape index: {}, may-alias: {0,1,2}]   ;;  %s1772_s3 = inlined_call_operand.vmem [shape: bf16[3,8,72], index: 3, kind: input, shape index: {}]   ;;  %s1773_s4 = inlined_call_operand.vmem [shape: f32[8,1], index: 4, kind: input, shape index: {}]   ;;  %s1774_s5 = inlined_call_operand.vmem [shape: bf16[2,4,8,128], index: 5, kind: input, shape index: {}]   ;;  %s1775_s6 = inlined_call_operand.vmem [shape: bf16[2,4,8,128], index: 6, kind: output, shape index: {}]  }
   0x1   :  { %s1460_s23 = smov 0   ;;  %s1462_s24 = smov 0  }
   0x2   :  { %s1464_s25 = smov 0  }
   0x3 LB: > { %s25_s26 = sadd.s32 1, %s1400_s23  ;;  %s28_s27 = sadd.s32 1, %s1404_s24  ;;  %s1408_s25 = sphi %s1464_s25, %s16_s25   ;;  %s1404_s24 = sphi %s1462_s24, %s1779_s24   ;;  %s1400_s23 = sphi %s1460_s23, %s1778_s23   ;;  %s1396_s22 = sphi %s1458_s22, %s1777_s22   ;;  %s1392_s21 = sphi %s1456_s21, %s1776_s21  }
   0x4   : > { %p26_p0 = scmp.ge.s32.totalorder %s25_s26, 2  ;;  %p1142_p1 = scmp.ge.s32.totalorder %s1408_s25, 1 }
   0x5   : > { %p303_p2 = scmp.lt.s32.totalorder %s1408_s25, 5 }
   0x6   : > { %s1781_s26 = smov (%p26_p0, %s25_s26), 0  ;;  %s1783_s27 = smov (!%p26_p0, %s28_s27), %s1404_s24 }
   0x7   : > { %p304_p3 = pnand %p1142_p1, %p303_p2  ;;  %p30_p4 = scmp.ge.s32.totalorder %s1783_s27, 2 }
   0x8   : > { %s1486_s28 = sshll.u32 (!%p304_p3), %s1392_s21, 1  ;;  %p375_p5 = scmp.lt.s32.totalorder (!%p304_p3), %s1396_s22, 1  ;;  %v1410_v0 = vmov (!%p304_p3), 0.0   ;;  %vm1418_vm0 = vmmov (!%p304_p3), 0   ;;  %vm448_vm1 = vcmask (!%p304_p3), 1039360   ;;  %vm492_vm2 = vcmask (!%p304_p3), 1043456  }
   0x9   : > { %s1785_s27 = smov (%p30_p4, %s1783_s27), 0  ;;  %307 = sbr.rel (%p304_p3) target bundleno = 493 (0x1ed), region = 44 }
   0xa   : > { %p377_p6 = scmp.lt.s32.totalorder (!%p304_p3), %s1486_s28, 5  ;;  %1225 = vmatprep.subr.bf16.mxu0 (!%p304_p3), %v1410_v0  ;;  %1239 = vmatprep.subr.bf16.mxu1 (!%p304_p3), %v1410_v0  ;;  %s1411_s13 = smov (!%p304_p3), 127   ;;  %v1420_v15 = vmov (!%p304_p3), 0   ;;  %vm454_vm3 = vcmask (!%p304_p3), 1031168   ;;  %vm460_vm4 = vcmask (!%p304_p3), 965632   ;;  %v437_v24 = vld [vmem:[%s1773_s4] sm:$0xff] (!%p304_p3) }
   0xb   : > { %s1412_s14 = smov (!%p304_p3), 126   ;;  %s1413_s15 = smov (!%p304_p3), 118   ;;  %1235 = vmatprep.mubr.msk.bf16.mxu0 (!%p304_p3), %vm1418_vm0, %v1410_v0  ;;  %1249 = vmatprep.mubr.msk.bf16.mxu1 (!%p304_p3), %vm1418_vm0, %v1410_v0  ;;  %vm466_vm5 = vcmask (!%p304_p3), 957440   ;;  %vm472_vm6 = vcmask (!%p304_p3), 949248   ;;  %vm478_vm7 = vcmask (!%p304_p3), 883712   ;;  %vm484_vm8 = vcmask (!%p304_p3), 875520  }
   0xc   : > { %s1414_s16 = smov (!%p304_p3), 117   ;;  %s1415_s17 = smov (!%p304_p3), 116   ;;  %1361 = vset.pattern.permute.xlu0 (!%p304_p3), %v1420_v15  ;;  %vm490_vm9 = vcmask (!%p304_p3), 867328   ;;  %vm696_vm10 = vcmask (!%p304_p3), 588800  }
   0xd   : > { %s1532_s18 = sadd.s32 (!%p304_p3), 2, %s1486_s28  ;;  %s1416_s19 = smov (!%p304_p3), 108  }
   0xe   : > { %p389_p7 = scmp.lt.s32.totalorder (!%p304_p3), %s1532_s18, 5  ;;  %s1417_s21 = smov (!%p304_p3), 107  }
   0xf   : > { %p416_p9 = scmp.lt.s32.totalorder (!%p304_p3), %s1486_s28, 3 }
  0x10   : > { %s1787_s22 = smov (!%p375_p5, %s1396_s22), 1 }
  0x11   : > { %s378_s29 = scalar_select %p377_p6, %s1486_s28, 5 }
  0x12   : > { %s1493_s30 = smul.u32 12, %s1787_s22  ;;  %s1791_s28 = smov (!%p416_p9, %s1486_s28), 3 }
  0x13   : > { %s1144_s7 = sshll.u32 %s378_s29, 1 }
  0x14   : > { %s381_s8 = sadd.s32 %s1493_s30, %s1144_s7 }
  0x15   : > { %s1145_s9 = sshll.u32 %s381_s8, 2 }
  0x16   : > { %s383_s12 = scalar_lea.vmem %s1769_s0, %s1145_s9 }
  0x17   : > { %v1501_v1 = vld [vmem:[%s383_s12 + $0x8] sm:$0xff]  ;;  %v1503_v2 = vld [vmem:[%s383_s12] sm:$0xff]  ;;  %s390_s20 = scalar_select %p389_p7, %s1532_s18, 5 }
  0x18   : > { %v1161_v3 = vcombine.low %v1501_v1, %v1501_v1  ;;  %v1158_v4 = vcombine.low %v1503_v2, %v1503_v2  ;;  %v1162_v5 = vcombine.high %v1501_v1, %v1501_v1  ;;  %v1159_v6 = vcombine.high %v1503_v2, %v1503_v2  ;;  %s1419_s12 = smov 106  }
  0x19   : > { %s1147_s29 = sshll.u32 %s390_s20, 1  ;;  %s400_s20 = sadd.s32 1, %s1532_s18 }
  0x1a   : > { %516 = vrot.lane.b32.xlu0 %v1161_v3, %s1411_s13  ;;  %444 = vrot.lane.b32.xlu1 %v1158_v4, %s1411_s13  ;;  %s393_s7 = sadd.s32 %s1493_s30, %s1147_s29  ;;  %p403_p8 = scmp.lt.s32.totalorder %s400_s20, 5 }
  0x1b   : > { %s1148_s8 = sshll.u32 %s393_s7, 2 }
  0x1c   : > { %s395_s11 = scalar_lea.vmem %s1770_s1, %s1148_s8  ;;  %s1789_s20 = smov (!%p403_p8, %s400_s20), 5 }
  0x1d   : > { %v1556_v7 = vld [vmem:[%s395_s11] sm:$0xff]  ;;  %s1150_s29 = sshll.u32 %s1789_s20, 1  ;;  %s1153_s11 = sshll.u32 %s1787_s22, 2 }
  0x1e   : > { %518 = vrot.lane.b32.xlu0 %v1162_v5, %s1411_s13  ;;  %446 = vrot.lane.b32.xlu1 %v1159_v6, %s1411_s13  ;;  %v1163_v8 = vcombine.low %v1556_v7, %v1556_v7  ;;  %v1164_v9 = vcombine.high %v1556_v7, %v1556_v7  ;;  %s407_s18 = sadd.s32 %s1493_s30, %s1150_s29 }
  0x1f   : > { %s1151_s7 = sshll.u32 %s407_s18, 2 }
  0x20   : > { %s409_s10 = scalar_lea.vmem %s1771_s2, %s1151_s7 }
  0x21   : > { %v1583_v10 = vld [vmem:[%s409_s10] sm:$0xff] }
  0x22   : > { %521 = vrot.lane.b32.xlu0 %v1161_v3, %s1412_s14  ;;  %523 = vrot.lane.b32.xlu1 %v1162_v5, %s1412_s14  ;;  %v1165_v11 = vcombine.low %v1583_v10, %v1583_v10  ;;  %v1166_v12 = vcombine.high %v1583_v10, %v1583_v10 }
  0x26   : > { %526 = vrot.lane.b32.xlu0 %v1161_v3, %s1413_s15  ;;  %528 = vrot.lane.b32.xlu1 %v1162_v5, %s1413_s15 }
  0x2a   : > { %450 = vrot.lane.b32.xlu0 %v1158_v4, %s1412_s14  ;;  %452 = vrot.lane.b32.xlu1 %v1159_v6, %s1412_s14 }
  0x2e   : > { %456 = vrot.lane.b32.xlu0 %v1158_v4, %s1413_s15  ;;  %458 = vrot.lane.b32.xlu1 %v1159_v6, %s1413_s15 }
  0x32   : > { %531 = vrot.lane.b32.xlu0 %v1161_v3, %s1414_s16  ;;  %533 = vrot.lane.b32.xlu1 %v1162_v5, %s1414_s16 }
  0x36   : > { %536 = vrot.lane.b32.xlu0 %v1161_v3, %s1415_s17  ;;  %538 = vrot.lane.b32.xlu1 %v1162_v5, %s1415_s17 }
  0x3a   : > { %462 = vrot.lane.b32.xlu0 %v1158_v4, %s1414_s16  ;;  %464 = vrot.lane.b32.xlu1 %v1159_v6, %s1414_s16 }
  0x3e   : > { %468 = vrot.lane.b32.xlu0 %v1158_v4, %s1415_s17  ;;  %470 = vrot.lane.b32.xlu1 %v1159_v6, %s1415_s17 }
  0x42   : > { %541 = vrot.lane.b32.xlu0 %v1161_v3, %s1416_s19  ;;  %543 = vrot.lane.b32.xlu1 %v1162_v5, %s1416_s19 }
  0x46   : > { %546 = vrot.lane.b32.xlu0 %v1161_v3, %s1417_s21  ;;  %548 = vrot.lane.b32.xlu1 %v1162_v5, %s1417_s21 }
  0x4a   : > { %474 = vrot.lane.b32.xlu0 %v1158_v4, %s1416_s19  ;;  %476 = vrot.lane.b32.xlu1 %v1159_v6, %s1416_s19 }
  0x4e   : > { %480 = vrot.lane.b32.xlu0 %v1158_v4, %s1417_s21  ;;  %482 = vrot.lane.b32.xlu1 %v1159_v6, %s1417_s21 }
  0x52   : > { %551 = vrot.lane.b32.xlu0 %v1161_v3, %s1419_s12  ;;  %553 = vrot.lane.b32.xlu1 %v1162_v5, %s1419_s12 }
  0x56   : > { %486 = vrot.lane.b32.xlu0 %v1158_v4, %s1419_s12  ;;  %488 = vrot.lane.b32.xlu1 %v1159_v6, %s1419_s12  ;;  %v1662_v6 = vld [vmem:[%s1772_s3 + $0x4] sm:$0xf] }
  0x5a   : > { %578 = vrot.lane.b32.xlu0 %v1163_v8, %s1411_s13  ;;  %580 = vrot.lane.b32.xlu1 %v1164_v9, %s1411_s13 }
  0x5e   : > { %583 = vrot.lane.b32.xlu0 %v1163_v8, %s1412_s14  ;;  %585 = vrot.lane.b32.xlu1 %v1164_v9, %s1412_s14 }
  0x62   : > { %588 = vrot.lane.b32.xlu0 %v1163_v8, %s1413_s15  ;;  %590 = vrot.lane.b32.xlu1 %v1164_v9, %s1413_s15 }
  0x66   : > { %593 = vrot.lane.b32.xlu0 %v1163_v8, %s1414_s16  ;;  %595 = vrot.lane.b32.xlu1 %v1164_v9, %s1414_s16 }
  0x6a   : > { %598 = vrot.lane.b32.xlu0 %v1163_v8, %s1415_s17  ;;  %600 = vrot.lane.b32.xlu1 %v1164_v9, %s1415_s17 }
  0x6e   : > { %603 = vrot.lane.b32.xlu0 %v1163_v8, %s1416_s19  ;;  %605 = vrot.lane.b32.xlu1 %v1164_v9, %s1416_s19 }
  0x72   : > { %608 = vrot.lane.b32.xlu0 %v1163_v8, %s1417_s21  ;;  %610 = vrot.lane.b32.xlu1 %v1164_v9, %s1417_s21 }
  0x76   : > { %613 = vrot.lane.b32.xlu0 %v1163_v8, %s1419_s12  ;;  %615 = vrot.lane.b32.xlu1 %v1164_v9, %s1419_s12 }
  0x7a   : > { %640 = vrot.lane.b32.xlu0 %v1165_v11, %s1411_s13  ;;  %642 = vrot.lane.b32.xlu1 %v1166_v12, %s1411_s13 }
  0x7e   : > { %645 = vrot.lane.b32.xlu0 %v1165_v11, %s1412_s14  ;;  %647 = vrot.lane.b32.xlu1 %v1166_v12, %s1412_s14 }
  0x82   : > { %650 = vrot.lane.b32.xlu0 %v1165_v11, %s1413_s15  ;;  %652 = vrot.lane.b32.xlu1 %v1166_v12, %s1413_s15 }
  0x86   : > { %655 = vrot.lane.b32.xlu0 %v1165_v11, %s1414_s16  ;;  %657 = vrot.lane.b32.xlu1 %v1166_v12, %s1414_s16 }
  0x8a   : > { %660 = vrot.lane.b32.xlu0 %v1165_v11, %s1415_s17  ;;  %662 = vrot.lane.b32.xlu1 %v1166_v12, %s1415_s17 }
  0x8c   : > { %v517_v13 = vpop.permute.xlu0 %516  ;;  %v445_v14 = vpop.permute.xlu1 %444 }
  0x8e   : > { %665 = vrot.lane.b32.xlu0 %v1165_v11, %s1416_s19  ;;  %667 = vrot.lane.b32.xlu1 %v1166_v12, %s1416_s19 }
  0x90   : > { %v519_v16 = vpop.permute.xlu0 %518  ;;  %v447_v17 = vpop.permute.xlu1 %446 }
  0x91   : > { %v520_v18 = vsel %vm448_vm1, %v517_v13, %v519_v16  ;;  %v449_v19 = vsel %vm448_vm1, %v445_v14, %v447_v17  ;;  %v1672_v13 = vld [vmem:[%s1772_s3] sm:$0xf] }
  0x92   : > { %670 = vrot.lane.b32.xlu0 %v1165_v11, %s1417_s21  ;;  %672 = vrot.lane.b32.xlu1 %v1166_v12, %s1417_s21  ;;  %v1609_v20 = vsel %vm492_vm2, %v1501_v1, %v520_v18  ;;  %v495_v21 = vsel %vm492_vm2, %v1503_v2, %v449_v19 }
  0x93   : > { %1226 = vmatpush3.bf16.msra.mxu0 %v1609_v20  ;;  %1240 = vmatpush3.bf16.msra.mxu1 %v495_v21 }
  0x94   : > { %v522_v22 = vpop.permute.xlu0 %521  ;;  %v524_v23 = vpop.permute.xlu1 %523  ;;  %1227 = vmatprep.subr.bf16.mxu0 %v1410_v0  ;;  %1241 = vmatprep.subr.bf16.mxu1 %v1410_v0 }
  0x95   : > { %v525_v27 = vsel %vm454_vm3, %v522_v22, %v524_v23 }
  0x96   : > { %675 = vrot.lane.b32.xlu0 %v1165_v11, %s1419_s12  ;;  %677 = vrot.lane.b32.xlu1 %v1166_v12, %s1419_s12  ;;  %s419_s12 = sadd.s32 %s1153_s11, %s1791_s28 }
  0x97   : > { %s1154_s20 = sshll.u32 %s419_s12, 2 }
  0x98   : > { %v527_v25 = vpop.permute.xlu0 %526  ;;  %v529_v26 = vpop.permute.xlu1 %528  ;;  %s421_s7 = scalar_lea.vmem %s1774_s5, %s1154_s20  ;;  %s431_s8 = scalar_lea.vmem %s1775_s6, %s1154_s20 }
  0x99   : > { %v530_v28 = vsel %vm460_vm4, %v527_v25, %v529_v26 }
  0x9a   : > { %v1624_v29 = vsel %vm492_vm2, %v525_v27, %v530_v28  ;;  %838 = vperm.xlu0 %1361, %v437_v24  }
  0x9b   : > { %1228 = vmatpush3.bf16.msra.mxu0 %v1624_v29 }
  0x9c   : > { %v451_v30 = vpop.permute.xlu0 %450  ;;  %v453_v31 = vpop.permute.xlu1 %452  ;;  %1229 = vmatprep.subr.bf16.mxu0 %v1410_v0 }
  0x9d   : > { %v455_v34 = vsel %vm454_vm3, %v451_v30, %v453_v31 }
  0xa0   : > { %v457_v32 = vpop.permute.xlu0 %456  ;;  %v459_v33 = vpop.permute.xlu1 %458 }
  0xa1   : > { %v461_v35 = vsel %vm460_vm4, %v457_v32, %v459_v33 }
  0xa2   : > { %v499_v36 = vsel %vm492_vm2, %v455_v34, %v461_v35 }
  0xa3   : > { %1242 = vmatpush3.bf16.msra.mxu1 %v499_v36 }
  0xa4   : > { %v532_v37 = vpop.permute.xlu0 %531  ;;  %v534_v38 = vpop.permute.xlu1 %533  ;;  %1243 = vmatprep.subr.bf16.mxu1 %v1410_v0 }
  0xa5   : > { %v535_v41 = vsel %vm466_vm5, %v532_v37, %v534_v38 }
  0xa8   : > { %v537_v39 = vpop.permute.xlu0 %536  ;;  %v539_v40 = vpop.permute.xlu1 %538 }
  0xa9   : > { %v540_v42 = vsel %vm472_vm6, %v537_v39, %v539_v40 }
  0xaa   : > { %v1635_v43 = vsel %vm492_vm2, %v535_v41, %v540_v42 }
  0xab   : > { %1230 = vmatpush3.bf16.msra.mxu0 %v1635_v43 }
  0xac   : > { %v463_v44 = vpop.permute.xlu0 %462  ;;  %v465_v45 = vpop.permute.xlu1 %464  ;;  %1231 = vmatprep.subr.bf16.mxu0 %v1410_v0 }
  0xad   : > { %v467_v48 = vsel %vm466_vm5, %v463_v44, %v465_v45  ;;  %v436_v45 = vld [vmem:[%s1772_s3 + $0x8] sm:$0xf] }
  0xb0   : > { %v469_v46 = vpop.permute.xlu0 %468  ;;  %v471_v47 = vpop.permute.xlu1 %470 }
  0xb1   : > { %v473_v49 = vsel %vm472_vm6, %v469_v46, %v471_v47 }
  0xb2   : > { %v503_v50 = vsel %vm492_vm2, %v467_v48, %v473_v49 }
  0xb3   : > { %1244 = vmatpush3.bf16.msra.mxu1 %v503_v50 }
  0xb4   : > { %v542_v51 = vpop.permute.xlu0 %541  ;;  %v544_v52 = vpop.permute.xlu1 %543  ;;  %1245 = vmatprep.subr.bf16.mxu1 %v1410_v0 }
  0xb5   : > { %v545_v55 = vsel %vm478_vm7, %v542_v51, %v544_v52 }
  0xb8   : > { %v547_v53 = vpop.permute.xlu0 %546  ;;  %v549_v54 = vpop.permute.xlu1 %548 }
  0xb9   : > { %v550_v56 = vsel %vm484_vm8, %v547_v53, %v549_v54 }
  0xba   : > { %v1646_v57 = vsel %vm492_vm2, %v545_v55, %v550_v56 }
  0xbb   : > { %1232 = vmatpush3.bf16.msra.mxu0 %v1646_v57 }
  0xbc   : > { %v475_v58 = vpop.permute.xlu0 %474  ;;  %v477_v59 = vpop.permute.xlu1 %476  ;;  %1233 = vmatprep.subr.bf16.mxu0 %v1410_v0 }
  0xbd   : > { %v479_v62 = vsel %vm478_vm7, %v475_v58, %v477_v59 }
  0xc0   : > { %v481_v60 = vpop.permute.xlu0 %480  ;;  %v483_v61 = vpop.permute.xlu1 %482 }
  0xc1   : > { %v485_v63 = vsel %vm484_vm8, %v481_v60, %v483_v61 }
  0xc2   : > { %v507_v1 = vsel %vm492_vm2, %v479_v62, %v485_v63 }
  0xc3   : > { %1246 = vmatpush3.bf16.msra.mxu1 %v507_v1 }
  0xc4   : > { %v552_v2 = vpop.permute.xlu0 %551  ;;  %v554_v3 = vpop.permute.xlu1 %553  ;;  %1247 = vmatprep.subr.bf16.mxu1 %v1410_v0 }
  0xc5   : > { %v555_v4 = vsel %vm490_vm9, %v552_v2, %v554_v3 }
  0xc6   : > { %v1656_v5 = vsel %vm492_vm2, %v555_v4, 0 }
  0xc7   : > { %1234 = vmatpush3.bf16.msra.mxu0 %v1656_v5 }
  0xc8   : > { %v487_v8 = vpop.permute.xlu0 %486  ;;  %v489_v9 = vpop.permute.xlu1 %488  ;;  %1253 = vmatprep.subr.bf16.mxu0 %v1410_v0 }
  0xc9   : > { %v491_v11 = vsel %vm490_vm9, %v487_v8, %v489_v9 }
  0xca   : > { %v747_v12 = vsel %vm492_vm2, %v491_v11, 0  ;;  %1236 = vmatmul.mubr.msk.bf16.vlgmr.msra.gmra.mrb[0].mxu0 %vm696_vm10, %v1662_v6 }
  0xcb   : > { %1248 = vmatpush3.bf16.msra.mxu1 %v747_v12  ;;  %1263 = vmatprep.mubr.msk.bf16.mxu0 %vm1418_vm0, %v1410_v0 }
  0xcc   : > { %v579_v14 = vpop.permute.xlu0 %578  ;;  %v581_v15 = vpop.permute.xlu1 %580  ;;  %1267 = vmatprep.subr.bf16.mxu1 %v1410_v0 }
  0xcd   : > { %v582_v16 = vsel %vm448_vm1, %v579_v14, %v581_v15 }
  0xce   : > { %1250 = vmatmul.mubr.msk.bf16.vlgmr.msra.gmra.mrb[0].mxu1 %vm696_vm10, %v1672_v13  ;;  %v620_v17 = vsel %vm492_vm2, %v1556_v7, %v582_v16 }
  0xcf   : > { %1254 = vmatpush3.bf16.msra.mxu0 %v620_v17  ;;  %1268 = vmatpush3.bf16.msra.mxu1 %v620_v17 }
  0xd0   : > { %v584_v18 = vpop.permute.xlu0 %583  ;;  %v586_v19 = vpop.permute.xlu1 %585  ;;  %1255 = vmatprep.subr.bf16.mxu0 %v1410_v0  ;;  %1269 = vmatprep.subr.bf16.mxu1 %v1410_v0 }
  0xd1   : > { %1277 = vmatprep.mubr.msk.bf16.mxu1 %vm1418_vm0, %v1410_v0  ;;  %v587_v23 = vsel %vm454_vm3, %v584_v18, %v586_v19 }
  0xd4   : > { %v589_v21 = vpop.permute.xlu0 %588  ;;  %v591_v22 = vpop.permute.xlu1 %590 }
  0xd5   : > { %v592_v24 = vsel %vm460_vm4, %v589_v21, %v591_v22 }
  0xd6   : > { %v624_v25 = vsel %vm492_vm2, %v587_v23, %v592_v24 }
  0xd7   : > { %1256 = vmatpush3.bf16.msra.mxu0 %v624_v25  ;;  %1270 = vmatpush3.bf16.msra.mxu1 %v624_v25 }
  0xd8   : > { %v594_v7 = vpop.permute.xlu0 %593  ;;  %v596_v26 = vpop.permute.xlu1 %595  ;;  %1257 = vmatprep.subr.bf16.mxu0 %v1410_v0  ;;  %1271 = vmatprep.subr.bf16.mxu1 %v1410_v0 }
  0xd9   : > { %v597_v30 = vsel %vm466_vm5, %v594_v7, %v596_v26 }
  0xdc   : > { %v599_v27 = vpop.permute.xlu0 %598  ;;  %v601_v28 = vpop.permute.xlu1 %600 }
  0xdd   : > { %v602_v31 = vsel %vm472_vm6, %v599_v27, %v601_v28 }
  0xde   : > { %v628_v32 = vsel %vm492_vm2, %v597_v30, %v602_v31 }
  0xdf   : > { %1258 = vmatpush3.bf16.msra.mxu0 %v628_v32  ;;  %1272 = vmatpush3.bf16.msra.mxu1 %v628_v32 }
  0xe0   : > { %v604_v33 = vpop.permute.xlu0 %603  ;;  %v606_v34 = vpop.permute.xlu1 %605  ;;  %1259 = vmatprep.subr.bf16.mxu0 %v1410_v0  ;;  %1273 = vmatprep.subr.bf16.mxu1 %v1410_v0 }
  0xe1   : > { %v607_v37 = vsel %vm478_vm7, %v604_v33, %v606_v34 }
  0xe4   : > { %v609_v35 = vpop.permute.xlu0 %608  ;;  %v611_v36 = vpop.permute.xlu1 %610 }
  0xe5   : > { %v612_v38 = vsel %vm484_vm8, %v609_v35, %v611_v36 }
  0xe6   : > { %v632_v39 = vsel %vm492_vm2, %v607_v37, %v612_v38 }
  0xe7   : > { %1260 = vmatpush3.bf16.msra.mxu0 %v632_v39  ;;  %1274 = vmatpush3.bf16.msra.mxu1 %v632_v39 }
  0xe8   : > { %v614_v40 = vpop.permute.xlu0 %613  ;;  %v616_v41 = vpop.permute.xlu1 %615  ;;  %1261 = vmatprep.subr.bf16.mxu0 %v1410_v0  ;;  %1275 = vmatprep.subr.bf16.mxu1 %v1410_v0 }
  0xe9   : > { %v617_v42 = vsel %vm490_vm9, %v614_v40, %v616_v41 }
  0xea   : > { %v793_v44 = vsel %vm492_vm2, %v617_v42, 0 }
  0xeb   : > { %1262 = vmatpush3.bf16.msra.mxu0 %v793_v44  ;;  %1276 = vmatpush3.bf16.msra.mxu1 %v793_v44 }
  0xec   : > { %v641_v46 = vpop.permute.xlu0 %640  ;;  %v643_v47 = vpop.permute.xlu1 %642  ;;  %1281 = vmatprep.subr.bf16.mxu0 %v1410_v0  ;;  %1295 = vmatprep.subr.bf16.mxu1 %v1410_v0 }
  0xed   : > { %v644_v48 = vsel %vm448_vm1, %v641_v46, %v643_v47 }
  0xee   : > { %1264 = vmatmul.mubr.msk.bf16.vlgmr.msra.gmra.mrb[4].mxu0 %vm696_vm10, %v436_v45  ;;  %1278 = vmatmul.mubr.msk.bf16.vlgmr.msra.gmra.mrb[4].mxu1 %vm696_vm10, %v1662_v6  ;;  %v682_v49 = vsel %vm492_vm2, %v1583_v10, %v644_v48 }
  0xef   : > { %1282 = vmatpush3.bf16.msra.mxu0 %v1609_v20  ;;  %1296 = vmatpush3.bf16.msra.mxu1 %v682_v49 }
  0xf0   : > { %v646_v50 = vpop.permute.xlu0 %645  ;;  %v648_v51 = vpop.permute.xlu1 %647  ;;  %1283 = vmatprep.subr.bf16.mxu0 %v1410_v0  ;;  %1297 = vmatprep.subr.bf16.mxu1 %v1410_v0 }
  0xf1   : > { %1291 = vmatprep.mubr.msk.bf16.mxu0 %vm1418_vm0, %v1410_v0  ;;  %1305 = vmatprep.mubr.msk.bf16.mxu1 %vm1418_vm0, %v1410_v0  ;;  %v649_v10 = vsel %vm454_vm3, %v646_v50, %v648_v51 }
  0xf3   : > { %1284 = vmatpush3.bf16.msra.mxu0 %v1624_v29 }
  0xf4   : > { %v651_v52 = vpop.permute.xlu0 %650  ;;  %v653_v53 = vpop.permute.xlu1 %652  ;;  %1285 = vmatprep.subr.bf16.mxu0 %v1410_v0 }
  0xf5   : > { %v654_v20 = vsel %vm460_vm4, %v651_v52, %v653_v53 }
  0xf6   : > { %v686_v54 = vsel %vm492_vm2, %v649_v10, %v654_v20 }
  0xf7   : > { %1286 = vmatpush3.bf16.msra.mxu0 %v1635_v43  ;;  %1298 = vmatpush3.bf16.msra.mxu1 %v686_v54 }
  0xf8   : > { %v656_v55 = vpop.permute.xlu0 %655  ;;  %v658_v56 = vpop.permute.xlu1 %657  ;;  %1287 = vmatprep.subr.bf16.mxu0 %v1410_v0  ;;  %1299 = vmatprep.subr.bf16.mxu1 %v1410_v0 }
  0xf9   : > { %v659_v59 = vsel %vm466_vm5, %v656_v55, %v658_v56 }
  0xfb   : > { %1288 = vmatpush3.bf16.msra.mxu0 %v1646_v57 }
  0xfc   : > { %v661_v29 = vpop.permute.xlu0 %660  ;;  %v663_v58 = vpop.permute.xlu1 %662  ;;  %1289 = vmatprep.subr.bf16.mxu0 %v1410_v0 }
  0xfd   : > { %v664_v60 = vsel %vm472_vm6, %v661_v29, %v663_v58 }
  0xfe   : > { %v690_v61 = vsel %vm492_vm2, %v659_v59, %v664_v60 }
  0xff   : > { %1290 = vmatpush3.bf16.msra.mxu0 %v1656_v5  ;;  %1300 = vmatpush3.bf16.msra.mxu1 %v690_v61 }
 0x100   : > { %v666_v43 = vpop.permute.xlu0 %665  ;;  %v668_v62 = vpop.permute.xlu1 %667  ;;  %1301 = vmatprep.subr.bf16.mxu1 %v1410_v0 }
 0x101   : > { %v669_v1 = vsel %vm478_vm7, %v666_v43, %v668_v62 }
 0x102   : > { %1292 = vmatmul.mubr.msk.bf16.vlgmr.msra.gmra.mrb[8].mxu0 %vm696_vm10, %v1672_v13 }
 0x104   : > { %v671_v57 = vpop.permute.xlu0 %670  ;;  %v673_v63 = vpop.permute.xlu1 %672 }
 0x105   : > { %v674_v2 = vsel %vm484_vm8, %v671_v57, %v673_v63 }
 0x106   : > { %v694_v3 = vsel %vm492_vm2, %v669_v1, %v674_v2 }
 0x107   : > { %1302 = vmatpush3.bf16.msra.mxu1 %v694_v3 }
 0x108   : > { %v676_v4 = vpop.permute.xlu0 %675  ;;  %v678_v5 = vpop.permute.xlu1 %677  ;;  %1303 = vmatprep.subr.bf16.mxu1 %v1410_v0  ;;  %v842_v0 = vld [vmem:[%s421_s7] sm:$0xff]  }
 0x109   : > { %v679_v6 = vsel %vm490_vm9, %v676_v4, %v678_v5  ;;  %v843_v24 = vunpack.c.l.bf16 %v842_v0  ;;  %v975_v42 = vunpack.c.h.bf16 %v842_v0 }
 0x10a   : > { %v929_v8 = vsel %vm492_vm2, %v679_v6, 0 }
 0x10b   : > { %1304 = vmatpush3.bf16.msra.mxu1 %v929_v8 }
 0x10e   : > { %1306 = vmatmul.mubr.msk.bf16.vlgmr.msra.gmra.mrb[8].mxu1 %vm696_vm10, %v436_v45 }
 0x119   : > { %v839_v19 = vpop.permute.xlu0 %838 }
 0x19d   : > { %v737_v9 = vpop.f32.mrb[0].mxu0 }
 0x19e   : > { %v1237_v11 = vpop.f32.mrb[1].mxu0 }
 0x19f   : > { %v740_v12 = vpop.f32.mrb[2].mxu0 }
 0x1a0   : > { %v1238_v13 = vpop.f32.mrb[3].mxu0 }
 0x1a1   : > { %v783_v14 = vpop.f32.mrb[0].mxu1 }
 0x1a2   : > { %v784_v15 = vadd.f32 %v783_v14, %v737_v9  ;;  %v1251_v16 = vpop.f32.mrb[1].mxu1 }
 0x1a3   : > { %v786_v17 = vpop.f32.mrb[2].mxu1 }
 0x1a4   : > { %v1252_v18 = vpop.f32.mrb[3].mxu1 }
 0x1c1   : > { %v829_v21 = vpop.f32.mrb[4].mxu0  ;;  %v882_v22 = vpop.f32.mrb[4].mxu1 }
 0x1c2   : > { %v835_v23 = vadd.f32 %v829_v21, %v784_v15  ;;  %v1265_v25 = vpop.f32.mrb[5].mxu0  ;;  %v1279_v7 = vpop.f32.mrb[5].mxu1 }
 0x1c3   : > { %v832_v26 = vpop.f32.mrb[6].mxu0  ;;  %v885_v27 = vpop.f32.mrb[6].mxu1 }
 0x1c4   : > { %v841_v28 = vadd.f32 %v839_v19, %v835_v23  ;;  %v1266_v30 = vpop.f32.mrb[7].mxu0  ;;  %v1280_v31 = vpop.f32.mrb[7].mxu1 }
 0x1c6   : > { %v844_v32 = vadd.f32 %v843_v24, %v841_v28 }
 0x1c8   : > { %v845_v33 = vmax.f32 %v844_v32, 0.0 }
 0x1ca   : > { %v846_v34 = vpack.c.bf16 %v845_v33, %v845_v33 }
 0x1cc   : > { %847 = vst [vmem:[%s431_s8] sm:$0xf] %v846_v34 }
 0x1d5   : > { %v922_v35 = vpop.f32.mrb[8].mxu0 }
 0x1d6   : > { %v923_v36 = vadd.f32 %v922_v35, %v882_v22  ;;  %v1293_v37 = vpop.f32.mrb[9].mxu0 }
 0x1d7   : > { %v925_v38 = vpop.f32.mrb[10].mxu0 }
 0x1d8   : > { %v1294_v39 = vpop.f32.mrb[11].mxu0 }
 0x1e1   : > { %v965_v40 = vpop.f32.mrb[8].mxu1 }
 0x1e2   : > { %v971_v41 = vadd.f32 %v965_v40, %v923_v36  ;;  %v1307_v44 = vpop.f32.mrb[9].mxu1 }
 0x1e3   : > { %v968_v45 = vpop.f32.mrb[10].mxu1 }
 0x1e4   : > { %v972_v46 = vadd.f32 %v971_v41, %v839_v19  ;;  %v1308_v47 = vpop.f32.mrb[11].mxu1 }
 0x1e6   : > { %v976_v48 = vadd.f32 %v975_v42, %v972_v46 }
 0x1e8   : > { %v977_v49 = vmax.f32 %v976_v48, 0.0 }
 0x1ea   : > { %v978_v50 = vpack.c.bf16 %v977_v49, %v977_v49 }
 0x1ec   : > { %1174 = vst [vmem:[%s431_s8 + $0x4] sm:$0xf] %v978_v50 }
 0x1ed PF: > { %s16_s25 = sadd.s32 1, %s1408_s25   ;;  %s1776_s21 = smov %s1400_s23 }
 0x1ee   : > { %p13_p10 = scmp.ge.s32.totalorder %s16_s25, 6   ;;  %s1777_s22 = smov %s1404_s24 }
 0x1ef   : > { %s1778_s23 = smov %s1781_s26  ;;  %s1779_s24 = smov %s1785_s27 }
 0x1f0   :  { %15 = sbr.rel (!%p13_p10) target bundleno = 3 (0x3), region = 86 }

// kernel: hourglass_forward.8
= control target key start
LH: loop header
LB: loop body
LE: loop exit
PB: predicated region body
PF: predicated region fallthrough
CT: control target
= control target key end

     0   :  { %s939_s15 = smov 0   ;;  %s941_s16 = smov 0   ;;  %s1126_s0 = inlined_call_operand.vmem [shape: bf16[2,6,8,640], index: 0, kind: input, shape index: {}, may-alias: {0,1}]   ;;  %s1127_s1 = inlined_call_operand.vmem [shape: bf16[2,6,8,640], index: 1, kind: input, shape index: {}, may-alias: {0,1}]   ;;  %s1128_s2 = inlined_call_operand.vmem [shape: bf16[3,8,72], index: 2, kind: input, shape index: {}]   ;;  %s1129_s3 = inlined_call_operand.vmem [shape: f32[8,1], index: 3, kind: input, shape index: {}]   ;;  %s1130_s4 = inlined_call_operand.vmem [shape: bf16[2,2,8,128], index: 4, kind: output, shape index: {}]  }
   0x1   :  { %s943_s17 = smov 0   ;;  %s945_s18 = smov 0  }
   0x2   :  { %s947_s19 = smov 0  }
   0x3 LB: > { %s23_s20 = sadd.s32 1, %s898_s17  ;;  %s26_s21 = sadd.s32 1, %s902_s18  ;;  %s906_s19 = sphi %s947_s19, %s14_s19   ;;  %s902_s18 = sphi %s945_s18, %s1134_s18   ;;  %s898_s17 = sphi %s943_s17, %s1133_s17   ;;  %s894_s16 = sphi %s941_s16, %s1132_s16   ;;  %s890_s15 = sphi %s939_s15, %s1131_s15  }
   0x4   : > { %p24_p0 = scmp.ge.s32.totalorder %s23_s20, 2  ;;  %p713_p1 = scmp.ge.s32.totalorder %s906_s19, 1 }
   0x5   : > { %p208_p2 = scmp.lt.s32.totalorder %s906_s19, 5 }
   0x6   : > { %s1136_s20 = smov (%p24_p0, %s23_s20), 0  ;;  %s1138_s21 = smov (!%p24_p0, %s26_s21), %s902_s18 }
   0x7   : > { %p209_p3 = pnand %p713_p1, %p208_p2  ;;  %p28_p4 = scmp.ge.s32.totalorder %s1138_s21, 2 }
   0x8   : > { %s714_s22 = sshll.u32 (!%p209_p3), %s890_s15, 1  ;;  %p254_p5 = scmp.lt.s32.totalorder (!%p209_p3), %s894_s16, 1  ;;  %v908_v0 = vmov (!%p209_p3), 0.0   ;;  %vm328_vm0 = vcmask (!%p209_p3), 1043456   ;;  %vm911_vm1 = vmmov (!%p209_p3), 0   ;;  %v913_v22 = vmov (!%p209_p3), 0  }
   0x9   : > { %s1140_s21 = smov (%p28_p4, %s1138_s21), 0  ;;  %212 = sbr.rel (%p209_p3) target bundleno = 420 (0x1a4), region = 36 }
   0xa   : > { %p256_p6 = scmp.lt.s32.totalorder (!%p209_p3), %s714_s22, 5  ;;  %763 = vmatprep.subr.bf16.mxu0 (!%p209_p3), %v908_v0  ;;  %777 = vmatprep.subr.bf16.mxu1 (!%p209_p3), %v908_v0  ;;  %s744_s26 = sadd.s32 (!%p209_p3), 2, %s714_s22  ;;  %v289_v23 = vld [vmem:[%s1129_s3] sm:$0xff] (!%p209_p3)  ;;  %vm301_vm2 = vcmask (!%p209_p3), 1039360   ;;  %vm317_vm3 = vcmask (!%p209_p3), 1006592   ;;  %vm326_vm4 = vcmask (!%p209_p3), 998400  }
   0xb   : > { %p268_p7 = scmp.lt.s32.totalorder (!%p209_p3), %s744_s26, 5  ;;  %s909_s7 = smov (!%p209_p3), 127   ;;  %773 = vmatprep.mubr.msk.bf16.mxu0 (!%p209_p3), %vm911_vm1, %v908_v0  ;;  %787 = vmatprep.mubr.msk.bf16.mxu1 (!%p209_p3), %vm911_vm1, %v908_v0  ;;  %v287_v43 = vld [vmem:[%s1128_s2 + $0x4] sm:$0xf] (!%p209_p3)  ;;  %vm448_vm5 = vcmask (!%p209_p3), 588800  }
   0xc   : > { %s910_s13 = smov (!%p209_p3), 123   ;;  %s912_s14 = smov (!%p209_p3), 122   ;;  %854 = vset.pattern.permute.xlu1 (!%p209_p3), %v913_v22  ;;  %855 = vset.pattern.permute.xlu0 (!%p209_p3), %v913_v22 }
   0xd   : > { %p279_p8 = scmp.lt.s32.totalorder (!%p209_p3), %s890_s15, 1 }
  0x10   : > { %s1142_s16 = smov (!%p254_p5, %s894_s16), 1  ;;  %s1144_s26 = smov (!%p268_p7, %s744_s26), 5 }
  0x11   : > { %s257_s23 = scalar_select %p256_p6, %s714_s22, 5 }
  0x12   : > { %s806_s24 = smul.u32 30, %s1142_s16  ;;  %s1146_s15 = smov (!%p279_p8, %s890_s15), 1 }
  0x13   : > { %s805_s25 = smul.u32 5, %s257_s23  ;;  %s718_s30 = sshll.u32 %s1142_s16, 1 }
  0x14   : > { %s807_s6 = smul.u32 5, %s1144_s26 }
  0x15   : > { %s260_s27 = sadd.s32 %s806_s24, %s805_s25 }
  0x16   : > { %s715_s28 = sshll.u32 %s260_s27, 2  ;;  %s272_s8 = sadd.s32 %s807_s6, %s806_s24 }
  0x17   : > { %s980_s5 = scalar_lea.vmem %s1126_s0, %s715_s28  ;;  %s717_s9 = sshll.u32 %s272_s8, 2 }
  0x18   : > { %v725_v1 = vld [vmem:[%s980_s5 + $0x1c] sm:$0xff]  ;;  %v724_v2 = vld [vmem:[%s980_s5 + $0x14] sm:$0xff]  ;;  %s274_s12 = scalar_lea.vmem %s1127_s1, %s717_s9  ;;  %v291_v16 = vld [vmem:[%s980_s5 + $0x8] sm:$0xff] }
  0x19   : > { %v984_v3 = vcombine.low %v725_v1, %v725_v1  ;;  %v727_v4 = vcombine.low %v724_v2, %v724_v2  ;;  %v726_v5 = vcombine.high %v724_v2, %v724_v2  ;;  %v989_v6 = vcombine.high %v725_v1, %v725_v1  ;;  %v290_v8 = vld [vmem:[%s980_s5] sm:$0xff]  ;;  %v398_v18 = vld [vmem:[%s274_s12 + $0x8] sm:$0xff]  ;;  %s282_s5 = sadd.s32 %s718_s30, %s1146_s15 }
  0x1a   : > { %v720_v9 = vcombine.high %v290_v8, %v290_v8  ;;  %v397_v11 = vld [vmem:[%s274_s12] sm:$0xff]  ;;  %v721_v14 = vcombine.low %v290_v8, %v290_v8  ;;  %v722_v17 = vcombine.low %v291_v16, %v291_v16  ;;  %v1021_v19 = vcombine.low %v398_v18, %v398_v18  ;;  %s719_s6 = sshll.u32 %s282_s5, 2 }
  0x1b   : > { %363 = vrot.lane.b32.xlu1 %v984_v3, %s909_s7  ;;  %353 = vrot.lane.b32.xlu0 %v727_v4, %s909_s7  ;;  %v383_v7 = vsel %vm328_vm0, %v724_v2, %v726_v5  ;;  %v730_v12 = vcombine.high %v397_v11, %v397_v11  ;;  %v731_v15 = vcombine.low %v397_v11, %v397_v11  ;;  %s284_s9 = scalar_lea.vmem %s1130_s4, %s719_s6 }
  0x1c   : > { %764 = vmatpush3.bf16.msra.mxu0 %v383_v7  ;;  %v331_v10 = vsel %vm328_vm0, %v290_v8, %v720_v9  ;;  %v1023_v20 = vcombine.high %v291_v16, %v291_v16  ;;  %v1029_v21 = vcombine.high %v398_v18, %v398_v18 }
  0x1d   : > { %765 = vmatprep.subr.bf16.mxu0 %v908_v0  ;;  %778 = vmatpush3.bf16.msra.mxu1 %v331_v10  ;;  %v1005_v13 = vsel %vm328_vm0, %v397_v11, %v730_v12 }
  0x1e   : > { %779 = vmatprep.subr.bf16.mxu1 %v908_v0 }
  0x1f   : > { %365 = vrot.lane.b32.xlu1 %v989_v6, %s909_s7  ;;  %355 = vrot.lane.b32.xlu0 %v726_v5, %s909_s7 }
  0x23   : > { %370 = vrot.lane.b32.xlu1 %v726_v5, %s910_s13  ;;  %368 = vrot.lane.b32.xlu0 %v727_v4, %s910_s13 }
  0x27   : > { %376 = vrot.lane.b32.xlu1 %v727_v4, %s912_s14  ;;  %373 = vrot.lane.b32.xlu0 %v984_v3, %s910_s13 }
  0x2b   : > { %378 = vrot.lane.b32.xlu0 %v726_v5, %s912_s14  ;;  %297 = vrot.lane.b32.xlu1 %v721_v14, %s909_s7 }
  0x2f   : > { %404 = vrot.lane.b32.xlu1 %v731_v15, %s909_s7  ;;  %299 = vrot.lane.b32.xlu0 %v720_v9, %s909_s7 }
  0x33   : > { %308 = vrot.lane.b32.xlu1 %v722_v17, %s909_s7  ;;  %406 = vrot.lane.b32.xlu0 %v730_v12, %s909_s7 }
  0x37   : > { %414 = vrot.lane.b32.xlu1 %v1021_v19, %s909_s7  ;;  %310 = vrot.lane.b32.xlu0 %v1023_v20, %s909_s7 }
  0x3b   : > { %313 = vrot.lane.b32.xlu1 %v721_v14, %s910_s13  ;;  %416 = vrot.lane.b32.xlu0 %v1029_v21, %s909_s7 }
  0x3f   : > { %319 = vrot.lane.b32.xlu1 %v722_v17, %s910_s13  ;;  %315 = vrot.lane.b32.xlu0 %v720_v9, %s910_s13 }
  0x43   : > { %421 = vrot.lane.b32.xlu1 %v730_v12, %s910_s13  ;;  %419 = vrot.lane.b32.xlu0 %v731_v15, %s910_s13 }
  0x47   : > { %424 = vrot.lane.b32.xlu0 %v1021_v19, %s910_s13  ;;  %322 = vrot.lane.b32.xlu1 %v721_v14, %s912_s14 }
  0x4b   : > { %324 = vrot.lane.b32.xlu0 %v720_v9, %s912_s14  ;;  %427 = vrot.lane.b32.xlu1 %v731_v15, %s912_s14 }
  0x4f   : > { %429 = vrot.lane.b32.xlu0 %v730_v12, %s912_s14  ;;  %590 = vperm.xlu1 %854, %v289_v23  }
  0x8d   : > { %v364_v24 = vpop.permute.xlu1 %363  ;;  %v354_v25 = vpop.permute.xlu0 %353 }
  0x91   : > { %v366_v26 = vpop.permute.xlu1 %365  ;;  %v356_v27 = vpop.permute.xlu0 %355 }
  0x92   : > { %v357_v28 = vsel %vm301_vm2, %v354_v25, %v356_v27  ;;  %v367_v30 = vsel %vm301_vm2, %v364_v24, %v366_v26 }
  0x93   : > { %v387_v29 = vsel %vm328_vm0, %v357_v28, %v984_v3  ;;  %v391_v33 = vsel %vm328_vm0, %v989_v6, %v367_v30 }
  0x94   : > { %766 = vmatpush3.bf16.msra.mxu0 %v387_v29 }
  0x95   : > { %v371_v31 = vpop.permute.xlu1 %370  ;;  %v369_v32 = vpop.permute.xlu0 %368  ;;  %767 = vmatprep.subr.bf16.mxu0 %v908_v0 }
  0x96   : > { %v372_v36 = vsel %vm317_vm3, %v369_v32, %v371_v31 }
  0x98   : > { %768 = vmatpush3.bf16.msra.mxu0 %v391_v33 }
  0x99   : > { %v377_v34 = vpop.permute.xlu1 %376  ;;  %v374_v35 = vpop.permute.xlu0 %373  ;;  %769 = vmatprep.subr.bf16.mxu0 %v908_v0 }
  0x9a   : > { %v375_v37 = vsel %vm317_vm3, %v371_v31, %v374_v35 }
  0x9b   : > { %v395_v38 = vsel %vm328_vm0, %v372_v36, %v375_v37 }
  0x9c   : > { %770 = vmatpush3.bf16.msra.mxu0 %v395_v38 }
  0x9d   : > { %v379_v39 = vpop.permute.xlu0 %378  ;;  %v298_v40 = vpop.permute.xlu1 %297  ;;  %771 = vmatprep.subr.bf16.mxu0 %v908_v0 }
  0x9e   : > { %v380_v41 = vsel %vm326_vm4, %v377_v34, %v379_v39 }
  0x9f   : > { %v453_v42 = vsel %vm328_vm0, %v380_v41, 0 }
  0xa0   : > { %772 = vmatpush3.bf16.msra.mxu0 %v453_v42 }
  0xa1   : > { %v405_v44 = vpop.permute.xlu1 %404  ;;  %v300_v45 = vpop.permute.xlu0 %299  ;;  %791 = vmatprep.subr.bf16.mxu0 %v908_v0 }
  0xa2   : > { %v302_v46 = vsel %vm301_vm2, %v298_v40, %v300_v45 }
  0xa3   : > { %774 = vmatmul.mubr.msk.bf16.vlgmr.msra.gmra.mrb[0].mxu0 %vm448_vm5, %v287_v43  ;;  %v335_v47 = vsel %vm328_vm0, %v302_v46, %v722_v17 }
  0xa4   : > { %780 = vmatpush3.bf16.msra.mxu1 %v335_v47  ;;  %792 = vmatpush3.bf16.msra.mxu0 %v1005_v13  ;;  %v286_v13 = vld [vmem:[%s1128_s2] sm:$0xf] }
  0xa5   : > { %v309_v48 = vpop.permute.xlu1 %308  ;;  %v407_v49 = vpop.permute.xlu0 %406  ;;  %793 = vmatprep.subr.bf16.mxu0 %v908_v0  ;;  %781 = vmatprep.subr.bf16.mxu1 %v908_v0 }
  0xa6   : > { %v408_v50 = vsel %vm301_vm2, %v405_v44, %v407_v49  ;;  %801 = vmatprep.mubr.msk.bf16.mxu0 %vm911_vm1, %v908_v0 }
  0xa7   : > { %v438_v51 = vsel %vm328_vm0, %v408_v50, %v1021_v19 }
  0xa8   : > { %794 = vmatpush3.bf16.msra.mxu0 %v438_v51 }
  0xa9   : > { %v415_v52 = vpop.permute.xlu1 %414  ;;  %v311_v53 = vpop.permute.xlu0 %310  ;;  %795 = vmatprep.subr.bf16.mxu0 %v908_v0 }
  0xaa   : > { %v312_v54 = vsel %vm301_vm2, %v309_v48, %v311_v53 }
  0xab   : > { %v339_v55 = vsel %vm328_vm0, %v1023_v20, %v312_v54 }
  0xac   : > { %782 = vmatpush3.bf16.msra.mxu1 %v339_v55 }
  0xad   : > { %v314_v56 = vpop.permute.xlu1 %313  ;;  %v417_v57 = vpop.permute.xlu0 %416  ;;  %783 = vmatprep.subr.bf16.mxu1 %v908_v0 }
  0xae   : > { %v418_v58 = vsel %vm301_vm2, %v415_v52, %v417_v57 }
  0xaf   : > { %v442_v59 = vsel %vm328_vm0, %v1029_v21, %v418_v58 }
  0xb0   : > { %796 = vmatpush3.bf16.msra.mxu0 %v442_v59 }
  0xb1   : > { %v320_v60 = vpop.permute.xlu1 %319  ;;  %v316_v61 = vpop.permute.xlu0 %315  ;;  %797 = vmatprep.subr.bf16.mxu0 %v908_v0 }
  0xb2   : > { %v318_v62 = vsel %vm317_vm3, %v314_v56, %v316_v61  ;;  %v321_v63 = vsel %vm317_vm3, %v316_v61, %v320_v60 }
  0xb3   : > { %v343_v1 = vsel %vm328_vm0, %v318_v62, %v321_v63 }
  0xb4   : > { %784 = vmatpush3.bf16.msra.mxu1 %v343_v1 }
  0xb5   : > { %v422_v2 = vpop.permute.xlu1 %421  ;;  %v420_v3 = vpop.permute.xlu0 %419  ;;  %785 = vmatprep.subr.bf16.mxu1 %v908_v0 }
  0xb6   : > { %v423_v6 = vsel %vm317_vm3, %v420_v3, %v422_v2 }
  0xb9   : > { %v425_v4 = vpop.permute.xlu0 %424  ;;  %v323_v5 = vpop.permute.xlu1 %322 }
  0xba   : > { %v426_v7 = vsel %vm317_vm3, %v422_v2, %v425_v4 }
  0xbb   : > { %v446_v8 = vsel %vm328_vm0, %v423_v6, %v426_v7 }
  0xbc   : > { %798 = vmatpush3.bf16.msra.mxu0 %v446_v8 }
  0xbd   : > { %v325_v9 = vpop.permute.xlu0 %324  ;;  %799 = vmatprep.subr.bf16.mxu0 %v908_v0  ;;  %v428_v12 = vpop.permute.xlu1 %427  ;;  %v288_v0 = vld [vmem:[%s1128_s2 + $0x8] sm:$0xf] }
  0xbe   : > { %v327_v10 = vsel %vm326_vm4, %v323_v5, %v325_v9 }
  0xbf   : > { %v499_v11 = vsel %vm328_vm0, %v327_v10, 0 }
  0xc0   : > { %786 = vmatpush3.bf16.msra.mxu1 %v499_v11 }
  0xc1   : > { %v430_v14 = vpop.permute.xlu0 %429 }
  0xc2   : > { %v431_v15 = vsel %vm326_vm4, %v428_v12, %v430_v14 }
  0xc3   : > { %v545_v16 = vsel %vm328_vm0, %v431_v15, 0  ;;  %788 = vmatmul.mubr.msk.bf16.vlgmr.msra.gmra.mrb[0].mxu1 %vm448_vm5, %v286_v13 }
  0xc4   : > { %800 = vmatpush3.bf16.msra.mxu0 %v545_v16 }
  0xc7   : > { %802 = vmatmul.mubr.msk.bf16.vlgmr.msra.gmra.mrb[4].mxu0 %vm448_vm5, %v288_v0 }
  0xce   : > { %v591_v27 = vpop.permute.xlu1 %590 }
 0x176   : > { %v489_v17 = vpop.f32.mrb[0].mxu0 }
 0x177   : > { %v775_v18 = vpop.f32.mrb[1].mxu0 }
 0x178   : > { %v492_v19 = vpop.f32.mrb[2].mxu0 }
 0x179   : > { %v776_v20 = vpop.f32.mrb[3].mxu0 }
 0x196   : > { %v535_v21 = vpop.f32.mrb[0].mxu1 }
 0x197   : > { %v536_v22 = vadd.f32 %v535_v21, %v489_v17  ;;  %v789_v23 = vpop.f32.mrb[1].mxu1 }
 0x198   : > { %v538_v24 = vpop.f32.mrb[2].mxu1 }
 0x199   : > { %v790_v25 = vpop.f32.mrb[3].mxu1 }
 0x19a   : > { %v581_v26 = vpop.f32.mrb[4].mxu0 }
 0x19b   : > { %v587_v28 = vadd.f32 %v581_v26, %v536_v22  ;;  %v803_v29 = vpop.f32.mrb[5].mxu0 }
 0x19c   : > { %v584_v30 = vpop.f32.mrb[6].mxu0 }
 0x19d   : > { %v593_v31 = vadd.f32 %v591_v27, %v587_v28  ;;  %v804_v32 = vpop.f32.mrb[7].mxu0 }
 0x19f   : > { %v594_v33 = vmax.f32 %v593_v31, 0.0 }
 0x1a1   : > { %v595_v34 = vpack.c.bf16 %v594_v33, %v594_v33 }
 0x1a3   : > { %596 = vst [vmem:[%s284_s9] sm:$0xf] %v595_v34 }
 0x1a4 PF: > { %s14_s19 = sadd.s32 1, %s906_s19   ;;  %s1131_s15 = smov %s898_s17 }
 0x1a5   : > { %p11_p9 = scmp.ge.s32.totalorder %s14_s19, 6   ;;  %s1132_s16 = smov %s902_s18 }
 0x1a6   : > { %s1133_s17 = smov %s1136_s20  ;;  %s1134_s18 = smov %s1140_s21 }
 0x1a7   :  { %13 = sbr.rel (!%p11_p9) target bundleno = 3 (0x3), region = 70 }

// kernel: hourglass_forward.9
= control target key start
LH: loop header
LB: loop body
LE: loop exit
PB: predicated region body
PF: predicated region fallthrough
CT: control target
= control target key end

     0   :  { %s1047_s18 = smov 0   ;;  %s1049_s19 = smov 0   ;;  %s1265_s0 = inlined_call_operand.vmem [shape: bf16[2,4,8,256], index: 0, kind: input, shape index: {}, may-alias: {0,1,2}]   ;;  %s1266_s1 = inlined_call_operand.vmem [shape: bf16[2,4,8,256], index: 1, kind: input, shape index: {}, may-alias: {0,1,2}]   ;;  %s1267_s2 = inlined_call_operand.vmem [shape: bf16[2,4,8,256], index: 2, kind: input, shape index: {}, may-alias: {0,1,2}]   ;;  %s1268_s3 = inlined_call_operand.vmem [shape: bf16[3,8,72], index: 3, kind: input, shape index: {}]   ;;  %s1269_s4 = inlined_call_operand.vmem [shape: f32[8,1], index: 4, kind: input, shape index: {}]   ;;  %s1270_s5 = inlined_call_operand.vmem [shape: bf16[2,2,8,128], index: 5, kind: output, shape index: {}]  }
   0x1   :  { %s1051_s20 = smov 0   ;;  %s1053_s21 = smov 0  }
   0x2   :  { %s1055_s22 = smov 0  }
   0x3 LB: > { %s24_s23 = sadd.s32 1, %s996_s20  ;;  %s27_s24 = sadd.s32 1, %s1000_s21  ;;  %s1004_s22 = sphi %s1055_s22, %s15_s22   ;;  %s1000_s21 = sphi %s1053_s21, %s1274_s21   ;;  %s996_s20 = sphi %s1051_s20, %s1273_s20   ;;  %s992_s19 = sphi %s1049_s19, %s1272_s19   ;;  %s988_s18 = sphi %s1047_s18, %s1271_s18  }
   0x4   : > { %p25_p0 = scmp.ge.s32.totalorder %s24_s23, 2  ;;  %p825_p1 = scmp.ge.s32.totalorder %s1004_s22, 1 }
   0x5   : > { %p247_p2 = scmp.lt.s32.totalorder %s1004_s22, 5 }
   0x6   : > { %s1276_s23 = smov (%p25_p0, %s24_s23), 0  ;;  %s1278_s24 = smov (!%p25_p0, %s27_s24), %s1000_s21 }
   0x7   : > { %p248_p3 = pnand %p825_p1, %p247_p2  ;;  %p29_p4 = scmp.ge.s32.totalorder %s1278_s24, 2 }
   0x8   : > { %p302_p5 = scmp.lt.s32.totalorder (!%p248_p3), %s992_s19, 1  ;;  %s311_s25 = sadd.s32 (!%p248_p3), 1, %s988_s18  ;;  %v1006_v0 = vmov (!%p248_p3), 0.0   ;;  %vm1014_vm0 = vmmov (!%p248_p3), 0   ;;  %v1016_v10 = vmov (!%p248_p3), 0   ;;  %v345_v11 = vld [vmem:[%s1269_s4] sm:$0xff] (!%p248_p3) }
   0x9   : > { %s1280_s24 = smov (%p29_p4, %s1278_s24), 0  ;;  %251 = sbr.rel (%p248_p3) target bundleno = 457 (0x1c9), region = 40 }
   0xa   : > { %p314_p6 = scmp.lt.s32.totalorder (!%p248_p3), %s311_s25, 3  ;;  %866 = vmatprep.subr.bf16.mxu0 (!%p248_p3), %v1006_v0  ;;  %880 = vmatprep.subr.bf16.mxu1 (!%p248_p3), %v1006_v0  ;;  %s1007_s8 = smov (!%p248_p3), 126   ;;  %vm356_vm1 = vcmask (!%p248_p3), 1039360   ;;  %vm400_vm2 = vcmask (!%p248_p3), 1043456   ;;  %vm362_vm3 = vcmask (!%p248_p3), 1031168   ;;  %vm368_vm4 = vcmask (!%p248_p3), 998400  }
   0xb   : > { %s1008_s9 = smov (!%p248_p3), 127   ;;  %p304_p7 = scmp.lt.s32.totalorder (!%p248_p3), %s988_s18, 3  ;;  %876 = vmatprep.mubr.msk.bf16.mxu0 (!%p248_p3), %vm1014_vm0, %v1006_v0  ;;  %890 = vmatprep.mubr.msk.bf16.mxu1 (!%p248_p3), %vm1014_vm0, %v1006_v0  ;;  %vm374_vm5 = vcmask (!%p248_p3), 990208   ;;  %vm380_vm6 = vcmask (!%p248_p3), 982016   ;;  %vm386_vm7 = vcmask (!%p248_p3), 949248   ;;  %vm392_vm8 = vcmask (!%p248_p3), 941056  }
   0xc   : > { %s322_s10 = sadd.s32 (!%p248_p3), 2, %s988_s18  ;;  %s1009_s11 = smov (!%p248_p3), 122   ;;  %959 = vset.pattern.permute.xlu0 (!%p248_p3), %v1016_v10  ;;  %vm398_vm9 = vcmask (!%p248_p3), 932864   ;;  %v343_v41 = vld [vmem:[%s1268_s3 + $0x4] sm:$0xf] (!%p248_p3)  ;;  %vm541_vm10 = vcmask (!%p248_p3), 588800  }
   0xd   : > { %p325_p8 = scmp.lt.s32.totalorder (!%p248_p3), %s322_s10, 3  ;;  %s1010_s13 = smov (!%p248_p3), 121  }
   0xe   : > { %s1011_s15 = smov (!%p248_p3), 120   ;;  %p335_p9 = scmp.lt.s32.totalorder (!%p248_p3), %s988_s18, 1 }
  0x10   : > { %s1282_s19 = smov (!%p302_p5, %s992_s19), 1  ;;  %s1284_s25 = smov (!%p314_p6, %s311_s25), 3 }
  0x11   : > { %s1083_s26 = sshll.u32 %s1282_s19, 3  ;;  %s829_s27 = sshll.u32 %s1284_s25, 1 }
  0x12   : > { %s318_s28 = sadd.s32 %s829_s27, %s1083_s26  ;;  %s1286_s10 = smov (!%p325_p8, %s322_s10), 3 }
  0x13   : > { %s831_s29 = sshll.u32 %s318_s28, 2  ;;  %s832_s17 = sshll.u32 %s1286_s10, 1 }
  0x14   : > { %s320_s7 = scalar_lea.vmem %s1266_s1, %s831_s29  ;;  %s1012_s27 = smov 116  }
  0x15   : > { %v1091_v1 = vld [vmem:[%s320_s7] sm:$0xff]  ;;  %s305_s12 = scalar_select %p304_p7, %s988_s18, 3 }
  0x16   : > { %v839_v2 = vcombine.low %v1091_v1, %v1091_v1  ;;  %v840_v3 = vcombine.high %v1091_v1, %v1091_v1  ;;  %s329_s28 = sadd.s32 %s832_s17, %s1083_s26  ;;  %s1288_s18 = smov (!%p335_p9, %s988_s18), 1 }
  0x17   : > { %s826_s14 = sshll.u32 %s305_s12, 1  ;;  %s834_s7 = sshll.u32 %s329_s28, 2 }
  0x18   : > { %428 = vrot.lane.b32.xlu1 %v839_v2, %s1007_s8  ;;  %423 = vrot.lane.b32.xlu0 %v839_v2, %s1008_s9  ;;  %s308_s16 = sadd.s32 %s1083_s26, %s826_s14  ;;  %s1013_s12 = smov 115  }
  0x19   : > { %s828_s25 = sshll.u32 %s308_s16, 2  ;;  %s331_s14 = scalar_lea.vmem %s1267_s2, %s834_s7 }
  0x1a   : > { %s310_s6 = scalar_lea.vmem %s1265_s0, %s828_s25  ;;  %s1015_s16 = smov 114   ;;  %v1134_v7 = vld [vmem:[%s331_s14] sm:$0xff] }
  0x1b   : > { %v1119_v4 = vld [vmem:[%s310_s6] sm:$0xff]  ;;  %v842_v8 = vcombine.high %v1134_v7, %v1134_v7  ;;  %v841_v9 = vcombine.low %v1134_v7, %v1134_v7  ;;  %s835_s28 = sshll.u32 %s1282_s19, 1 }
  0x1c   : > { %430 = vrot.lane.b32.xlu1 %v840_v3, %s1007_s8  ;;  %425 = vrot.lane.b32.xlu0 %v840_v3, %s1008_s9  ;;  %v838_v5 = vcombine.high %v1119_v4, %v1119_v4  ;;  %v837_v6 = vcombine.low %v1119_v4, %v1119_v4  ;;  %s338_s29 = sadd.s32 %s835_s28, %s1288_s18 }
  0x1d   : > { %s836_s30 = sshll.u32 %s338_s29, 2 }
  0x20   : > { %435 = vrot.lane.b32.xlu1 %v840_v3, %s1009_s11  ;;  %433 = vrot.lane.b32.xlu0 %v839_v2, %s1009_s11 }
  0x24   : > { %440 = vrot.lane.b32.xlu1 %v840_v3, %s1010_s13  ;;  %438 = vrot.lane.b32.xlu0 %v839_v2, %s1010_s13 }
  0x28   : > { %445 = vrot.lane.b32.xlu1 %v840_v3, %s1011_s15  ;;  %443 = vrot.lane.b32.xlu0 %v839_v2, %s1011_s15 }
  0x2c   : > { %450 = vrot.lane.b32.xlu1 %v840_v3, %s1012_s27  ;;  %448 = vrot.lane.b32.xlu0 %v839_v2, %s1012_s27 }
  0x30   : > { %455 = vrot.lane.b32.xlu1 %v840_v3, %s1013_s12  ;;  %453 = vrot.lane.b32.xlu0 %v839_v2, %s1013_s12 }
  0x34   : > { %460 = vrot.lane.b32.xlu1 %v840_v3, %s1015_s16  ;;  %458 = vrot.lane.b32.xlu0 %v839_v2, %s1015_s16 }
  0x38   : > { %354 = vrot.lane.b32.xlu1 %v838_v5, %s1008_s9  ;;  %352 = vrot.lane.b32.xlu0 %v837_v6, %s1008_s9 }
  0x3c   : > { %487 = vrot.lane.b32.xlu1 %v842_v8, %s1008_s9  ;;  %485 = vrot.lane.b32.xlu0 %v841_v9, %s1008_s9 }
  0x40   : > { %360 = vrot.lane.b32.xlu1 %v838_v5, %s1007_s8  ;;  %358 = vrot.lane.b32.xlu0 %v837_v6, %s1007_s8 }
  0x44   : > { %366 = vrot.lane.b32.xlu1 %v838_v5, %s1009_s11  ;;  %364 = vrot.lane.b32.xlu0 %v837_v6, %s1009_s11 }
  0x48   : > { %492 = vrot.lane.b32.xlu1 %v842_v8, %s1007_s8  ;;  %490 = vrot.lane.b32.xlu0 %v841_v9, %s1007_s8 }
  0x4c   : > { %497 = vrot.lane.b32.xlu1 %v842_v8, %s1009_s11  ;;  %495 = vrot.lane.b32.xlu0 %v841_v9, %s1009_s11 }
  0x50   : > { %372 = vrot.lane.b32.xlu1 %v838_v5, %s1010_s13  ;;  %370 = vrot.lane.b32.xlu0 %v837_v6, %s1010_s13 }
  0x54   : > { %378 = vrot.lane.b32.xlu1 %v838_v5, %s1011_s15  ;;  %376 = vrot.lane.b32.xlu0 %v837_v6, %s1011_s15 }
  0x58   : > { %502 = vrot.lane.b32.xlu1 %v842_v8, %s1010_s13  ;;  %500 = vrot.lane.b32.xlu0 %v841_v9, %s1010_s13 }
  0x5c   : > { %507 = vrot.lane.b32.xlu1 %v842_v8, %s1011_s15  ;;  %505 = vrot.lane.b32.xlu0 %v841_v9, %s1011_s15 }
  0x60   : > { %384 = vrot.lane.b32.xlu1 %v838_v5, %s1012_s27  ;;  %382 = vrot.lane.b32.xlu0 %v837_v6, %s1012_s27 }
  0x64   : > { %390 = vrot.lane.b32.xlu1 %v838_v5, %s1013_s12  ;;  %388 = vrot.lane.b32.xlu0 %v837_v6, %s1013_s12 }
  0x68   : > { %512 = vrot.lane.b32.xlu1 %v842_v8, %s1012_s27  ;;  %510 = vrot.lane.b32.xlu0 %v841_v9, %s1012_s27 }
  0x6c   : > { %517 = vrot.lane.b32.xlu1 %v842_v8, %s1013_s12  ;;  %515 = vrot.lane.b32.xlu0 %v841_v9, %s1013_s12  ;;  %s340_s12 = scalar_lea.vmem %s1270_s5, %s836_s30 }
  0x70   : > { %396 = vrot.lane.b32.xlu1 %v838_v5, %s1015_s16  ;;  %394 = vrot.lane.b32.xlu0 %v837_v6, %s1015_s16 }
  0x74   : > { %522 = vrot.lane.b32.xlu1 %v842_v8, %s1015_s16  ;;  %520 = vrot.lane.b32.xlu0 %v841_v9, %s1015_s16 }
  0x78   : > { %683 = vperm.xlu0 %959, %v345_v11  }
  0x8a   : > { %v429_v12 = vpop.permute.xlu1 %428  ;;  %v424_v13 = vpop.permute.xlu0 %423 }
  0x8e   : > { %v431_v14 = vpop.permute.xlu1 %430  ;;  %v426_v15 = vpop.permute.xlu0 %425 }
  0x8f   : > { %v427_v16 = vsel %vm356_vm1, %v424_v13, %v426_v15  ;;  %v432_v20 = vsel %vm362_vm3, %v429_v12, %v431_v14 }
  0x90   : > { %v465_v17 = vsel %vm400_vm2, %v1091_v1, %v427_v16 }
  0x91   : > { %867 = vmatpush3.bf16.msra.mxu0 %v465_v17 }
  0x92   : > { %v436_v18 = vpop.permute.xlu1 %435  ;;  %v434_v19 = vpop.permute.xlu0 %433  ;;  %868 = vmatprep.subr.bf16.mxu0 %v1006_v0 }
  0x93   : > { %v437_v21 = vsel %vm368_vm4, %v434_v19, %v436_v18 }
  0x94   : > { %v469_v22 = vsel %vm400_vm2, %v432_v20, %v437_v21 }
  0x95   : > { %869 = vmatpush3.bf16.msra.mxu0 %v469_v22 }
  0x96   : > { %v441_v23 = vpop.permute.xlu1 %440  ;;  %v439_v24 = vpop.permute.xlu0 %438  ;;  %870 = vmatprep.subr.bf16.mxu0 %v1006_v0 }
  0x97   : > { %v442_v27 = vsel %vm374_vm5, %v439_v24, %v441_v23 }
  0x9a   : > { %v446_v25 = vpop.permute.xlu1 %445  ;;  %v444_v26 = vpop.permute.xlu0 %443 }
  0x9b   : > { %v447_v28 = vsel %vm380_vm6, %v444_v26, %v446_v25 }
  0x9c   : > { %v473_v29 = vsel %vm400_vm2, %v442_v27, %v447_v28 }
  0x9d   : > { %871 = vmatpush3.bf16.msra.mxu0 %v473_v29 }
  0x9e   : > { %v451_v30 = vpop.permute.xlu1 %450  ;;  %v449_v31 = vpop.permute.xlu0 %448  ;;  %872 = vmatprep.subr.bf16.mxu0 %v1006_v0 }
  0x9f   : > { %v452_v34 = vsel %vm386_vm7, %v449_v31, %v451_v30 }
  0xa2   : > { %v456_v32 = vpop.permute.xlu1 %455  ;;  %v454_v33 = vpop.permute.xlu0 %453 }
  0xa3   : > { %v457_v35 = vsel %vm392_vm8, %v454_v33, %v456_v32  ;;  %v342_v33 = vld [vmem:[%s1268_s3] sm:$0xf] }
  0xa4   : > { %v477_v36 = vsel %vm400_vm2, %v452_v34, %v457_v35 }
  0xa5   : > { %873 = vmatpush3.bf16.msra.mxu0 %v477_v36 }
  0xa6   : > { %v461_v37 = vpop.permute.xlu1 %460  ;;  %v459_v38 = vpop.permute.xlu0 %458  ;;  %874 = vmatprep.subr.bf16.mxu0 %v1006_v0 }
  0xa7   : > { %v462_v39 = vsel %vm398_vm9, %v459_v38, %v461_v37 }
  0xa8   : > { %v546_v40 = vsel %vm400_vm2, %v462_v39, 0 }
  0xa9   : > { %875 = vmatpush3.bf16.msra.mxu0 %v546_v40 }
  0xaa   : > { %v355_v42 = vpop.permute.xlu1 %354  ;;  %v353_v43 = vpop.permute.xlu0 %352  ;;  %894 = vmatprep.subr.bf16.mxu0 %v1006_v0 }
  0xab   : > { %v357_v44 = vsel %vm356_vm1, %v353_v43, %v355_v42 }
  0xac   : > { %v403_v45 = vsel %vm400_vm2, %v1119_v4, %v357_v44  ;;  %877 = vmatmul.mubr.msk.bf16.vlgmr.msra.gmra.mrb[0].mxu0 %vm541_vm10, %v343_v41 }
  0xad   : > { %881 = vmatpush3.bf16.msra.mxu1 %v403_v45  ;;  %904 = vmatprep.mubr.msk.bf16.mxu0 %vm1014_vm0, %v1006_v0 }
  0xae   : > { %v488_v46 = vpop.permute.xlu1 %487  ;;  %v486_v47 = vpop.permute.xlu0 %485  ;;  %882 = vmatprep.subr.bf16.mxu1 %v1006_v0 }
  0xaf   : > { %v489_v48 = vsel %vm356_vm1, %v486_v47, %v488_v46 }
  0xb0   : > { %v527_v49 = vsel %vm400_vm2, %v1134_v7, %v489_v48 }
  0xb1   : > { %895 = vmatpush3.bf16.msra.mxu0 %v527_v49 }
  0xb2   : > { %v361_v50 = vpop.permute.xlu1 %360  ;;  %v359_v51 = vpop.permute.xlu0 %358  ;;  %896 = vmatprep.subr.bf16.mxu0 %v1006_v0 }
  0xb3   : > { %v363_v54 = vsel %vm362_vm3, %v359_v51, %v361_v50 }
  0xb6   : > { %v367_v52 = vpop.permute.xlu1 %366  ;;  %v365_v53 = vpop.permute.xlu0 %364 }
  0xb7   : > { %v369_v55 = vsel %vm368_vm4, %v365_v53, %v367_v52 }
  0xb8   : > { %v407_v56 = vsel %vm400_vm2, %v363_v54, %v369_v55 }
  0xb9   : > { %883 = vmatpush3.bf16.msra.mxu1 %v407_v56 }
  0xba   : > { %v493_v57 = vpop.permute.xlu1 %492  ;;  %v491_v58 = vpop.permute.xlu0 %490  ;;  %884 = vmatprep.subr.bf16.mxu1 %v1006_v0 }
  0xbb   : > { %v494_v61 = vsel %vm362_vm3, %v491_v58, %v493_v57 }
  0xbe   : > { %v498_v59 = vpop.permute.xlu1 %497  ;;  %v496_v60 = vpop.permute.xlu0 %495 }
  0xbf   : > { %v499_v62 = vsel %vm368_vm4, %v496_v60, %v498_v59 }
  0xc0   : > { %v531_v63 = vsel %vm400_vm2, %v494_v61, %v499_v62 }
  0xc1   : > { %897 = vmatpush3.bf16.msra.mxu0 %v531_v63 }
  0xc2   : > { %v373_v1 = vpop.permute.xlu1 %372  ;;  %v371_v2 = vpop.permute.xlu0 %370  ;;  %898 = vmatprep.subr.bf16.mxu0 %v1006_v0 }
  0xc3   : > { %v375_v5 = vsel %vm374_vm5, %v371_v2, %v373_v1 }
  0xc6   : > { %v379_v3 = vpop.permute.xlu1 %378  ;;  %v377_v4 = vpop.permute.xlu0 %376 }
  0xc7   : > { %v381_v6 = vsel %vm380_vm6, %v377_v4, %v379_v3 }
  0xc8   : > { %v411_v7 = vsel %vm400_vm2, %v375_v5, %v381_v6 }
  0xc9   : > { %885 = vmatpush3.bf16.msra.mxu1 %v411_v7 }
  0xca   : > { %v503_v8 = vpop.permute.xlu1 %502  ;;  %v501_v9 = vpop.permute.xlu0 %500  ;;  %886 = vmatprep.subr.bf16.mxu1 %v1006_v0 }
  0xcb   : > { %v504_v12 = vsel %vm374_vm5, %v501_v9, %v503_v8 }
  0xce   : > { %v508_v10 = vpop.permute.xlu1 %507  ;;  %v506_v11 = vpop.permute.xlu0 %505 }
  0xcf   : > { %v509_v13 = vsel %vm380_vm6, %v506_v11, %v508_v10 }
  0xd0   : > { %v535_v14 = vsel %vm400_vm2, %v504_v12, %v509_v13 }
  0xd1   : > { %899 = vmatpush3.bf16.msra.mxu0 %v535_v14 }
  0xd2   : > { %v385_v15 = vpop.permute.xlu1 %384  ;;  %v383_v16 = vpop.permute.xlu0 %382  ;;  %900 = vmatprep.subr.bf16.mxu0 %v1006_v0 }
  0xd3   : > { %v387_v19 = vsel %vm386_vm7, %v383_v16, %v385_v15 }
  0xd6   : > { %v391_v17 = vpop.permute.xlu1 %390  ;;  %v389_v18 = vpop.permute.xlu0 %388 }
  0xd7   : > { %v393_v20 = vsel %vm392_vm8, %v389_v18, %v391_v17 }
  0xd8   : > { %v415_v21 = vsel %vm400_vm2, %v387_v19, %v393_v20 }
  0xd9   : > { %887 = vmatpush3.bf16.msra.mxu1 %v415_v21 }
  0xda   : > { %v513_v22 = vpop.permute.xlu1 %512  ;;  %v511_v23 = vpop.permute.xlu0 %510  ;;  %888 = vmatprep.subr.bf16.mxu1 %v1006_v0 }
  0xdb   : > { %v514_v26 = vsel %vm386_vm7, %v511_v23, %v513_v22 }
  0xde   : > { %v518_v24 = vpop.permute.xlu1 %517  ;;  %v516_v25 = vpop.permute.xlu0 %515 }
  0xdf   : > { %v519_v27 = vsel %vm392_vm8, %v516_v25, %v518_v24 }
  0xe0   : > { %v539_v28 = vsel %vm400_vm2, %v514_v26, %v519_v27 }
  0xe1   : > { %901 = vmatpush3.bf16.msra.mxu0 %v539_v28 }
  0xe2   : > { %v397_v29 = vpop.permute.xlu1 %396  ;;  %v395_v30 = vpop.permute.xlu0 %394  ;;  %902 = vmatprep.subr.bf16.mxu0 %v1006_v0  ;;  %v344_v0 = vld [vmem:[%s1268_s3 + $0x8] sm:$0xf] }
  0xe3   : > { %v399_v31 = vsel %vm398_vm9, %v395_v30, %v397_v29 }
  0xe4   : > { %v592_v32 = vsel %vm400_vm2, %v399_v31, 0 }
  0xe5   : > { %889 = vmatpush3.bf16.msra.mxu1 %v592_v32 }
  0xe6   : > { %v523_v34 = vpop.permute.xlu1 %522  ;;  %v521_v35 = vpop.permute.xlu0 %520 }
  0xe7   : > { %v524_v36 = vsel %vm398_vm9, %v521_v35, %v523_v34 }
  0xe8   : > { %v638_v37 = vsel %vm400_vm2, %v524_v36, 0  ;;  %891 = vmatmul.mubr.msk.bf16.vlgmr.msra.gmra.mrb[0].mxu1 %vm541_vm10, %v342_v33 }
  0xe9   : > { %903 = vmatpush3.bf16.msra.mxu0 %v638_v37 }
  0xec   : > { %905 = vmatmul.mubr.msk.bf16.vlgmr.msra.gmra.mrb[4].mxu0 %vm541_vm10, %v344_v0 }
  0xf7   : > { %v684_v48 = vpop.permute.xlu0 %683 }
 0x17f   : > { %v582_v38 = vpop.f32.mrb[0].mxu0 }
 0x180   : > { %v878_v39 = vpop.f32.mrb[1].mxu0 }
 0x181   : > { %v585_v40 = vpop.f32.mrb[2].mxu0 }
 0x182   : > { %v879_v41 = vpop.f32.mrb[3].mxu0 }
 0x1bb   : > { %v628_v42 = vpop.f32.mrb[0].mxu1 }
 0x1bc   : > { %v629_v43 = vadd.f32 %v628_v42, %v582_v38  ;;  %v892_v44 = vpop.f32.mrb[1].mxu1 }
 0x1bd   : > { %v631_v45 = vpop.f32.mrb[2].mxu1 }
 0x1be   : > { %v893_v46 = vpop.f32.mrb[3].mxu1 }
 0x1bf   : > { %v674_v47 = vpop.f32.mrb[4].mxu0 }
 0x1c0   : > { %v680_v49 = vadd.f32 %v674_v47, %v629_v43  ;;  %v906_v50 = vpop.f32.mrb[5].mxu0 }
 0x1c1   : > { %v677_v51 = vpop.f32.mrb[6].mxu0 }
 0x1c2   : > { %v686_v52 = vadd.f32 %v684_v48, %v680_v49  ;;  %v907_v53 = vpop.f32.mrb[7].mxu0 }
 0x1c4   : > { %v687_v54 = vmax.f32 %v686_v52, 0.0 }
 0x1c6   : > { %v688_v55 = vpack.c.bf16 %v687_v54, %v687_v54 }
 0x1c8   : > { %689 = vst [vmem:[%s340_s12] sm:$0xf] %v688_v55 }
 0x1c9 PF: > { %s15_s22 = sadd.s32 1, %s1004_s22   ;;  %s1271_s18 = smov %s996_s20 }
 0x1ca   : > { %p12_p10 = scmp.ge.s32.totalorder %s15_s22, 6   ;;  %s1272_s19 = smov %s1000_s21 }
 0x1cb   : > { %s1273_s20 = smov %s1276_s23  ;;  %s1274_s21 = smov %s1280_s24 }
 0x1cc   :  { %14 = sbr.rel (!%p12_p10) target bundleno = 3 (0x3), region = 76 }

// kernel: tile.10
= control target key start
LH: loop header
LB: loop body
LE: loop exit
PB: predicated region body
PF: predicated region fallthrough
CT: control target
= control target key end

     0   :  { %s22_s0 = inlined_call_operand.vmem [shape: f32[8], index: 0, kind: input, shape index: {}]   ;;  %s23_s1 = inlined_call_operand.vmem [shape: f32[8,1,1,8], index: 1, kind: output, shape index: {}]  }
   0x1   :  { %v4_v0 = vld [vmem:[%s22_s0] ss:$0 sm:$0xff] }
   0x2   :  { %5 = vst [vmem:[%s23_s1] sm:$0xff] %v4_v0 }

// kernel: tile.0
= control target key start
LH: loop header
LB: loop body
LE: loop exit
PB: predicated region body
PF: predicated region fallthrough
CT: control target
= control target key end

     0   :  { %vm3_vm0 = vcmask 7168   ;;  %s84_s8 = smov 125   ;;  %s85_s13 = smov 126   ;;  %s167_s0 = inlined_call_operand.vmem [shape: f32[8,1,1,8], index: 0, kind: input, shape index: {}]   ;;  %s168_s1 = inlined_call_operand.vmem [shape: f32[64,1], index: 1, kind: output, shape index: {}]  }
   0x1   :  { %v6_v0 = vld [vmem:[%s167_s0] sm:$0xff]   ;;  %s83_s0 = smov 127   ;;  %s86_s14 = smov 124  }
   0x2   :  { %7 = vrot.lane.b32.xlu0 %v6_v0, %s83_s0  ;;  %23 = vrot.lane.b32.xlu1 %v6_v0, %s84_s8  ;;  %4 = vst.msk [vmem:[%s168_s1] ss:$8 sm:$0xf] %vm3_vm0, %v6_v0   ;;  %5 = vst.msk [vmem:[%s168_s1] ss:$8 sm:$0xf0] %vm3_vm0, %v6_v0  }
   0x3   :  { %s87_s15 = smov 123   ;;  %s88_s16 = smov 122  }
   0x4   :  { %s89_s17 = smov 121  }
   0x6   :  { %15 = vrot.lane.b32.xlu0 %v6_v0, %s85_s13  ;;  %31 = vrot.lane.b32.xlu1 %v6_v0, %s86_s14 }
   0xa   :  { %39 = vrot.lane.b32.xlu0 %v6_v0, %s87_s15  ;;  %47 = vrot.lane.b32.xlu1 %v6_v0, %s88_s16 }
   0xe   :  { %55 = vrot.lane.b32.xlu0 %v6_v0, %s89_s17 }
  0x74   :  { %v8_v1 = vpop.permute.xlu0 %7   ;;  %v24_v2 = vpop.permute.xlu1 %23  }
  0x75   :  { %62 = vst.msk [vmem:[%s168_s1 + $0x1] ss:$8 sm:$0xf] %vm3_vm0, %v8_v1   ;;  %63 = vst.msk [vmem:[%s168_s1 + $0x1] ss:$8 sm:$0xf0] %vm3_vm0, %v8_v1  }
  0x76   :  { %66 = vst.msk [vmem:[%s168_s1 + $0x3] ss:$8 sm:$0xf] %vm3_vm0, %v24_v2   ;;  %67 = vst.msk [vmem:[%s168_s1 + $0x3] ss:$8 sm:$0xf0] %vm3_vm0, %v24_v2  }
  0x78   :  { %v16_v3 = vpop.permute.xlu0 %15   ;;  %v32_v4 = vpop.permute.xlu1 %31  }
  0x79   :  { %64 = vst.msk [vmem:[%s168_s1 + $0x2] ss:$8 sm:$0xf] %vm3_vm0, %v16_v3   ;;  %65 = vst.msk [vmem:[%s168_s1 + $0x2] ss:$8 sm:$0xf0] %vm3_vm0, %v16_v3  }
  0x7a   :  { %68 = vst.msk [vmem:[%s168_s1 + $0x4] ss:$8 sm:$0xf] %vm3_vm0, %v32_v4   ;;  %69 = vst.msk [vmem:[%s168_s1 + $0x4] ss:$8 sm:$0xf0] %vm3_vm0, %v32_v4  }
  0x7c   :  { %v40_v5 = vpop.permute.xlu0 %39   ;;  %v48_v6 = vpop.permute.xlu1 %47  }
  0x7d   :  { %70 = vst.msk [vmem:[%s168_s1 + $0x5] ss:$8 sm:$0xf] %vm3_vm0, %v40_v5   ;;  %71 = vst.msk [vmem:[%s168_s1 + $0x5] ss:$8 sm:$0xf0] %vm3_vm0, %v40_v5  }
  0x7e   :  { %72 = vst.msk [vmem:[%s168_s1 + $0x6] ss:$8 sm:$0xf] %vm3_vm0, %v48_v6   ;;  %73 = vst.msk [vmem:[%s168_s1 + $0x6] ss:$8 sm:$0xf0] %vm3_vm0, %v48_v6  }
  0x80   :  { %v56_v7 = vpop.permute.xlu0 %55  }
  0x81   :  { %74 = vst.msk [vmem:[%s168_s1 + $0x7] ss:$8 sm:$0xf] %vm3_vm0, %v56_v7   ;;  %75 = vst.msk [vmem:[%s168_s1 + $0x7] ss:$8 sm:$0xf0] %vm3_vm0, %v56_v7  }

// kernel: hourglass_forward.10
= control target key start
LH: loop header
LB: loop body
LE: loop exit
PB: predicated region body
PF: predicated region fallthrough
CT: control target
= control target key end

     0   :  { %s1147_s18 = smov 0   ;;  %s1149_s19 = smov 0   ;;  %s1292_s0 = inlined_call_operand.vmem [shape: bf16[2,3,8,256], index: 0, kind: input, shape index: {}, may-alias: {0,1}]   ;;  %s1293_s1 = inlined_call_operand.vmem [shape: bf16[2,3,8,256], index: 1, kind: input, shape index: {}, may-alias: {0,1}]   ;;  %s1294_s2 = inlined_call_operand.vmem [shape: bf16[2,64,32], index: 2, kind: input, shape index: {}]   ;;  %s1295_s3 = inlined_call_operand.vmem [shape: f32[64,1], index: 3, kind: input, shape index: {}]   ;;  %s1296_s4 = inlined_call_operand.vmem [shape: bf16[2,2,64,128], index: 4, kind: input, shape index: {}]   ;;  %s1297_s5 = inlined_call_operand.vmem [shape: bf16[2,2,64,128], index: 5, kind: output, shape index: {}]  }
   0x1   :  { %s1151_s20 = smov 0   ;;  %s1153_s21 = smov 0  }
   0x2   :  { %s1155_s22 = smov 0  }
   0x3 LB: > { %s24_s23 = sadd.s32 1, %s1103_s20  ;;  %s27_s24 = sadd.s32 1, %s1107_s21  ;;  %s1111_s22 = sphi %s1155_s22, %s15_s22   ;;  %s1107_s21 = sphi %s1153_s21, %s1301_s21   ;;  %s1103_s20 = sphi %s1151_s20, %s1300_s20   ;;  %s1099_s19 = sphi %s1149_s19, %s1299_s19   ;;  %s1095_s18 = sphi %s1147_s18, %s1298_s18  }
   0x4   : > { %p25_p0 = scmp.ge.s32.totalorder %s24_s23, 2  ;;  %p879_p1 = scmp.ge.s32.totalorder %s1111_s22, 1 }
   0x5   : > { %p243_p2 = scmp.lt.s32.totalorder %s1111_s22, 5 }
   0x6   : > { %s1303_s23 = smov (%p25_p0, %s24_s23), 0  ;;  %s1305_s24 = smov (!%p25_p0, %s27_s24), %s1107_s21 }
   0x7   : > { %p244_p3 = pnand %p879_p1, %p243_p2  ;;  %p29_p4 = scmp.ge.s32.totalorder %s1305_s24, 2 }
   0x8   : > { %p298_p5 = scmp.lt.s32.totalorder (!%p244_p3), %s1099_s19, 1  ;;  %s307_s25 = sadd.s32 (!%p244_p3), 1, %s1095_s18  ;;  %v1065_v6 = vld [vmem:[%s1294_s2] sm:$0xff] (!%p244_p3)   ;;  %vm443_vm0 = vcmask (!%p244_p3), 261120   ;;  %v354_v8 = vld [vmem:[%s1295_s3 + $0x8] sm:$0xff] (!%p244_p3)  ;;  %v1116_v10 = vmov (!%p244_p3), 0  }
   0x9   : > { %s1307_s24 = smov (%p29_p4, %s1305_s24), 0  ;;  %247 = sbr.rel (%p244_p3) target bundleno = 402 (0x192), region = 40 }
   0xa   : > { %p310_p6 = scmp.lt.s32.totalorder (!%p244_p3), %s307_s25, 2  ;;  %p300_p7 = scmp.lt.s32.totalorder (!%p244_p3), %s1095_s18, 2  ;;  %998 = vmatprep.mubr.msk.bf16.mxu0 (!%p244_p3), %vm443_vm0, %v1065_v6  ;;  %v1067_v7 = vld [vmem:[%s1294_s2 + $0x20] sm:$0xff] (!%p244_p3)   ;;  %1060 = vset.pattern.permute.xlu1 (!%p244_p3), %v1116_v10  ;;  %v355_v11 = vld [vmem:[%s1295_s3 + $0x10] sm:$0xff] (!%p244_p3)  ;;  %v356_v12 = vld [vmem:[%s1295_s3 + $0x18] sm:$0xff] (!%p244_p3)  ;;  %vm371_vm1 = vcmask (!%p244_p3), 1039360  }
   0xb   : > { %s1113_s10 = smov (!%p244_p3), 127   ;;  %s1114_s16 = smov (!%p244_p3), 123   ;;  %986 = vmatprep.mubr.msk.bf16.mxu1 (!%p244_p3), %vm443_vm0, %v1067_v7  ;;  %v353_v9 = vld [vmem:[%s1295_s3] sm:$0xff] (!%p244_p3)  ;;  %1059 = vset.pattern.permute.xlu0 (!%p244_p3), %v1116_v10  ;;  %v358_v14 = vld [vmem:[%s1295_s3 + $0x28] sm:$0xff] (!%p244_p3)  ;;  %v359_v15 = vld [vmem:[%s1295_s3 + $0x30] sm:$0xff] (!%p244_p3)  ;;  %vm385_vm2 = vcmask (!%p244_p3), 1043456  }
   0xc   : > { %s1115_s17 = smov (!%p244_p3), 122   ;;  %v357_v13 = vld [vmem:[%s1295_s3 + $0x20] sm:$0xff] (!%p244_p3)  ;;  %v360_v16 = vld [vmem:[%s1295_s3 + $0x38] sm:$0xff] (!%p244_p3)  ;;  %vm377_vm3 = vcmask (!%p244_p3), 1006592   ;;  %vm383_vm4 = vcmask (!%p244_p3), 998400   ;;  %v1066_v33 = vld [vmem:[%s1294_s2 + $0x8] sm:$0xff] (!%p244_p3)  }
   0xd   : > { %v1069_v35 = vld [vmem:[%s1294_s2 + $0x10] sm:$0xff] (!%p244_p3)   ;;  %v1068_v41 = vld [vmem:[%s1294_s2 + $0x28] sm:$0xff] (!%p244_p3)   ;;  %v1070_v42 = vld [vmem:[%s1294_s2 + $0x18] sm:$0xff] (!%p244_p3)   ;;  %p320_p8 = scmp.lt.s32.totalorder (!%p244_p3), %s1095_s18, 1 }
   0xe   : > { %v1071_v43 = vld [vmem:[%s1294_s2 + $0x30] sm:$0xff] (!%p244_p3)   ;;  %v1072_v44 = vld [vmem:[%s1294_s2 + $0x38] sm:$0xff] (!%p244_p3)  }
  0x10   : > { %s1309_s19 = smov (!%p298_p5, %s1099_s19), 1  ;;  %s1311_s25 = smov (!%p310_p6, %s307_s25), 2 }
  0x11   : > { %s1014_s26 = smul.u32 6, %s1309_s19  ;;  %s882_s27 = sshll.u32 %s1311_s25, 1 }
  0x12   : > { %s301_s8 = scalar_select %p300_p7, %s1095_s18, 2 }
  0x13   : > { %s314_s28 = sadd.s32 %s1014_s26, %s882_s27  ;;  %s1313_s18 = smov (!%p320_p8, %s1095_s18), 1 }
  0x14   : > { %s883_s29 = sshll.u32 %s314_s28, 2  ;;  %s880_s9 = sshll.u32 %s301_s8, 1 }
  0x15   : > { %s316_s7 = scalar_lea.vmem %s1293_s1, %s883_s29  ;;  %s304_s11 = sadd.s32 %s1014_s26, %s880_s9 }
  0x16   : > { %v394_v0 = vld [vmem:[%s316_s7] sm:$0xff]  ;;  %s881_s12 = sshll.u32 %s304_s11, 2  ;;  %s885_s14 = sshll.u32 %s1309_s19, 4 }
  0x17   : > { %v892_v1 = vcombine.low %v394_v0, %v394_v0  ;;  %v893_v2 = vcombine.high %v394_v0, %v394_v0  ;;  %s306_s15 = scalar_lea.vmem %s1292_s0, %s881_s12 }
  0x18   : > { %v361_v3 = vld [vmem:[%s306_s15] sm:$0xff]  ;;  %s884_s15 = sshll.u32 %s1313_s18, 3 }
  0x19   : > { %400 = vrot.lane.b32.xlu1 %v892_v1, %s1113_s10  ;;  %v890_v4 = vcombine.low %v361_v3, %v361_v3  ;;  %v891_v5 = vcombine.high %v361_v3, %v361_v3 }
  0x1b   : > { %367 = vrot.lane.b32.xlu0 %v890_v4, %s1113_s10 }
  0x1d   : > { %402 = vrot.lane.b32.xlu1 %v893_v2, %s1113_s10 }
  0x1f   : > { %369 = vrot.lane.b32.xlu0 %v891_v5, %s1113_s10 }
  0x21   : > { %375 = vrot.lane.b32.xlu1 %v891_v5, %s1114_s16 }
  0x23   : > { %373 = vrot.lane.b32.xlu0 %v890_v4, %s1114_s16 }
  0x25   : > { %381 = vrot.lane.b32.xlu1 %v891_v5, %s1115_s17 }
  0x27   : > { %379 = vrot.lane.b32.xlu0 %v890_v4, %s1115_s17 }
  0x29   : > { %407 = vrot.lane.b32.xlu1 %v893_v2, %s1114_s16 }
  0x2b   : > { %405 = vrot.lane.b32.xlu0 %v892_v1, %s1114_s16  ;;  %s1258_s16 = sadd.s32 %s885_s14, %s884_s15 }
  0x2d   : > { %412 = vrot.lane.b32.xlu1 %v893_v2, %s1115_s17 }
  0x2f   : > { %410 = vrot.lane.b32.xlu0 %v892_v1, %s1115_s17  ;;  %s886_s17 = sshll.u32 %s1258_s16, 2 }
  0x30   : > { %s1266_s26 = scalar_lea.vmem %s1296_s4, %s886_s17  ;;  %s335_s28 = scalar_lea.vmem %s1297_s5, %s886_s17 }
  0x31   : > { %625 = vperm.xlu1 %1060, %v354_v8   ;;  %v964_v52 = vld [vmem:[%s1266_s26 + $0x8] sm:$0xff]   ;;  %v929_v54 = vld [vmem:[%s1266_s26] sm:$0xff]  }
  0x32   : > { %v934_v58 = vunpack.c.l.bf16 %v964_v52  ;;  %v930_v62 = vunpack.c.l.bf16 %v929_v54 }
  0x33   : > { %620 = vperm.xlu0 %1059, %v353_v9   ;;  %v931_v9 = vunpack.c.h.bf16 %v929_v54 }
  0x35   : > { %630 = vperm.xlu1 %1060, %v355_v11  }
  0x37   : > { %635 = vperm.xlu0 %1059, %v356_v12  }
  0x39   : > { %640 = vperm.xlu1 %1060, %v357_v13  }
  0x3b   : > { %645 = vperm.xlu0 %1059, %v358_v14  }
  0x3d   : > { %650 = vperm.xlu1 %1060, %v359_v15   ;;  %v966_v15 = vld [vmem:[%s1266_s26 + $0x18] sm:$0xff]  }
  0x3f   : > { %655 = vperm.xlu0 %1059, %v360_v16  }
  0x8b   : > { %v401_v17 = vpop.permute.xlu1 %400 }
  0x8d   : > { %v368_v20 = vpop.permute.xlu0 %367 }
  0x8f   : > { %v403_v18 = vpop.permute.xlu1 %402 }
  0x90   : > { %v404_v19 = vsel %vm371_vm1, %v401_v17, %v403_v18  ;;  %v965_v17 = vld [vmem:[%s1266_s26 + $0x10] sm:$0xff]  }
  0x91   : > { %v417_v21 = vsel %vm385_vm2, %v394_v0, %v404_v19  ;;  %v370_v23 = vpop.permute.xlu0 %369 }
  0x92   : > { %982 = vmatprep.subr.bf16.mxu1 %v417_v21  ;;  %v372_v24 = vsel %vm371_vm1, %v368_v20, %v370_v23  ;;  %v942_v23 = vunpack.c.l.bf16 %v966_v15 }
  0x93   : > { %983 = vmatpush3.bf16.msra.mxu1 %v417_v21  ;;  %v376_v22 = vpop.permute.xlu1 %375  ;;  %v388_v25 = vsel %vm385_vm2, %v361_v3, %v372_v24  ;;  %v935_v3 = vunpack.c.h.bf16 %v964_v52 }
  0x94   : > { %994 = vmatprep.subr.bf16.mxu0 %v388_v25 }
  0x95   : > { %995 = vmatpush3.bf16.msra.mxu0 %v388_v25  ;;  %v374_v27 = vpop.permute.xlu0 %373 }
  0x96   : > { %v378_v30 = vsel %vm377_vm3, %v374_v27, %v376_v22 }
  0x97   : > { %v382_v26 = vpop.permute.xlu1 %381 }
  0x99   : > { %v380_v28 = vpop.permute.xlu0 %379 }
  0x9a   : > { %v384_v31 = vsel %vm383_vm4, %v380_v28, %v382_v26 }
  0x9b   : > { %v408_v29 = vpop.permute.xlu1 %407  ;;  %v392_v32 = vsel %vm385_vm2, %v378_v30, %v384_v31 }
  0x9c   : > { %996 = vmatprep.subr.bf16.mxu0 %v392_v32 }
  0x9d   : > { %997 = vmatpush3.bf16.msra.mxu0 %v392_v32  ;;  %v406_v34 = vpop.permute.xlu0 %405 }
  0x9e   : > { %v409_v38 = vsel %vm377_vm3, %v406_v34, %v408_v29  ;;  %v938_v29 = vunpack.c.l.bf16 %v965_v17  ;;  %v943_v34 = vunpack.c.h.bf16 %v966_v15 }
  0x9f   : > { %v413_v36 = vpop.permute.xlu1 %412 }
  0xa0   : > { %999 = vmatmul.mubr.msk.bf16.vlgmr.msra.gmra.mrb[0].mxu0 %vm443_vm0, %v1066_v33 }
  0xa1   : > { %v411_v37 = vpop.permute.xlu0 %410  ;;  %1002 = vmatprep.mubr.msk.bf16.mxu0 %vm443_vm0, %v1069_v35 }
  0xa2   : > { %v414_v39 = vsel %vm383_vm4, %v411_v37, %v413_v36 }
  0xa3   : > { %v421_v40 = vsel %vm385_vm2, %v409_v38, %v414_v39 }
  0xa4   : > { %984 = vmatprep.subr.bf16.mxu1 %v421_v40 }
  0xa5   : > { %985 = vmatpush3.bf16.msra.mxu1 %v421_v40  ;;  %v939_v40 = vunpack.c.h.bf16 %v965_v17 }
  0xa8   : > { %987 = vmatmul.mubr.msk.bf16.vlgmr.msra.gmra.mrb[0].mxu1 %vm443_vm0, %v1068_v41  ;;  %1003 = vmatmul.mubr.msk.bf16.gmra.mrb[4].mxu0 %vm443_vm0, %v1070_v42 }
  0xa9   : > { %990 = vmatprep.mubr.msk.bf16.mxu1 %vm443_vm0, %v1071_v43 }
  0xb0   : > { %991 = vmatmul.mubr.msk.bf16.gmra.mrb[4].mxu1 %vm443_vm0, %v1072_v44  ;;  %v626_v45 = vpop.permute.xlu1 %625 }
  0xb2   : > { %v621_v47 = vpop.permute.xlu0 %620 }
  0xb4   : > { %v631_v51 = vpop.permute.xlu1 %630 }
  0xb6   : > { %v636_v53 = vpop.permute.xlu0 %635 }
  0xb8   : > { %v641_v6 = vpop.permute.xlu1 %640 }
  0xba   : > { %v646_v12 = vpop.permute.xlu0 %645 }
  0xbc   : > { %v651_v25 = vpop.permute.xlu1 %650 }
  0xbe   : > { %v656_v36 = vpop.permute.xlu0 %655 }
 0x173   : > { %v1000_v46 = vpop.f32.mrb[0].mxu0 }
 0x174   : > { %v587_v48 = vpop.f32.mrb[1].mxu0 }
 0x175   : > { %v1001_v49 = vpop.f32.mrb[2].mxu0 }
 0x176   : > { %v590_v50 = vpop.f32.mrb[3].mxu0 }
 0x17b   : > { %v988_v55 = vpop.f32.mrb[0].mxu1  ;;  %v1004_v56 = vpop.f32.mrb[4].mxu0 }
 0x17c   : > { %v596_v57 = vadd.f32 %v1000_v46, %v988_v55  ;;  %v490_v59 = vpop.f32.mrb[1].mxu1  ;;  %v603_v60 = vpop.f32.mrb[5].mxu0 }
 0x17d   : > { %v588_v61 = vadd.f32 %v587_v48, %v490_v59  ;;  %v989_v63 = vpop.f32.mrb[2].mxu1  ;;  %v1005_v0 = vpop.f32.mrb[6].mxu0 }
 0x17e   : > { %v660_v1 = vadd.f32 %v631_v51, %v596_v57  ;;  %v599_v2 = vadd.f32 %v1001_v49, %v989_v63  ;;  %v493_v4 = vpop.f32.mrb[3].mxu1  ;;  %v606_v5 = vpop.f32.mrb[7].mxu0 }
 0x17f   : > { %v658_v7 = vadd.f32 %v621_v47, %v588_v61  ;;  %v591_v8 = vadd.f32 %v590_v50, %v493_v4 }
 0x180   : > { %v684_v10 = vadd.f32 %v934_v58, %v660_v1  ;;  %v661_v11 = vadd.f32 %v636_v53, %v599_v2 }
 0x181   : > { %v682_v13 = vadd.f32 %v930_v62, %v658_v7  ;;  %v659_v14 = vadd.f32 %v626_v45, %v591_v8 }
 0x182   : > { %v685_v16 = vadd.f32 %v935_v3, %v661_v11  ;;  %v692_v20 = vmax.f32 %v684_v10, 0.0 }
 0x183   : > { %v683_v18 = vadd.f32 %v931_v9, %v659_v14  ;;  %v992_v19 = vpop.f32.mrb[4].mxu1  ;;  %v690_v26 = vmax.f32 %v682_v13, 0.0 }
 0x184   : > { %v693_v21 = vmax.f32 %v685_v16, 0.0  ;;  %v612_v22 = vadd.f32 %v1004_v56, %v992_v19  ;;  %v506_v24 = vpop.f32.mrb[5].mxu1 }
 0x185   : > { %v691_v27 = vmax.f32 %v683_v18, 0.0  ;;  %v604_v28 = vadd.f32 %v603_v60, %v506_v24  ;;  %v993_v30 = vpop.f32.mrb[6].mxu1 }
 0x186   : > { %v952_v31 = vpack.c.bf16 %v693_v21, %v692_v20  ;;  %v664_v32 = vadd.f32 %v651_v25, %v612_v22  ;;  %v615_v33 = vadd.f32 %v1005_v0, %v993_v30  ;;  %v509_v35 = vpop.f32.mrb[7].mxu1 }
 0x187   : > { %v947_v37 = vpack.c.bf16 %v691_v27, %v690_v26  ;;  %v662_v38 = vadd.f32 %v641_v6, %v604_v28  ;;  %v607_v39 = vadd.f32 %v606_v5, %v509_v35 }
 0x188   : > { %967 = vst [vmem:[%s335_s28 + $0x8] sm:$0xff] %v952_v31   ;;  %v688_v41 = vadd.f32 %v942_v23, %v664_v32  ;;  %v665_v42 = vadd.f32 %v656_v36, %v615_v33 }
 0x189   : > { %948 = vst [vmem:[%s335_s28] sm:$0xff] %v947_v37   ;;  %v686_v43 = vadd.f32 %v938_v29, %v662_v38  ;;  %v663_v44 = vadd.f32 %v646_v12, %v607_v39 }
 0x18a   : > { %v689_v45 = vadd.f32 %v943_v34, %v665_v42  ;;  %v696_v47 = vmax.f32 %v688_v41, 0.0 }
 0x18b   : > { %v687_v46 = vadd.f32 %v939_v40, %v663_v44  ;;  %v694_v49 = vmax.f32 %v686_v43, 0.0 }
 0x18c   : > { %v697_v48 = vmax.f32 %v689_v45, 0.0 }
 0x18d   : > { %v695_v50 = vmax.f32 %v687_v46, 0.0 }
 0x18e   : > { %v962_v51 = vpack.c.bf16 %v697_v48, %v696_v47 }
 0x18f   : > { %v957_v52 = vpack.c.bf16 %v695_v50, %v694_v49 }
 0x190   : > { %969 = vst [vmem:[%s335_s28 + $0x18] sm:$0xff] %v962_v51  }
 0x191   : > { %968 = vst [vmem:[%s335_s28 + $0x10] sm:$0xff] %v957_v52  }
 0x192 PF: > { %s15_s22 = sadd.s32 1, %s1111_s22   ;;  %s1298_s18 = smov %s1103_s20 }
 0x193   : > { %p12_p9 = scmp.ge.s32.totalorder %s15_s22, 6   ;;  %s1299_s19 = smov %s1107_s21 }
 0x194   : > { %s1300_s20 = smov %s1303_s23  ;;  %s1301_s21 = smov %s1307_s24 }
 0x195   :  { %14 = sbr.rel (!%p12_p9) target bundleno = 3 (0x3), region = 76 }

// kernel: tile.14
= control target key start
LH: loop header
LB: loop body
LE: loop exit
PB: predicated region body
PF: predicated region fallthrough
CT: control target
= control target key end

     0   :  { %s22_s0 = inlined_call_operand.vmem [shape: f32[4], index: 0, kind: input, shape index: {}]   ;;  %s23_s1 = inlined_call_operand.vmem [shape: f32[8,1,1,4], index: 1, kind: output, shape index: {}]  }
   0x1   :  { %v4_v0 = vld [vmem:[%s22_s0] ss:$0 sm:$0xff] }
   0x2   :  { %5 = vst [vmem:[%s23_s1] sm:$0xff] %v4_v0 }

// kernel: tile.1
= control target key start
LH: loop header
LB: loop body
LE: loop exit
PB: predicated region body
PF: predicated region fallthrough
CT: control target
= control target key end

     0   :  { %vm3_vm0 = vcmask 7168   ;;  %s30_s8 = smov 125   ;;  %s31_s11 = smov 126   ;;  %s57_s0 = inlined_call_operand.vmem [shape: f32[8,1,1,4], index: 0, kind: input, shape index: {}]   ;;  %s58_s1 = inlined_call_operand.vmem [shape: f32[32,1], index: 1, kind: output, shape index: {}]  }
   0x1   :  { %v5_v0 = vld [vmem:[%s57_s0] sm:$0xff]   ;;  %s29_s0 = smov 127  }
   0x2   :  { %6 = vrot.lane.b32.xlu0 %v5_v0, %s29_s0  ;;  %18 = vrot.lane.b32.xlu1 %v5_v0, %s30_s8  ;;  %4 = vst.msk [vmem:[%s58_s1] ss:$4 sm:$0xff] %vm3_vm0, %v5_v0  }
   0x6   :  { %12 = vrot.lane.b32.xlu0 %v5_v0, %s31_s11 }
  0x74   :  { %v7_v1 = vpop.permute.xlu0 %6   ;;  %v19_v2 = vpop.permute.xlu1 %18  }
  0x75   :  { %23 = vst.msk [vmem:[%s58_s1 + $0x1] ss:$4 sm:$0xff] %vm3_vm0, %v7_v1   ;;  %25 = vst.msk [vmem:[%s58_s1 + $0x3] ss:$4 sm:$0xff] %vm3_vm0, %v19_v2  }
  0x78   :  { %v13_v3 = vpop.permute.xlu0 %12  }
  0x79   :  { %24 = vst.msk [vmem:[%s58_s1 + $0x2] ss:$4 sm:$0xff] %vm3_vm0, %v13_v3  }

// kernel: hourglass_forward.11
= control target key start
LH: loop header
LB: loop body
LE: loop exit
PB: predicated region body
PF: predicated region fallthrough
CT: control target
= control target key end

     0   :  { %s1107_s15 = smov 0   ;;  %s1109_s16 = smov 0   ;;  %s1232_s0 = inlined_call_operand.vmem [shape: bf16[2,5,8,256], index: 0, kind: input, shape index: {}, may-alias: {0,1}]   ;;  %s1233_s1 = inlined_call_operand.vmem [shape: bf16[2,5,8,256], index: 1, kind: input, shape index: {}, may-alias: {0,1}]   ;;  %s1234_s2 = inlined_call_operand.vmem [shape: bf16[2,32,32], index: 2, kind: input, shape index: {}]   ;;  %s1235_s3 = inlined_call_operand.vmem [shape: f32[32,1], index: 3, kind: input, shape index: {}]   ;;  %s1236_s4 = inlined_call_operand.vmem [shape: bf16[2,4,32,128], index: 4, kind: output, shape index: {}]  }
   0x1   :  { %s1111_s17 = smov 0   ;;  %s1113_s18 = smov 0  }
   0x2   :  { %s1115_s19 = smov 0  }
   0x3 LB: > { %s23_s20 = sadd.s32 1, %s1068_s17  ;;  %s26_s21 = sadd.s32 1, %s1072_s18  ;;  %s1076_s19 = sphi %s1115_s19, %s14_s19   ;;  %s1072_s18 = sphi %s1113_s18, %s1240_s18   ;;  %s1068_s17 = sphi %s1111_s17, %s1239_s17   ;;  %s1064_s16 = sphi %s1109_s16, %s1238_s16   ;;  %s1060_s15 = sphi %s1107_s15, %s1237_s15  }
   0x4   : > { %p24_p0 = scmp.ge.s32.totalorder %s23_s20, 2  ;;  %p844_p1 = scmp.ge.s32.totalorder %s1076_s19, 1 }
   0x5   : > { %p218_p2 = scmp.lt.s32.totalorder %s1076_s19, 5 }
   0x6   : > { %s1242_s20 = smov (%p24_p0, %s23_s20), 0  ;;  %s1244_s21 = smov (!%p24_p0, %s26_s21), %s1072_s18 }
   0x7   : > { %p219_p3 = pnand %p844_p1, %p218_p2  ;;  %p28_p4 = scmp.ge.s32.totalorder %s1244_s21, 2 }
   0x8   : > { %s1137_s22 = sshll.u32 (!%p219_p3), %s1060_s15, 1  ;;  %p276_p5 = scmp.lt.s32.totalorder (!%p219_p3), %s1064_s16, 1  ;;  %v1034_v6 = vld [vmem:[%s1234_s2 + $0x10] sm:$0xff] (!%p219_p3)   ;;  %vm430_vm0 = vcmask (!%p219_p3), 261120   ;;  %v1081_v10 = vmov (!%p219_p3), 0   ;;  %v325_v11 = vld [vmem:[%s1235_s3 + $0x8] sm:$0xff] (!%p219_p3) }
   0x9   : > { %s1246_s21 = smov (%p28_p4, %s1244_s21), 0  ;;  %222 = sbr.rel (%p219_p3) target bundleno = 399 (0x18f), region = 36 }
   0xa   : > { %p278_p6 = scmp.lt.s32.totalorder (!%p219_p3), %s1137_s22, 4  ;;  %s893_s27 = sadd.s32 (!%p219_p3), 2, %s1137_s22  ;;  %945 = vmatprep.mubr.msk.bf16.mxu0 (!%p219_p3), %vm430_vm0, %v1034_v6  ;;  %961 = vmatprep.mubr.msk.bf16.mxu1 (!%p219_p3), %vm430_vm0, %v1034_v6  ;;  %v324_v12 = vld [vmem:[%s1235_s3] sm:$0xff] (!%p219_p3)  ;;  %v326_v13 = vld [vmem:[%s1235_s3 + $0x10] sm:$0xff] (!%p219_p3)  ;;  %v327_v14 = vld [vmem:[%s1235_s3 + $0x18] sm:$0xff] (!%p219_p3)  ;;  %vm338_vm1 = vcmask (!%p219_p3), 1039360  }
   0xb   : > { %p295_p7 = scmp.lt.s32.totalorder (!%p219_p3), %s893_s27, 4  ;;  %s1078_s7 = smov (!%p219_p3), 119   ;;  %1027 = vset.pattern.permute.xlu1 (!%p219_p3), %v1081_v10  ;;  %1026 = vset.pattern.permute.xlu0 (!%p219_p3), %v1081_v10  ;;  %vm352_vm2 = vcmask (!%p219_p3), 1043456   ;;  %vm344_vm3 = vcmask (!%p219_p3), 973824   ;;  %vm350_vm4 = vcmask (!%p219_p3), 965632   ;;  %v1035_v30 = vld [vmem:[%s1234_s2 + $0x18] sm:$0xff] (!%p219_p3)  }
   0xc   : > { %s1079_s8 = smov (!%p219_p3), 127   ;;  %s1080_s14 = smov (!%p219_p3), 118   ;;  %v1036_v33 = vld [vmem:[%s1234_s2] sm:$0xff] (!%p219_p3)   ;;  %v1037_v50 = vld [vmem:[%s1234_s2 + $0x8] sm:$0xff] (!%p219_p3)  }
   0xd   : > { %p307_p8 = scmp.lt.s32.totalorder (!%p219_p3), %s1137_s22, 3 }
  0x10   : > { %s1248_s16 = smov (!%p276_p5, %s1064_s16), 1  ;;  %s1250_s27 = smov (!%p295_p7, %s893_s27), 4 }
  0x11   : > { %s279_s23 = scalar_select %p278_p6, %s1137_s22, 4 }
  0x12   : > { %s981_s24 = smul.u32 10, %s1248_s16  ;;  %s849_s6 = sshll.u32 %s1250_s27, 1 }
  0x13   : > { %s846_s25 = sshll.u32 %s279_s23, 1  ;;  %s1252_s22 = smov (!%p307_p8, %s1137_s22), 3 }
  0x14   : > { %s282_s26 = sadd.s32 %s981_s24, %s846_s25  ;;  %s299_s9 = sadd.s32 %s981_s24, %s849_s6 }
  0x15   : > { %s847_s28 = sshll.u32 %s282_s26, 2  ;;  %s850_s10 = sshll.u32 %s299_s9, 2 }
  0x16   : > { %s284_s5 = scalar_lea.vmem %s1232_s0, %s847_s28  ;;  %s301_s13 = scalar_lea.vmem %s1233_s1, %s850_s10 }
  0x17   : > { %v857_v0 = vld [vmem:[%s284_s5 + $0x8] sm:$0xff]  ;;  %v391_v3 = vld [vmem:[%s301_s13] sm:$0xff]  ;;  %s852_s12 = sshll.u32 %s1252_s22, 2  ;;  %s853_s13 = sshll.u32 %s1248_s16, 4 }
  0x18   : > { %v859_v1 = vcombine.high %v857_v0, %v857_v0  ;;  %v858_v2 = vcombine.low %v857_v0, %v857_v0  ;;  %v860_v4 = vcombine.low %v391_v3, %v391_v3  ;;  %v861_v5 = vcombine.high %v391_v3, %v391_v3  ;;  %v1160_v7 = vld [vmem:[%s284_s5] sm:$0xff] }
  0x19   : > { %v856_v8 = vcombine.high %v1160_v7, %v1160_v7  ;;  %v855_v9 = vcombine.low %v1160_v7, %v1160_v7 }
  0x1a   : > { %375 = vrot.lane.b32.xlu1 %v859_v1, %s1078_s7  ;;  %368 = vrot.lane.b32.xlu0 %v858_v2, %s1079_s8 }
  0x1e   : > { %380 = vrot.lane.b32.xlu1 %v859_v1, %s1080_s14  ;;  %370 = vrot.lane.b32.xlu0 %v859_v1, %s1079_s8 }
  0x22   : > { %397 = vrot.lane.b32.xlu1 %v860_v4, %s1079_s8  ;;  %373 = vrot.lane.b32.xlu0 %v858_v2, %s1078_s7 }
  0x26   : > { %399 = vrot.lane.b32.xlu1 %v861_v5, %s1079_s8  ;;  %378 = vrot.lane.b32.xlu0 %v858_v2, %s1080_s14 }
  0x2a   : > { %404 = vrot.lane.b32.xlu1 %v861_v5, %s1078_s7  ;;  %402 = vrot.lane.b32.xlu0 %v860_v4, %s1078_s7 }
  0x2e   : > { %409 = vrot.lane.b32.xlu1 %v861_v5, %s1080_s14  ;;  %407 = vrot.lane.b32.xlu0 %v860_v4, %s1080_s14 }
  0x32   : > { %336 = vrot.lane.b32.xlu1 %v856_v8, %s1079_s8  ;;  %334 = vrot.lane.b32.xlu0 %v855_v9, %s1079_s8 }
  0x36   : > { %342 = vrot.lane.b32.xlu1 %v856_v8, %s1078_s7  ;;  %340 = vrot.lane.b32.xlu0 %v855_v9, %s1078_s7 }
  0x3a   : > { %348 = vrot.lane.b32.xlu1 %v856_v8, %s1080_s14  ;;  %346 = vrot.lane.b32.xlu0 %v855_v9, %s1080_s14  ;;  %s311_s14 = sadd.s32 %s853_s13, %s852_s12 }
  0x3b   : > { %s854_s15 = sshll.u32 %s311_s14, 2 }
  0x3c   : > { %s313_s23 = scalar_lea.vmem %s1236_s4, %s854_s15 }
  0x3e   : > { %558 = vperm.xlu1 %1027, %v325_v11   ;;  %553 = vperm.xlu0 %1026, %v324_v12  }
  0x42   : > { %563 = vperm.xlu1 %1027, %v326_v13   ;;  %568 = vperm.xlu0 %1026, %v327_v14  }
  0x8c   : > { %v376_v15 = vpop.permute.xlu1 %375  ;;  %v369_v16 = vpop.permute.xlu0 %368 }
  0x90   : > { %v381_v17 = vpop.permute.xlu1 %380  ;;  %v371_v18 = vpop.permute.xlu0 %370 }
  0x91   : > { %v372_v19 = vsel %vm338_vm1, %v369_v16, %v371_v18 }
  0x92   : > { %v385_v20 = vsel %vm352_vm2, %v857_v0, %v372_v19 }
  0x93   : > { %941 = vmatprep.subr.bf16.mxu0 %v385_v20 }
  0x94   : > { %v398_v21 = vpop.permute.xlu1 %397  ;;  %942 = vmatpush3.bf16.msra.mxu0 %v385_v20  ;;  %v374_v22 = vpop.permute.xlu0 %373 }
  0x95   : > { %v377_v25 = vsel %vm344_vm3, %v374_v22, %v376_v15 }
  0x98   : > { %v400_v23 = vpop.permute.xlu1 %399  ;;  %v379_v24 = vpop.permute.xlu0 %378 }
  0x99   : > { %v401_v26 = vsel %vm338_vm1, %v398_v21, %v400_v23  ;;  %v382_v27 = vsel %vm350_vm4, %v379_v24, %v381_v17 }
  0x9a   : > { %v389_v28 = vsel %vm352_vm2, %v377_v25, %v382_v27  ;;  %v414_v29 = vsel %vm352_vm2, %v391_v3, %v401_v26 }
  0x9b   : > { %943 = vmatprep.subr.bf16.mxu0 %v389_v28  ;;  %957 = vmatprep.subr.bf16.mxu1 %v414_v29 }
  0x9c   : > { %958 = vmatpush3.bf16.msra.mxu1 %v414_v29  ;;  %v405_v31 = vpop.permute.xlu1 %404  ;;  %944 = vmatpush3.bf16.msra.mxu0 %v389_v28  ;;  %v403_v32 = vpop.permute.xlu0 %402 }
  0x9d   : > { %v406_v36 = vsel %vm344_vm3, %v403_v32, %v405_v31 }
  0x9f   : > { %946 = vmatmul.mubr.msk.bf16.vlgmr.msra.gmra.mrb[0].mxu0 %vm430_vm0, %v1035_v30 }
  0xa0   : > { %v410_v34 = vpop.permute.xlu1 %409  ;;  %v408_v35 = vpop.permute.xlu0 %407  ;;  %953 = vmatprep.mubr.msk.bf16.mxu0 %vm430_vm0, %v1036_v33 }
  0xa1   : > { %v411_v37 = vsel %vm350_vm4, %v408_v35, %v410_v34 }
  0xa2   : > { %v418_v38 = vsel %vm352_vm2, %v406_v36, %v411_v37 }
  0xa3   : > { %959 = vmatprep.subr.bf16.mxu1 %v418_v38 }
  0xa4   : > { %960 = vmatpush3.bf16.msra.mxu1 %v418_v38  ;;  %v337_v39 = vpop.permute.xlu1 %336  ;;  %v335_v40 = vpop.permute.xlu0 %334 }
  0xa5   : > { %v339_v41 = vsel %vm338_vm1, %v335_v40, %v337_v39  ;;  %965 = vmatprep.subr.bf16.mxu1 %v385_v20 }
  0xa6   : > { %v355_v42 = vsel %vm352_vm2, %v1160_v7, %v339_v41 }
  0xa7   : > { %949 = vmatprep.subr.bf16.mxu0 %v355_v42  ;;  %962 = vmatmul.mubr.msk.bf16.vlgmr.msra.gmra.mrb[0].mxu1 %vm430_vm0, %v1035_v30 }
  0xa8   : > { %966 = vmatpush3.bf16.msra.mxu1 %v385_v20  ;;  %v343_v43 = vpop.permute.xlu1 %342  ;;  %950 = vmatpush3.bf16.msra.mxu0 %v355_v42  ;;  %v341_v44 = vpop.permute.xlu0 %340 }
  0xa9   : > { %967 = vmatprep.subr.bf16.mxu1 %v389_v28  ;;  %969 = vmatprep.mubr.msk.bf16.mxu1 %vm430_vm0, %v1036_v33  ;;  %v345_v47 = vsel %vm344_vm3, %v341_v44, %v343_v43 }
  0xac   : > { %968 = vmatpush3.bf16.msra.mxu1 %v389_v28  ;;  %v349_v45 = vpop.permute.xlu1 %348  ;;  %v347_v46 = vpop.permute.xlu0 %346 }
  0xad   : > { %v351_v48 = vsel %vm350_vm4, %v347_v46, %v349_v45 }
  0xae   : > { %v359_v49 = vsel %vm352_vm2, %v345_v47, %v351_v48 }
  0xaf   : > { %951 = vmatprep.subr.bf16.mxu0 %v359_v49 }
  0xb0   : > { %952 = vmatpush3.bf16.msra.mxu0 %v359_v49 }
  0xb3   : > { %954 = vmatmul.mubr.msk.bf16.vlgmr.msra.gmra.mrb[0].mxu0 %vm430_vm0, %v1037_v50  ;;  %970 = vmatmul.mubr.msk.bf16.vlgmr.msra.gmra.mrb[0].mxu1 %vm430_vm0, %v1037_v50 }
  0xbd   : > { %v559_v51 = vpop.permute.xlu1 %558  ;;  %v554_v52 = vpop.permute.xlu0 %553 }
  0xc1   : > { %v564_v53 = vpop.permute.xlu1 %563  ;;  %v569_v54 = vpop.permute.xlu0 %568 }
 0x186   : > { %v971_v55 = vpop.f32.mrb[0].mxu1  ;;  %v955_v56 = vpop.f32.mrb[0].mxu0 }
 0x187   : > { %v536_v57 = vpop.f32.mrb[1].mxu0  ;;  %v678_v58 = vpop.f32.mrb[1].mxu1  ;;  %v695_v61 = vadd.f32 %v971_v55, %v564_v53  ;;  %v573_v62 = vadd.f32 %v955_v56, %v564_v53 }
 0x188   : > { %v956_v59 = vpop.f32.mrb[2].mxu0  ;;  %v972_v60 = vpop.f32.mrb[2].mxu1  ;;  %v571_v3 = vadd.f32 %v554_v52, %v536_v57  ;;  %v693_v4 = vadd.f32 %v678_v58, %v554_v52 }
 0x189   : > { %v574_v63 = vadd.f32 %v956_v59, %v569_v54  ;;  %v696_v0 = vadd.f32 %v972_v60, %v569_v54  ;;  %v539_v1 = vpop.f32.mrb[3].mxu0  ;;  %v681_v2 = vpop.f32.mrb[3].mxu1 }
 0x18a   : > { %v572_v5 = vadd.f32 %v559_v51, %v539_v1  ;;  %v694_v6 = vadd.f32 %v681_v2, %v559_v51 }
 0x18b   : > { %v910_v7 = vpack.c.bf16 %v574_v63, %v573_v62  ;;  %v920_v8 = vpack.c.bf16 %v696_v0, %v695_v61 }
 0x18c   : > { %v905_v9 = vpack.c.bf16 %v572_v5, %v571_v3  ;;  %v915_v10 = vpack.c.bf16 %v694_v6, %v693_v4 }
 0x18d   : > { %922 = vst [vmem:[%s313_s23 + $0x8] sm:$0xff] %v910_v7   ;;  %924 = vst [vmem:[%s313_s23 + $0x18] sm:$0xff] %v920_v8  }
 0x18e   : > { %906 = vst [vmem:[%s313_s23] sm:$0xff] %v905_v9   ;;  %923 = vst [vmem:[%s313_s23 + $0x10] sm:$0xff] %v915_v10  }
 0x18f PF: > { %s14_s19 = sadd.s32 1, %s1076_s19   ;;  %s1237_s15 = smov %s1068_s17 }
 0x190   : > { %p11_p9 = scmp.ge.s32.totalorder %s14_s19, 6   ;;  %s1238_s16 = smov %s1072_s18 }
 0x191   : > { %s1239_s17 = smov %s1242_s20  ;;  %s1240_s18 = smov %s1246_s21 }
 0x192   :  { %13 = sbr.rel (!%p11_p9) target bundleno = 3 (0x3), region = 71 }

</bundles_post_ra>
